<compile_context>
chip_gen: v6e
topology: v6e:2x2x1
jax: 0.10.0
libtpu: 0.0.40
codegen_flags: <defaults>
</compile_context>

<pallas_src>
import functools

import jax
import jax.numpy as jnp
from jax.experimental import pallas as pl
from jax.experimental.pallas import tpu as pltpu

EPS = 1e-5
LANE = 128
W_OFF = 8          # sublane-aligned column offset of the real data inside xpad
VMEM_LIMIT = 64 * 1024 * 1024


def _round_up(x, m):
    return (x + m - 1) // m * m


# --------------------------------------------------------------------------- #
# Kernels
# --------------------------------------------------------------------------- #
def conv_stats_kernel(x_ref, w_ref, scale_ref, shift_ref, y_ref, stats_ref,
                      xpad_ref, *, H, W, fuse_bn_relu):
    """3x3 conv (pad=1, no bias) for one image + per-tile BN partial stats.

    x_ref     : (1, H, W, Cin) or (1, H*W, Cin)   input tile
    w_ref     : (9*Cin, Cout_p)                    im2col-flattened weights
    scale_ref : (1, Cin)   fused BN scale of the previous stage (if enabled)
    shift_ref : (1, Cin)   fused BN shift of the previous stage (if enabled)
    y_ref     : (1, H*W, Cout_p)                   raw conv output (pre-BN)
    stats_ref : (1, 8, Cout_p)                     row0 = sum, row1 = sum of squares
    xpad_ref  : VMEM scratch (H+2, W+2*W_OFF, Cin) zero-halo buffer
    """
    Cin = x_ref.shape[-1]
    Cp = y_ref.shape[-1]

    x = x_ref[0].reshape(H, W, Cin)
    if fuse_bn_relu:
        # BN + ReLU of the *previous* stage fused into this load.
        # The zero halo below stays exactly zero (matches PyTorch padding of
        # the post-ReLU activation).
        x = jnp.maximum(x * scale_ref[...] + shift_ref[...], 0.0)

    # ---- in-kernel zero halo (no host-side jnp.pad of the activation) ----
    xpad_ref[...] = jnp.zeros_like(xpad_ref)
    xpad_ref[1:H + 1, W_OFF:W_OFF + W, :] = x      # aligned, unmasked store

    taps = [
        xpad_ref[ky:ky + H, W_OFF - 1 + kx:W_OFF - 1 + kx + W, :]
        .reshape(H * W, Cin)
        for ky in range(3) for kx in range(3)
    ]

    if Cin % LANE == 0:
        # Lane-aligned channels: im2col once -> a single fat MXU matmul
        # (M = H*W, K = 9*Cin, N = Cout_p), instead of 9 tiny-K matmuls.
        patch = jnp.concatenate(taps, axis=-1)                  # (H*W, 9*Cin)
        acc = jnp.dot(patch, w_ref[...], preferred_element_type=jnp.float32)
    else:
        # Tiny unaligned Cin (only the network's first conv): per-tap accumulate.
        acc = jnp.zeros((H * W, Cp), jnp.float32)
        for t, tap in enumerate(taps):
            acc = acc + jnp.dot(tap, w_ref[t * Cin:(t + 1) * Cin, :],
                                preferred_element_type=jnp.float32)

    # lane-dense output store (Cout padded to 128 in the wrapper)
    y_ref[0] = acc

    # ---- one-pass BN partial statistics for this tile (fp32) ----
    s = jnp.sum(acc, axis=0, keepdims=True)             # (1, Cp)
    ss = jnp.sum(acc * acc, axis=0, keepdims=True)      # (1, Cp)
    rows = jax.lax.broadcasted_iota(jnp.int32, (8, Cp), 0)
    stats_ref[0] = jnp.where(rows == 0, s, jnp.where(rows == 1, ss, 0.0))


def bn_relu_kernel(y_ref, scale_ref, shift_ref, o_ref):
    """Elementwise BN (precomputed scale/shift) + ReLU, lane-dense."""
    o_ref[...] = jnp.maximum(y_ref[...] * scale_ref[...] + shift_ref[...], 0.0)


# --------------------------------------------------------------------------- #
# pallas_call wrappers
# --------------------------------------------------------------------------- #
def _conv_stats(x, w_flat, in_scale, in_shift, *, H, W, fuse_bn_relu):
    N = x.shape[0]
    Cin = x.shape[-1]
    K, Cp = w_flat.shape
    assert K == 9 * Cin

    kern = functools.partial(conv_stats_kernel, H=H, W=W,
                             fuse_bn_relu=fuse_bn_relu)

    x_block = (1,) + x.shape[1:]
    if x.ndim == 4:
        x_index = lambda n: (n, 0, 0, 0)
    else:
        x_index = lambda n: (n, 0, 0)

    flops = 2 * N * H * W * K * Cp
    bytes_acc = 4 * (x.size + w_flat.size + N * H * W * Cp + N * 8 * Cp)

    y, stats = pl.pallas_call(
        kern,
        out_shape=(jax.ShapeDtypeStruct((N, H * W, Cp), jnp.float32),
                   jax.ShapeDtypeStruct((N, 8, Cp), jnp.float32)),
        grid=(N,),
        in_specs=[
            pl.BlockSpec(x_block, x_index),
            pl.BlockSpec((K, Cp), lambda n: (0, 0)),
            pl.BlockSpec((1, Cin), lambda n: (0, 0)),
            pl.BlockSpec((1, Cin), lambda n: (0, 0)),
        ],
        out_specs=(
            pl.BlockSpec((1, H * W, Cp), lambda n: (n, 0, 0)),
            pl.BlockSpec((1, 8, Cp), lambda n: (n, 0, 0)),
        ),
        scratch_shapes=[pltpu.VMEM((H + 2, W + 2 * W_OFF, Cin), jnp.float32)],
        compiler_params=pltpu.CompilerParams(
            dimension_semantics=("parallel",),
            vmem_limit_bytes=VMEM_LIMIT),
        cost_estimate=pl.CostEstimate(
            flops=flops, transcendentals=0, bytes_accessed=bytes_acc),
    )(x, w_flat, in_scale, in_shift)
    return y, stats


def _bn_relu(y, scale, shift):
    N, HW, Cp = y.shape
    return pl.pallas_call(
        bn_relu_kernel,
        out_shape=jax.ShapeDtypeStruct((N, HW, Cp), jnp.float32),
        grid=(N,),
        in_specs=[
            pl.BlockSpec((1, HW, Cp), lambda n: (n, 0, 0)),
            pl.BlockSpec((1, Cp), lambda n: (0, 0)),
            pl.BlockSpec((1, Cp), lambda n: (0, 0)),
        ],
        out_specs=pl.BlockSpec((1, HW, Cp), lambda n: (n, 0, 0)),
        compiler_params=pltpu.CompilerParams(
            dimension_semantics=("parallel",),
            vmem_limit_bytes=VMEM_LIMIT),
        cost_estimate=pl.CostEstimate(
            flops=2 * N * HW * Cp, transcendentals=0,
            bytes_accessed=4 * (2 * N * HW * Cp + 2 * Cp)),
    )(y, scale, shift)


def _bn_scale_shift(stats, gamma, beta, count):
    """Combine per-tile (sum, sumsq) partials into BN scale/shift (fp32)."""
    tot = jnp.sum(stats, axis=0)                       # (8, Cp)
    mean = tot[0] / count
    var = jnp.maximum(tot[1] / count - mean * mean, 0.0)   # biased var, fp32
    scale = gamma * jax.lax.rsqrt(var + EPS)
    shift = beta - mean * scale
    return scale.reshape(1, -1), shift.reshape(1, -1)


# --------------------------------------------------------------------------- #
# Conv_Block forward
# --------------------------------------------------------------------------- #
def init_conv_block_params(key, in_channels, out_channels):
    """Deterministic synthetic parameters matching Conv_Block's shapes."""
    k1, k2, k3, k4 = jax.random.split(key, 4)
    w1 = 0.1 * jax.random.normal(k1, (3, 3, in_channels, out_channels), jnp.float32)
    w2 = 0.1 * jax.random.normal(k2, (3, 3, out_channels, out_channels), jnp.float32)
    gamma1 = 1.0 + 0.05 * jax.random.normal(k3, (out_channels,), jnp.float32)
    beta1 = 0.05 * jax.random.normal(k4, (out_channels,), jnp.float32)
    gamma2 = jnp.ones((out_channels,), jnp.float32)
    beta2 = jnp.zeros((out_channels,), jnp.float32)
    return dict(w1=w1, gamma1=gamma1, beta1=beta1,
                w2=w2, gamma2=gamma2, beta2=beta2)


@jax.jit
def conv_block_forward(x_nchw, params):
    """Forward of Conv_Block. Input/output are NCHW to match PyTorch."""
    N, Cin, H, W = x_nchw.shape
    Cout = params["w1"].shape[-1]
    Cp = _round_up(Cout, LANE)

    x = jnp.transpose(x_nchw, (0, 2, 3, 1))            # NCHW -> NHWC

    # Lane-dense weights / BN params: pad output (and stage-2 input) channels.
    w1p = jnp.pad(params["w1"], ((0, 0), (0, 0), (0, 0), (0, Cp - Cout)))
    w1p = w1p.reshape(9 * Cin, Cp)
    w2p = jnp.pad(params["w2"], ((0, 0), (0, 0), (0, Cp - Cout), (0, Cp - Cout)))
    w2p = w2p.reshape(9 * Cp, Cp)
    g1 = jnp.pad(params["gamma1"], (0, Cp - Cout))
    b1 = jnp.pad(params["beta1"], (0, Cp - Cout))
    g2 = jnp.pad(params["gamma2"], (0, Cp - Cout))
    b2 = jnp.pad(params["beta2"], (0, Cp - Cout))

    ones_in = jnp.ones((1, Cin), jnp.float32)
    zeros_in = jnp.zeros((1, Cin), jnp.float32)
    count = N * H * W

    # Stage 1: conv1 + per-tile BN partial stats.
    y1, st1 = _conv_stats(x, w1p, ones_in, zeros_in,
                          H=H, W=W, fuse_bn_relu=False)
    scale1, shift1 = _bn_scale_shift(st1, g1, b1, count)

    # Stage 2: BN1+ReLU fused into the load, conv2 + partial stats.
    y2, st2 = _conv_stats(y1, w2p, scale1, shift1,
                          H=H, W=W, fuse_bn_relu=True)
    scale2, shift2 = _bn_scale_shift(st2, g2, b2, count)

    # Final BN2 + ReLU (lane-dense elementwise kernel), then un-pad channels.
    out = _bn_relu(y2, scale2, shift2)                  # (N, H*W, Cp)
    out = out.reshape(N, H, W, Cp)[..., :Cout]
    return jnp.transpose(out, (0, 3, 1, 2))             # NHWC -> NCHW


# --------------------------------------------------------------------------- #
# Pure-JAX reference + self-check
# --------------------------------------------------------------------------- #
def _reference_forward(x_nchw, params):
    def stage(x, w, gamma, beta):
        w_oihw = jnp.transpose(w, (3, 2, 0, 1))
        y = jax.lax.conv_general_dilated(
            x, w_oihw, window_strides=(1, 1), padding=((1, 1), (1, 1)),
            dimension_numbers=("NCHW", "OIHW", "NCHW"))
        mean = jnp.mean(y, axis=(0, 2, 3), keepdims=True)
        var = jnp.mean((y - mean) ** 2, axis=(0, 2, 3), keepdims=True)
        yhat = (y - mean) * jax.lax.rsqrt(var + EPS)
        yhat = yhat * gamma.reshape(1, -1, 1, 1) + beta.reshape(1, -1, 1, 1)
        return jnp.maximum(yhat, 0.0)

    out = stage(x_nchw, params["w1"], params["gamma1"], params["beta1"])
    out = stage(out, params["w2"], params["gamma2"], params["beta2"])
    return out


if __name__ == "__main__":
    key = jax.random.PRNGKey(0)
    kx, kp = jax.random.split(key)

    N, Cin, H, W = 2, 4, 16, 16
    Cout = 8

    x = jax.random.normal(kx, (N, Cin, H, W), jnp.float32)
    params = init_conv_block_params(kp, Cin, Cout)

    out = jax.block_until_ready(conv_block_forward(x, params))
    assert out.shape == (N, Cout, H, W), out.shape

    ref = jax.block_until_ready(_reference_forward(x, params))
    err = float(jnp.max(jnp.abs(out - ref)))
    assert err < 2e-3, f"mismatch vs reference: {err}"

    print("KERNEL_OK")
</pallas_src>

<mosaic_0001>
module attributes {stable_mosaic.version = 11 : i64} {
  func.func @conv_stats_kernel(%arg0: i32, %arg1: memref<1x16x16x4xf32, #tpu.memory_space<vmem>>, %arg2: memref<36x128xf32, #tpu.memory_space<vmem>>, %arg3: memref<1x4xf32, #tpu.memory_space<vmem>>, %arg4: memref<1x4xf32, #tpu.memory_space<vmem>>, %arg5: memref<1x256x128xf32, #tpu.memory_space<vmem>>, %arg6: memref<1x8x128xf32, #tpu.memory_space<vmem>>, %arg7: memref<18x32x4xf32, #tpu.memory_space<vmem>>) attributes {dimension_semantics = [#tpu.dimension_semantics<parallel>], iteration_bounds = array<i64: 2>, scalar_prefetch = 0 : i64, scratch_operands = 1 : i64, tpu.core_type = #tpu.core_type<tc>, window_params = [{transform_indices = @transform_0, window_bounds = array<i64: 1, 16, 16, 4>}, {pipeline_mode = #tpu.pipeline_mode<synchronous>, transform_indices = @transform_1, window_bounds = array<i64: 36, 128>}, {pipeline_mode = #tpu.pipeline_mode<synchronous>, transform_indices = @transform_2, window_bounds = array<i64: 1, 4>}, {pipeline_mode = #tpu.pipeline_mode<synchronous>, transform_indices = @transform_3, window_bounds = array<i64: 1, 4>}, {transform_indices = @transform_4, window_bounds = array<i64: 1, 256, 128>}, {transform_indices = @transform_5, window_bounds = array<i64: 1, 8, 128>}]} {
    %c0 = arith.constant 0 : index
    %c0_0 = arith.constant 0 : index
    %c0_1 = arith.constant 0 : index
    %c0_2 = arith.constant 0 : index
    %0 = vector.load %arg1[%c0, %c0_0, %c0_1, %c0_2] : memref<1x16x16x4xf32, #tpu.memory_space<vmem>>, vector<1x16x16x4xf32>
    %1 = vector.shape_cast %0 : vector<1x16x16x4xf32> to vector<16x16x4xf32>
    %cst = arith.constant 0.000000e+00 : f32
    %2 = vector.broadcast %cst : f32 to vector<18x32x4xf32>
    %c0_3 = arith.constant 0 : index
    %c0_4 = arith.constant 0 : index
    %c0_5 = arith.constant 0 : index
    %3 = vector.load %arg7[%c0_3, %c0_4, %c0_5] : memref<18x32x4xf32, #tpu.memory_space<vmem>>, vector<18x32x4xf32>
    tpu.vector_store %arg7[%c0_3, %c0_4, %c0_5], %2 {strides = array<i32>} : memref<18x32x4xf32, #tpu.memory_space<vmem>>, vector<18x32x4xf32>,
    %c1 = arith.constant 1 : index
    %c8 = arith.constant 8 : index
    %c0_6 = arith.constant 0 : index
    %4 = vector.load %arg7[%c1, %c8, %c0_6] : memref<18x32x4xf32, #tpu.memory_space<vmem>>, vector<16x16x4xf32>
    tpu.vector_store %arg7[%c1, %c8, %c0_6], %1 {strides = array<i32>} : memref<18x32x4xf32, #tpu.memory_space<vmem>>, vector<16x16x4xf32>,
    %c0_7 = arith.constant 0 : index
    %c7 = arith.constant 7 : index
    %c0_8 = arith.constant 0 : index
    %5 = vector.load %arg7[%c0_7, %c7, %c0_8] : memref<18x32x4xf32, #tpu.memory_space<vmem>>, vector<16x16x4xf32>
    %6 = vector.shape_cast %5 : vector<16x16x4xf32> to vector<256x4xf32>
    %c0_9 = arith.constant 0 : index
    %c8_10 = arith.constant 8 : index
    %c0_11 = arith.constant 0 : index
    %7 = vector.load %arg7[%c0_9, %c8_10, %c0_11] : memref<18x32x4xf32, #tpu.memory_space<vmem>>, vector<16x16x4xf32>
    %8 = vector.shape_cast %7 : vector<16x16x4xf32> to vector<256x4xf32>
    %c0_12 = arith.constant 0 : index
    %c9 = arith.constant 9 : index
    %c0_13 = arith.constant 0 : index
    %9 = vector.load %arg7[%c0_12, %c9, %c0_13] : memref<18x32x4xf32, #tpu.memory_space<vmem>>, vector<16x16x4xf32>
    %10 = vector.shape_cast %9 : vector<16x16x4xf32> to vector<256x4xf32>
    %c1_14 = arith.constant 1 : index
    %c7_15 = arith.constant 7 : index
    %c0_16 = arith.constant 0 : index
    %11 = vector.load %arg7[%c1_14, %c7_15, %c0_16] : memref<18x32x4xf32, #tpu.memory_space<vmem>>, vector<16x16x4xf32>
    %12 = vector.shape_cast %11 : vector<16x16x4xf32> to vector<256x4xf32>
    %c1_17 = arith.constant 1 : index
    %c8_18 = arith.constant 8 : index
    %c0_19 = arith.constant 0 : index
    %13 = vector.load %arg7[%c1_17, %c8_18, %c0_19] : memref<18x32x4xf32, #tpu.memory_space<vmem>>, vector<16x16x4xf32>
    %14 = vector.shape_cast %13 : vector<16x16x4xf32> to vector<256x4xf32>
    %c1_20 = arith.constant 1 : index
    %c9_21 = arith.constant 9 : index
    %c0_22 = arith.constant 0 : index
    %15 = vector.load %arg7[%c1_20, %c9_21, %c0_22] : memref<18x32x4xf32, #tpu.memory_space<vmem>>, vector<16x16x4xf32>
    %16 = vector.shape_cast %15 : vector<16x16x4xf32> to vector<256x4xf32>
    %c2 = arith.constant 2 : index
    %c7_23 = arith.constant 7 : index
    %c0_24 = arith.constant 0 : index
    %17 = vector.load %arg7[%c2, %c7_23, %c0_24] : memref<18x32x4xf32, #tpu.memory_space<vmem>>, vector<16x16x4xf32>
    %18 = vector.shape_cast %17 : vector<16x16x4xf32> to vector<256x4xf32>
    %c2_25 = arith.constant 2 : index
    %c8_26 = arith.constant 8 : index
    %c0_27 = arith.constant 0 : index
    %19 = vector.load %arg7[%c2_25, %c8_26, %c0_27] : memref<18x32x4xf32, #tpu.memory_space<vmem>>, vector<16x16x4xf32>
    %20 = vector.shape_cast %19 : vector<16x16x4xf32> to vector<256x4xf32>
    %c2_28 = arith.constant 2 : index
    %c9_29 = arith.constant 9 : index
    %c0_30 = arith.constant 0 : index
    %21 = vector.load %arg7[%c2_28, %c9_29, %c0_30] : memref<18x32x4xf32, #tpu.memory_space<vmem>>, vector<16x16x4xf32>
    %22 = vector.shape_cast %21 : vector<16x16x4xf32> to vector<256x4xf32>
    %cst_31 = arith.constant 0.000000e+00 : f32
    %23 = vector.broadcast %cst_31 : f32 to vector<256x128xf32>
    %c0_32 = arith.constant 0 : index
    %c0_33 = arith.constant 0 : index
    %24 = vector.load %arg2[%c0_32, %c0_33] : memref<36x128xf32, #tpu.memory_space<vmem>>, vector<4x128xf32>
    %cst_34 = arith.constant dense<0.000000e+00> : vector<256x128xf32>
    %25 = tpu.matmul %6, %24, %cst_34 {dimension_numbers = #tpu.dot_dimension_numbers<[1], [0], [0], [1], [0, 0, 1, 1], [], []>} : vector<256x4xf32>, vector<4x128xf32>, vector<256x128xf32> -> vector<256x128xf32>
    %26 = arith.addf %23, %25 : vector<256x128xf32>
    %c4 = arith.constant 4 : index
    %c0_35 = arith.constant 0 : index
    %27 = vector.load %arg2[%c4, %c0_35] : memref<36x128xf32, #tpu.memory_space<vmem>>, vector<4x128xf32>
    %cst_36 = arith.constant dense<0.000000e+00> : vector<256x128xf32>
    %28 = tpu.matmul %8, %27, %cst_36 {dimension_numbers = #tpu.dot_dimension_numbers<[1], [0], [0], [1], [0, 0, 1, 1], [], []>} : vector<256x4xf32>, vector<4x128xf32>, vector<256x128xf32> -> vector<256x128xf32>
    %29 = arith.addf %26, %28 : vector<256x128xf32>
    %c8_37 = arith.constant 8 : index
    %c0_38 = arith.constant 0 : index
    %30 = vector.load %arg2[%c8_37, %c0_38] : memref<36x128xf32, #tpu.memory_space<vmem>>, vector<4x128xf32>
    %cst_39 = arith.constant dense<0.000000e+00> : vector<256x128xf32>
    %31 = tpu.matmul %10, %30, %cst_39 {dimension_numbers = #tpu.dot_dimension_numbers<[1], [0], [0], [1], [0, 0, 1, 1], [], []>} : vector<256x4xf32>, vector<4x128xf32>, vector<256x128xf32> -> vector<256x128xf32>
    %32 = arith.addf %29, %31 : vector<256x128xf32>
    %c12 = arith.constant 12 : index
    %c0_40 = arith.constant 0 : index
    %33 = vector.load %arg2[%c12, %c0_40] : memref<36x128xf32, #tpu.memory_space<vmem>>, vector<4x128xf32>
    %cst_41 = arith.constant dense<0.000000e+00> : vector<256x128xf32>
    %34 = tpu.matmul %12, %33, %cst_41 {dimension_numbers = #tpu.dot_dimension_numbers<[1], [0], [0], [1], [0, 0, 1, 1], [], []>} : vector<256x4xf32>, vector<4x128xf32>, vector<256x128xf32> -> vector<256x128xf32>
    %35 = arith.addf %32, %34 : vector<256x128xf32>
    %c16 = arith.constant 16 : index
    %c0_42 = arith.constant 0 : index
    %36 = vector.load %arg2[%c16, %c0_42] : memref<36x128xf32, #tpu.memory_space<vmem>>, vector<4x128xf32>
    %cst_43 = arith.constant dense<0.000000e+00> : vector<256x128xf32>
    %37 = tpu.matmul %14, %36, %cst_43 {dimension_numbers = #tpu.dot_dimension_numbers<[1], [0], [0], [1], [0, 0, 1, 1], [], []>} : vector<256x4xf32>, vector<4x128xf32>, vector<256x128xf32> -> vector<256x128xf32>
    %38 = arith.addf %35, %37 : vector<256x128xf32>
    %c20 = arith.constant 20 : index
    %c0_44 = arith.constant 0 : index
    %39 = vector.load %arg2[%c20, %c0_44] : memref<36x128xf32, #tpu.memory_space<vmem>>, vector<4x128xf32>
    %cst_45 = arith.constant dense<0.000000e+00> : vector<256x128xf32>
    %40 = tpu.matmul %16, %39, %cst_45 {dimension_numbers = #tpu.dot_dimension_numbers<[1], [0], [0], [1], [0, 0, 1, 1], [], []>} : vector<256x4xf32>, vector<4x128xf32>, vector<256x128xf32> -> vector<256x128xf32>
    %41 = arith.addf %38, %40 : vector<256x128xf32>
    %c24 = arith.constant 24 : index
    %c0_46 = arith.constant 0 : index
    %42 = vector.load %arg2[%c24, %c0_46] : memref<36x128xf32, #tpu.memory_space<vmem>>, vector<4x128xf32>
    %cst_47 = arith.constant dense<0.000000e+00> : vector<256x128xf32>
    %43 = tpu.matmul %18, %42, %cst_47 {dimension_numbers = #tpu.dot_dimension_numbers<[1], [0], [0], [1], [0, 0, 1, 1], [], []>} : vector<256x4xf32>, vector<4x128xf32>, vector<256x128xf32> -> vector<256x128xf32>
    %44 = arith.addf %41, %43 : vector<256x128xf32>
    %c28 = arith.constant 28 : index
    %c0_48 = arith.constant 0 : index
    %45 = vector.load %arg2[%c28, %c0_48] : memref<36x128xf32, #tpu.memory_space<vmem>>, vector<4x128xf32>
    %cst_49 = arith.constant dense<0.000000e+00> : vector<256x128xf32>
    %46 = tpu.matmul %20, %45, %cst_49 {dimension_numbers = #tpu.dot_dimension_numbers<[1], [0], [0], [1], [0, 0, 1, 1], [], []>} : vector<256x4xf32>, vector<4x128xf32>, vector<256x128xf32> -> vector<256x128xf32>
    %47 = arith.addf %44, %46 : vector<256x128xf32>
    %c32 = arith.constant 32 : index
    %c0_50 = arith.constant 0 : index
    %48 = vector.load %arg2[%c32, %c0_50] : memref<36x128xf32, #tpu.memory_space<vmem>>, vector<4x128xf32>
    %cst_51 = arith.constant dense<0.000000e+00> : vector<256x128xf32>
    %49 = tpu.matmul %22, %48, %cst_51 {dimension_numbers = #tpu.dot_dimension_numbers<[1], [0], [0], [1], [0, 0, 1, 1], [], []>} : vector<256x4xf32>, vector<4x128xf32>, vector<256x128xf32> -> vector<256x128xf32>
    %50 = arith.addf %47, %49 : vector<256x128xf32>
    %c0_52 = arith.constant 0 : index
    %c0_53 = arith.constant 0 : index
    %c0_54 = arith.constant 0 : index
    %51 = vector.load %arg5[%c0_52, %c0_53, %c0_54] : memref<1x256x128xf32, #tpu.memory_space<vmem>>, vector<1x256x128xf32>
    %52 = vector.shape_cast %51 : vector<1x256x128xf32> to vector<256x128xf32>
    %53 = vector.shape_cast %50 : vector<256x128xf32> to vector<1x256x128xf32>
    tpu.vector_store %arg5[%c0_52, %c0_53, %c0_54], %53 {strides = array<i32>} : memref<1x256x128xf32, #tpu.memory_space<vmem>>, vector<1x256x128xf32>,
    %cst_55 = arith.constant dense<0.000000e+00> : vector<128xf32>
    %54 = vector.multi_reduction <add>, %50, %cst_55 [0] : vector<256x128xf32> to vector<128xf32>
    %55 = vector.shape_cast %54 : vector<128xf32> to vector<1x128xf32>
    %56 = arith.mulf %50, %50 : vector<256x128xf32>
    %cst_56 = arith.constant dense<0.000000e+00> : vector<128xf32>
    %57 = vector.multi_reduction <add>, %56, %cst_56 [0] : vector<256x128xf32> to vector<128xf32>
    %58 = vector.shape_cast %57 : vector<128xf32> to vector<1x128xf32>
    %59 = tpu.iota {dimensions = array<i32: 0>} : vector<8x128xi32>
    %c0_i32 = arith.constant 0 : i32
    %60 = vector.broadcast %c0_i32 : i32 to vector<8x128xi32>
    %61 = arith.cmpi eq, %59, %60 : vector<8x128xi32>
    %c1_i32 = arith.constant 1 : i32
    %62 = vector.broadcast %c1_i32 : i32 to vector<8x128xi32>
    %63 = arith.cmpi eq, %59, %62 : vector<8x128xi32>
    %cst_57 = arith.constant 0.000000e+00 : f32
    %64 = vector.shape_cast %58 : vector<1x128xf32> to vector<1x128xf32>
    %65 = vector.broadcast %64 : vector<1x128xf32> to vector<8x128xf32>
    %66 = vector.broadcast %cst_57 : f32 to vector<8x128xf32>
    %67 = arith.select %63, %65, %66 : vector<8x128xi1>, vector<8x128xf32>
    %68 = vector.shape_cast %55 : vector<1x128xf32> to vector<1x128xf32>
    %69 = vector.broadcast %68 : vector<1x128xf32> to vector<8x128xf32>
    %70 = arith.select %61, %69, %67 : vector<8x128xi1>, vector<8x128xf32>
    %c0_58 = arith.constant 0 : index
    %c0_59 = arith.constant 0 : index
    %c0_60 = arith.constant 0 : index
    %71 = vector.load %arg6[%c0_58, %c0_59, %c0_60] : memref<1x8x128xf32, #tpu.memory_space<vmem>>, vector<1x8x128xf32>
    %72 = vector.shape_cast %71 : vector<1x8x128xf32> to vector<8x128xf32>
    %73 = vector.shape_cast %70 : vector<8x128xf32> to vector<1x8x128xf32>
    tpu.vector_store %arg6[%c0_58, %c0_59, %c0_60], %73 {strides = array<i32>} : memref<1x8x128xf32, #tpu.memory_space<vmem>>, vector<1x8x128xf32>,
    return
  }
  func.func @transform_0(%arg0: i32) -> (i32, i32, i32, i32) {
    %c0_i32 = arith.constant 0 : i32
    %c0_i32_0 = arith.constant 0 : i32
    %c0_i32_1 = arith.constant 0 : i32
    %c0_i32_2 = arith.constant 0 : i32
    return %arg0, %c0_i32, %c0_i32_0, %c0_i32_1 : i32, i32, i32, i32
  }
  func.func @transform_1(%arg0: i32) -> (i32, i32) {
    %c0_i32 = arith.constant 0 : i32
    %c0_i32_0 = arith.constant 0 : i32
    %c0_i32_1 = arith.constant 0 : i32
    return %c0_i32, %c0_i32_0 : i32, i32
  }
  func.func @transform_2(%arg0: i32) -> (i32, i32) {
    %c0_i32 = arith.constant 0 : i32
    %c0_i32_0 = arith.constant 0 : i32
    %c0_i32_1 = arith.constant 0 : i32
    return %c0_i32, %c0_i32_0 : i32, i32
  }
  func.func @transform_3(%arg0: i32) -> (i32, i32) {
    %c0_i32 = arith.constant 0 : i32
    %c0_i32_0 = arith.constant 0 : i32
    %c0_i32_1 = arith.constant 0 : i32
    return %c0_i32, %c0_i32_0 : i32, i32
  }
  func.func @transform_4(%arg0: i32) -> (i32, i32, i32) {
    %c0_i32 = arith.constant 0 : i32
    %c0_i32_0 = arith.constant 0 : i32
    %c0_i32_1 = arith.constant 0 : i32
    return %arg0, %c0_i32, %c0_i32_0 : i32, i32, i32
  }
  func.func @transform_5(%arg0: i32) -> (i32, i32, i32) {
    %c0_i32 = arith.constant 0 : i32
    %c0_i32_0 = arith.constant 0 : i32
    %c0_i32_1 = arith.constant 0 : i32
    return %arg0, %c0_i32, %c0_i32_0 : i32, i32, i32
  }
}

module attributes {stable_mosaic.version = 11 : i64} {
  func.func @conv_stats_kernel(%arg0: i32, %arg1: memref<1x256x128xf32, #tpu.memory_space<vmem>>, %arg2: memref<1152x128xf32, #tpu.memory_space<vmem>>, %arg3: memref<1x128xf32, #tpu.memory_space<vmem>>, %arg4: memref<1x128xf32, #tpu.memory_space<vmem>>, %arg5: memref<1x256x128xf32, #tpu.memory_space<vmem>>, %arg6: memref<1x8x128xf32, #tpu.memory_space<vmem>>, %arg7: memref<18x32x128xf32, #tpu.memory_space<vmem>>) attributes {dimension_semantics = [#tpu.dimension_semantics<parallel>], iteration_bounds = array<i64: 2>, scalar_prefetch = 0 : i64, scratch_operands = 1 : i64, tpu.core_type = #tpu.core_type<tc>, window_params = [{transform_indices = @transform_0, window_bounds = array<i64: 1, 256, 128>}, {pipeline_mode = #tpu.pipeline_mode<synchronous>, transform_indices = @transform_1, window_bounds = array<i64: 1152, 128>}, {pipeline_mode = #tpu.pipeline_mode<synchronous>, transform_indices = @transform_2, window_bounds = array<i64: 1, 128>}, {pipeline_mode = #tpu.pipeline_mode<synchronous>, transform_indices = @transform_3, window_bounds = array<i64: 1, 128>}, {transform_indices = @transform_4, window_bounds = array<i64: 1, 256, 128>}, {transform_indices = @transform_5, window_bounds = array<i64: 1, 8, 128>}]} {
    %c0 = arith.constant 0 : index
    %c0_0 = arith.constant 0 : index
    %c0_1 = arith.constant 0 : index
    %0 = vector.load %arg1[%c0, %c0_0, %c0_1] : memref<1x256x128xf32, #tpu.memory_space<vmem>>, vector<1x256x128xf32>
    %1 = vector.shape_cast %0 : vector<1x256x128xf32> to vector<256x128xf32>
    %2 = vector.shape_cast %1 : vector<256x128xf32> to vector<16x16x128xf32>
    %c0_2 = arith.constant 0 : index
    %c0_3 = arith.constant 0 : index
    %3 = vector.load %arg3[%c0_2, %c0_3] : memref<1x128xf32, #tpu.memory_space<vmem>>, vector<1x128xf32>
    %4 = vector.shape_cast %3 : vector<1x128xf32> to vector<1x1x128xf32>
    %5 = vector.broadcast %4 : vector<1x1x128xf32> to vector<16x16x128xf32>
    %6 = arith.mulf %2, %5 : vector<16x16x128xf32>
    %c0_4 = arith.constant 0 : index
    %c0_5 = arith.constant 0 : index
    %7 = vector.load %arg4[%c0_4, %c0_5] : memref<1x128xf32, #tpu.memory_space<vmem>>, vector<1x128xf32>
    %8 = vector.shape_cast %7 : vector<1x128xf32> to vector<1x1x128xf32>
    %9 = vector.broadcast %8 : vector<1x1x128xf32> to vector<16x16x128xf32>
    %10 = arith.addf %6, %9 : vector<16x16x128xf32>
    %cst = arith.constant 0.000000e+00 : f32
    %11 = vector.broadcast %cst : f32 to vector<16x16x128xf32>
    %12 = arith.maximumf %10, %11 : vector<16x16x128xf32>
    %cst_6 = arith.constant 0.000000e+00 : f32
    %13 = vector.broadcast %cst_6 : f32 to vector<18x32x128xf32>
    %c0_7 = arith.constant 0 : index
    %c0_8 = arith.constant 0 : index
    %c0_9 = arith.constant 0 : index
    %14 = vector.load %arg7[%c0_7, %c0_8, %c0_9] : memref<18x32x128xf32, #tpu.memory_space<vmem>>, vector<18x32x128xf32>
    tpu.vector_store %arg7[%c0_7, %c0_8, %c0_9], %13 {strides = array<i32>} : memref<18x32x128xf32, #tpu.memory_space<vmem>>, vector<18x32x128xf32>,
    %c1 = arith.constant 1 : index
    %c8 = arith.constant 8 : index
    %c0_10 = arith.constant 0 : index
    %15 = vector.load %arg7[%c1, %c8, %c0_10] : memref<18x32x128xf32, #tpu.memory_space<vmem>>, vector<16x16x128xf32>
    tpu.vector_store %arg7[%c1, %c8, %c0_10], %12 {strides = array<i32>} : memref<18x32x128xf32, #tpu.memory_space<vmem>>, vector<16x16x128xf32>,
    %c0_11 = arith.constant 0 : index
    %c7 = arith.constant 7 : index
    %c0_12 = arith.constant 0 : index
    %16 = vector.load %arg7[%c0_11, %c7, %c0_12] : memref<18x32x128xf32, #tpu.memory_space<vmem>>, vector<16x16x128xf32>
    %17 = vector.shape_cast %16 : vector<16x16x128xf32> to vector<256x128xf32>
    %c0_13 = arith.constant 0 : index
    %c8_14 = arith.constant 8 : index
    %c0_15 = arith.constant 0 : index
    %18 = vector.load %arg7[%c0_13, %c8_14, %c0_15] : memref<18x32x128xf32, #tpu.memory_space<vmem>>, vector<16x16x128xf32>
    %19 = vector.shape_cast %18 : vector<16x16x128xf32> to vector<256x128xf32>
    %c0_16 = arith.constant 0 : index
    %c9 = arith.constant 9 : index
    %c0_17 = arith.constant 0 : index
    %20 = vector.load %arg7[%c0_16, %c9, %c0_17] : memref<18x32x128xf32, #tpu.memory_space<vmem>>, vector<16x16x128xf32>
    %21 = vector.shape_cast %20 : vector<16x16x128xf32> to vector<256x128xf32>
    %c1_18 = arith.constant 1 : index
    %c7_19 = arith.constant 7 : index
    %c0_20 = arith.constant 0 : index
    %22 = vector.load %arg7[%c1_18, %c7_19, %c0_20] : memref<18x32x128xf32, #tpu.memory_space<vmem>>, vector<16x16x128xf32>
    %23 = vector.shape_cast %22 : vector<16x16x128xf32> to vector<256x128xf32>
    %c1_21 = arith.constant 1 : index
    %c8_22 = arith.constant 8 : index
    %c0_23 = arith.constant 0 : index
    %24 = vector.load %arg7[%c1_21, %c8_22, %c0_23] : memref<18x32x128xf32, #tpu.memory_space<vmem>>, vector<16x16x128xf32>
    %25 = vector.shape_cast %24 : vector<16x16x128xf32> to vector<256x128xf32>
    %c1_24 = arith.constant 1 : index
    %c9_25 = arith.constant 9 : index
    %c0_26 = arith.constant 0 : index
    %26 = vector.load %arg7[%c1_24, %c9_25, %c0_26] : memref<18x32x128xf32, #tpu.memory_space<vmem>>, vector<16x16x128xf32>
    %27 = vector.shape_cast %26 : vector<16x16x128xf32> to vector<256x128xf32>
    %c2 = arith.constant 2 : index
    %c7_27 = arith.constant 7 : index
    %c0_28 = arith.constant 0 : index
    %28 = vector.load %arg7[%c2, %c7_27, %c0_28] : memref<18x32x128xf32, #tpu.memory_space<vmem>>, vector<16x16x128xf32>
    %29 = vector.shape_cast %28 : vector<16x16x128xf32> to vector<256x128xf32>
    %c2_29 = arith.constant 2 : index
    %c8_30 = arith.constant 8 : index
    %c0_31 = arith.constant 0 : index
    %30 = vector.load %arg7[%c2_29, %c8_30, %c0_31] : memref<18x32x128xf32, #tpu.memory_space<vmem>>, vector<16x16x128xf32>
    %31 = vector.shape_cast %30 : vector<16x16x128xf32> to vector<256x128xf32>
    %c2_32 = arith.constant 2 : index
    %c9_33 = arith.constant 9 : index
    %c0_34 = arith.constant 0 : index
    %32 = vector.load %arg7[%c2_32, %c9_33, %c0_34] : memref<18x32x128xf32, #tpu.memory_space<vmem>>, vector<16x16x128xf32>
    %33 = vector.shape_cast %32 : vector<16x16x128xf32> to vector<256x128xf32>
    %34 = tpu.concatenate %17, %19, %21, %23, %25, %27, %29, %31, %33 in 1 : vector<256x128xf32>, vector<256x128xf32>, vector<256x128xf32>, vector<256x128xf32>, vector<256x128xf32>, vector<256x128xf32>, vector<256x128xf32>, vector<256x128xf32>, vector<256x128xf32> -> vector<256x1152xf32>
    %c0_35 = arith.constant 0 : index
    %c0_36 = arith.constant 0 : index
    %35 = vector.load %arg2[%c0_35, %c0_36] : memref<1152x128xf32, #tpu.memory_space<vmem>>, vector<1152x128xf32>
    %cst_37 = arith.constant dense<0.000000e+00> : vector<256x128xf32>
    %36 = tpu.matmul %34, %35, %cst_37 {dimension_numbers = #tpu.dot_dimension_numbers<[1], [0], [0], [1], [0, 0, 1, 1], [], []>} : vector<256x1152xf32>, vector<1152x128xf32>, vector<256x128xf32> -> vector<256x128xf32>
    %c0_38 = arith.constant 0 : index
    %c0_39 = arith.constant 0 : index
    %c0_40 = arith.constant 0 : index
    %37 = vector.load %arg5[%c0_38, %c0_39, %c0_40] : memref<1x256x128xf32, #tpu.memory_space<vmem>>, vector<1x256x128xf32>
    %38 = vector.shape_cast %37 : vector<1x256x128xf32> to vector<256x128xf32>
    %39 = vector.shape_cast %36 : vector<256x128xf32> to vector<1x256x128xf32>
    tpu.vector_store %arg5[%c0_38, %c0_39, %c0_40], %39 {strides = array<i32>} : memref<1x256x128xf32, #tpu.memory_space<vmem>>, vector<1x256x128xf32>,
    %cst_41 = arith.constant dense<0.000000e+00> : vector<128xf32>
    %40 = vector.multi_reduction <add>, %36, %cst_41 [0] : vector<256x128xf32> to vector<128xf32>
    %41 = vector.shape_cast %40 : vector<128xf32> to vector<1x128xf32>
    %42 = arith.mulf %36, %36 : vector<256x128xf32>
    %cst_42 = arith.constant dense<0.000000e+00> : vector<128xf32>
    %43 = vector.multi_reduction <add>, %42, %cst_42 [0] : vector<256x128xf32> to vector<128xf32>
    %44 = vector.shape_cast %43 : vector<128xf32> to vector<1x128xf32>
    %45 = tpu.iota {dimensions = array<i32: 0>} : vector<8x128xi32>
    %c0_i32 = arith.constant 0 : i32
    %46 = vector.broadcast %c0_i32 : i32 to vector<8x128xi32>
    %47 = arith.cmpi eq, %45, %46 : vector<8x128xi32>
    %c1_i32 = arith.constant 1 : i32
    %48 = vector.broadcast %c1_i32 : i32 to vector<8x128xi32>
    %49 = arith.cmpi eq, %45, %48 : vector<8x128xi32>
    %cst_43 = arith.constant 0.000000e+00 : f32
    %50 = vector.shape_cast %44 : vector<1x128xf32> to vector<1x128xf32>
    %51 = vector.broadcast %50 : vector<1x128xf32> to vector<8x128xf32>
    %52 = vector.broadcast %cst_43 : f32 to vector<8x128xf32>
    %53 = arith.select %49, %51, %52 : vector<8x128xi1>, vector<8x128xf32>
    %54 = vector.shape_cast %41 : vector<1x128xf32> to vector<1x128xf32>
    %55 = vector.broadcast %54 : vector<1x128xf32> to vector<8x128xf32>
    %56 = arith.select %47, %55, %53 : vector<8x128xi1>, vector<8x128xf32>
    %c0_44 = arith.constant 0 : index
    %c0_45 = arith.constant 0 : index
    %c0_46 = arith.constant 0 : index
    %57 = vector.load %arg6[%c0_44, %c0_45, %c0_46] : memref<1x8x128xf32, #tpu.memory_space<vmem>>, vector<1x8x128xf32>
    %58 = vector.shape_cast %57 : vector<1x8x128xf32> to vector<8x128xf32>
    %59 = vector.shape_cast %56 : vector<8x128xf32> to vector<1x8x128xf32>
    tpu.vector_store %arg6[%c0_44, %c0_45, %c0_46], %59 {strides = array<i32>} : memref<1x8x128xf32, #tpu.memory_space<vmem>>, vector<1x8x128xf32>,
    return
  }
  func.func @transform_0(%arg0: i32) -> (i32, i32, i32) {
    %c0_i32 = arith.constant 0 : i32
    %c0_i32_0 = arith.constant 0 : i32
    %c0_i32_1 = arith.constant 0 : i32
    return %arg0, %c0_i32, %c0_i32_0 : i32, i32, i32
  }
  func.func @transform_1(%arg0: i32) -> (i32, i32) {
    %c0_i32 = arith.constant 0 : i32
    %c0_i32_0 = arith.constant 0 : i32
    %c0_i32_1 = arith.constant 0 : i32
    return %c0_i32, %c0_i32_0 : i32, i32
  }
  func.func @transform_2(%arg0: i32) -> (i32, i32) {
    %c0_i32 = arith.constant 0 : i32
    %c0_i32_0 = arith.constant 0 : i32
    %c0_i32_1 = arith.constant 0 : i32
    return %c0_i32, %c0_i32_0 : i32, i32
  }
  func.func @transform_3(%arg0: i32) -> (i32, i32) {
    %c0_i32 = arith.constant 0 : i32
    %c0_i32_0 = arith.constant 0 : i32
    %c0_i32_1 = arith.constant 0 : i32
    return %c0_i32, %c0_i32_0 : i32, i32
  }
  func.func @transform_4(%arg0: i32) -> (i32, i32, i32) {
    %c0_i32 = arith.constant 0 : i32
    %c0_i32_0 = arith.constant 0 : i32
    %c0_i32_1 = arith.constant 0 : i32
    return %arg0, %c0_i32, %c0_i32_0 : i32, i32, i32
  }
  func.func @transform_5(%arg0: i32) -> (i32, i32, i32) {
    %c0_i32 = arith.constant 0 : i32
    %c0_i32_0 = arith.constant 0 : i32
    %c0_i32_1 = arith.constant 0 : i32
    return %arg0, %c0_i32, %c0_i32_0 : i32, i32, i32
  }
}

module attributes {stable_mosaic.version = 11 : i64} {
  func.func @bn_relu_kernel(%arg0: i32, %arg1: memref<1x256x128xf32, #tpu.memory_space<vmem>>, %arg2: memref<1x128xf32, #tpu.memory_space<vmem>>, %arg3: memref<1x128xf32, #tpu.memory_space<vmem>>, %arg4: memref<1x256x128xf32, #tpu.memory_space<vmem>>) attributes {dimension_semantics = [#tpu.dimension_semantics<parallel>], iteration_bounds = array<i64: 2>, scalar_prefetch = 0 : i64, scratch_operands = 0 : i64, tpu.core_type = #tpu.core_type<tc>, window_params = [{transform_indices = @transform_0, window_bounds = array<i64: 1, 256, 128>}, {pipeline_mode = #tpu.pipeline_mode<synchronous>, transform_indices = @transform_1, window_bounds = array<i64: 1, 128>}, {pipeline_mode = #tpu.pipeline_mode<synchronous>, transform_indices = @transform_2, window_bounds = array<i64: 1, 128>}, {transform_indices = @transform_3, window_bounds = array<i64: 1, 256, 128>}]} {
    %c0 = arith.constant 0 : index
    %c0_0 = arith.constant 0 : index
    %c0_1 = arith.constant 0 : index
    %0 = vector.load %arg1[%c0, %c0_0, %c0_1] : memref<1x256x128xf32, #tpu.memory_space<vmem>>, vector<1x256x128xf32>
    %c0_2 = arith.constant 0 : index
    %c0_3 = arith.constant 0 : index
    %1 = vector.load %arg2[%c0_2, %c0_3] : memref<1x128xf32, #tpu.memory_space<vmem>>, vector<1x128xf32>
    %2 = vector.shape_cast %1 : vector<1x128xf32> to vector<1x1x128xf32>
    %3 = vector.broadcast %2 : vector<1x1x128xf32> to vector<1x256x128xf32>
    %4 = arith.mulf %0, %3 : vector<1x256x128xf32>
    %c0_4 = arith.constant 0 : index
    %c0_5 = arith.constant 0 : index
    %5 = vector.load %arg3[%c0_4, %c0_5] : memref<1x128xf32, #tpu.memory_space<vmem>>, vector<1x128xf32>
    %6 = vector.shape_cast %5 : vector<1x128xf32> to vector<1x1x128xf32>
    %7 = vector.broadcast %6 : vector<1x1x128xf32> to vector<1x256x128xf32>
    %8 = arith.addf %4, %7 : vector<1x256x128xf32>
    %cst = arith.constant 0.000000e+00 : f32
    %9 = vector.broadcast %cst : f32 to vector<1x256x128xf32>
    %10 = arith.maximumf %8, %9 : vector<1x256x128xf32>
    %c0_6 = arith.constant 0 : index
    %c0_7 = arith.constant 0 : index
    %c0_8 = arith.constant 0 : index
    %11 = vector.load %arg4[%c0_6, %c0_7, %c0_8] : memref<1x256x128xf32, #tpu.memory_space<vmem>>, vector<1x256x128xf32>
    tpu.vector_store %arg4[%c0_6, %c0_7, %c0_8], %10 {strides = array<i32>} : memref<1x256x128xf32, #tpu.memory_space<vmem>>, vector<1x256x128xf32>,
    return
  }
  func.func @transform_0(%arg0: i32) -> (i32, i32, i32) {
    %c0_i32 = arith.constant 0 : i32
    %c0_i32_0 = arith.constant 0 : i32
    %c0_i32_1 = arith.constant 0 : i32
    return %arg0, %c0_i32, %c0_i32_0 : i32, i32, i32
  }
  func.func @transform_1(%arg0: i32) -> (i32, i32) {
    %c0_i32 = arith.constant 0 : i32
    %c0_i32_0 = arith.constant 0 : i32
    %c0_i32_1 = arith.constant 0 : i32
    return %c0_i32, %c0_i32_0 : i32, i32
  }
  func.func @transform_2(%arg0: i32) -> (i32, i32) {
    %c0_i32 = arith.constant 0 : i32
    %c0_i32_0 = arith.constant 0 : i32
    %c0_i32_1 = arith.constant 0 : i32
    return %c0_i32, %c0_i32_0 : i32, i32
  }
  func.func @transform_3(%arg0: i32) -> (i32, i32, i32) {
    %c0_i32 = arith.constant 0 : i32
    %c0_i32_0 = arith.constant 0 : i32
    %c0_i32_1 = arith.constant 0 : i32
    return %arg0, %c0_i32, %c0_i32_0 : i32, i32, i32
  }
}

</mosaic_0001>

<bundles_post_ra>
// kernel: conv_block_forward.5
= control target key start
LH: loop header
LB: loop body
LE: loop exit
PB: predicated region body
PF: predicated region fallthrough
CT: control target
= control target key end

     0   :  { %s451_s12 = smov 0   ;;  %s610_s0 = inlined_call_operand.vmem [shape: f32[2,256,128], index: 0, kind: input, shape index: {}]   ;;  %s611_s1 = inlined_call_operand.vmem [shape: f32[1,128], index: 1, kind: input, shape index: {}]   ;;  %s612_s2 = inlined_call_operand.vmem [shape: f32[1,128], index: 2, kind: input, shape index: {}]   ;;  %s613_s3 = inlined_call_operand.vmem [shape: f32[2,256,128], index: 3, kind: output, shape index: {}]  }
   0x1 LB: > { %s400_s13 = sadd.s32 4294967295, %s429_s12   ;;  %p404_p0 = scmp.ge.s32.totalorder %s429_s12, 1  ;;  %s429_s12 = sphi %s451_s12, %s13_s12  }
   0x2   : > { %p137_p1 = scmp.lt.s32.totalorder %s429_s12, 3 }
   0x4   : > { %p138_p2 = pnand %p404_p0, %p137_p1 }
   0x5   : > { %p161_p3 = scmp.lt.s32.totalorder (!%p138_p2), %s400_s13, 1 }
   0x6   : > { %141 = sbr.rel (%p138_p2) target bundleno = 44 (0x2c), region = 32 }
   0xb   : > { %s615_s13 = smov (!%p161_p3, %s400_s13), 1  ;;  %v462_v0 = vld [vmem:[%s611_s1] ss:$0 sm:$0xff] }
   0xc   : > { %s413_s14 = sshll.u32 %s615_s13, 8  ;;  %v472_v1 = vld [vmem:[%s612_s2] ss:$0 sm:$0xff] }
   0xd   : > { %s467_s19 = scalar_lea.vmem %s610_s0, %s413_s14  ;;  %s495_s24 = scalar_lea.vmem %s613_s3, %s413_s14 }
   0xe   : > { %v171_v2 = vld [vmem:[%s467_s19] sm:$0xff]  ;;  %v172_v3 = vld [vmem:[%s467_s19 + $0x8] sm:$0xff]  ;;  %v173_v4 = vld [vmem:[%s467_s19 + $0x10] sm:$0xff] }
   0xf   : > { %v210_v5 = vmul.f32 %v462_v0, %v171_v2  ;;  %v211_v6 = vmul.f32 %v462_v0, %v172_v3  ;;  %v212_v7 = vmul.f32 %v462_v0, %v173_v4  ;;  %v174_v8 = vld [vmem:[%s467_s19 + $0x18] sm:$0xff]  ;;  %v175_v9 = vld [vmem:[%s467_s19 + $0x20] sm:$0xff]  ;;  %v176_v10 = vld [vmem:[%s467_s19 + $0x28] sm:$0xff] }
  0x10   : > { %v213_v11 = vmul.f32 %v462_v0, %v174_v8  ;;  %v214_v12 = vmul.f32 %v462_v0, %v175_v9  ;;  %v215_v13 = vmul.f32 %v462_v0, %v176_v10  ;;  %v177_v14 = vld [vmem:[%s467_s19 + $0x30] sm:$0xff]  ;;  %v178_v15 = vld [vmem:[%s467_s19 + $0x38] sm:$0xff]  ;;  %v179_v24 = vld [vmem:[%s467_s19 + $0x40] sm:$0xff] }
  0x11   : > { %v249_v16 = vadd.f32 %v472_v1, %v210_v5  ;;  %v250_v17 = vadd.f32 %v472_v1, %v211_v6  ;;  %v251_v18 = vadd.f32 %v472_v1, %v212_v7  ;;  %v216_v19 = vmul.f32 %v462_v0, %v177_v14  ;;  %v180_v25 = vld [vmem:[%s467_s19 + $0x48] sm:$0xff]  ;;  %v181_v26 = vld [vmem:[%s467_s19 + $0x50] sm:$0xff]  ;;  %v182_v31 = vld [vmem:[%s467_s19 + $0x58] sm:$0xff] }
  0x12   : > { %v252_v20 = vadd.f32 %v472_v1, %v213_v11  ;;  %v253_v21 = vadd.f32 %v472_v1, %v214_v12  ;;  %v254_v22 = vadd.f32 %v472_v1, %v215_v13  ;;  %v217_v23 = vmul.f32 %v462_v0, %v178_v15  ;;  %v183_v32 = vld [vmem:[%s467_s19 + $0x60] sm:$0xff]  ;;  %v184_v33 = vld [vmem:[%s467_s19 + $0x68] sm:$0xff]  ;;  %v185_v38 = vld [vmem:[%s467_s19 + $0x70] sm:$0xff] }
  0x13   : > { %v281_v27 = vmax.f32 %v249_v16, 0.0  ;;  %v282_v28 = vmax.f32 %v250_v17, 0.0  ;;  %v283_v29 = vmax.f32 %v251_v18, 0.0  ;;  %v255_v30 = vadd.f32 %v472_v1, %v216_v19  ;;  %v186_v43 = vld [vmem:[%s467_s19 + $0x78] sm:$0xff]  ;;  %v187_v56 = vld [vmem:[%s467_s19 + $0x80] sm:$0xff]  ;;  %v188_v57 = vld [vmem:[%s467_s19 + $0x88] sm:$0xff] }
  0x14   : > { %v284_v34 = vmax.f32 %v252_v20, 0.0  ;;  %v285_v35 = vmax.f32 %v253_v21, 0.0  ;;  %v286_v36 = vmax.f32 %v254_v22, 0.0  ;;  %v256_v37 = vadd.f32 %v472_v1, %v217_v23  ;;  %v189_v58 = vld [vmem:[%s467_s19 + $0x90] sm:$0xff]  ;;  %v190_v63 = vld [vmem:[%s467_s19 + $0x98] sm:$0xff]  ;;  %v191_v2 = vld [vmem:[%s467_s19 + $0xa0] sm:$0xff] }
  0x15   : > { %313 = vst [vmem:[%s495_s24] sm:$0xff] %v281_v27  ;;  %314 = vst [vmem:[%s495_s24 + $0x8] sm:$0xff] %v282_v28  ;;  %v287_v39 = vmax.f32 %v255_v30, 0.0  ;;  %v218_v40 = vmul.f32 %v462_v0, %v179_v24  ;;  %v219_v41 = vmul.f32 %v462_v0, %v180_v25  ;;  %v220_v42 = vmul.f32 %v462_v0, %v181_v26  ;;  %v192_v3 = vld [vmem:[%s467_s19 + $0xa8] sm:$0xff]  ;;  %v193_v8 = vld [vmem:[%s467_s19 + $0xb0] sm:$0xff] }
  0x16   : > { %315 = vst [vmem:[%s495_s24 + $0x10] sm:$0xff] %v283_v29  ;;  %316 = vst [vmem:[%s495_s24 + $0x18] sm:$0xff] %v284_v34  ;;  %v288_v44 = vmax.f32 %v256_v37, 0.0  ;;  %v221_v45 = vmul.f32 %v462_v0, %v182_v31  ;;  %v222_v46 = vmul.f32 %v462_v0, %v183_v32  ;;  %v223_v47 = vmul.f32 %v462_v0, %v184_v33  ;;  %v194_v13 = vld [vmem:[%s467_s19 + $0xb8] sm:$0xff]  ;;  %v195_v26 = vld [vmem:[%s467_s19 + $0xc0] sm:$0xff] }
  0x17   : > { %317 = vst [vmem:[%s495_s24 + $0x20] sm:$0xff] %v285_v35  ;;  %318 = vst [vmem:[%s495_s24 + $0x28] sm:$0xff] %v286_v36  ;;  %v257_v48 = vadd.f32 %v472_v1, %v218_v40  ;;  %v258_v49 = vadd.f32 %v472_v1, %v219_v41  ;;  %v259_v50 = vadd.f32 %v472_v1, %v220_v42  ;;  %v196_v27 = vld [vmem:[%s467_s19 + $0xc8] sm:$0xff]  ;;  %v197_v28 = vld [vmem:[%s467_s19 + $0xd0] sm:$0xff] }
  0x18   : > { %319 = vst [vmem:[%s495_s24 + $0x30] sm:$0xff] %v287_v39  ;;  %v224_v51 = vmul.f32 %v462_v0, %v185_v38  ;;  %320 = vst [vmem:[%s495_s24 + $0x38] sm:$0xff] %v288_v44  ;;  %v260_v52 = vadd.f32 %v472_v1, %v221_v45  ;;  %v261_v53 = vadd.f32 %v472_v1, %v222_v46  ;;  %v198_v33 = vld [vmem:[%s467_s19 + $0xd8] sm:$0xff]  ;;  %v199_v34 = vld [vmem:[%s467_s19 + $0xe0] sm:$0xff] }
  0x19   : > { %v262_v54 = vadd.f32 %v472_v1, %v223_v47  ;;  %v225_v55 = vmul.f32 %v462_v0, %v186_v43  ;;  %v289_v59 = vmax.f32 %v257_v48, 0.0  ;;  %v290_v60 = vmax.f32 %v258_v49, 0.0  ;;  %v200_v35 = vld [vmem:[%s467_s19 + $0xe8] sm:$0xff]  ;;  %v201_v40 = vld [vmem:[%s467_s19 + $0xf0] sm:$0xff]  ;;  %v202_v45 = vld [vmem:[%s467_s19 + $0xf8] sm:$0xff] }
  0x1a   : > { %v291_v61 = vmax.f32 %v259_v50, 0.0  ;;  %v263_v62 = vadd.f32 %v472_v1, %v224_v51  ;;  %v292_v4 = vmax.f32 %v260_v52, 0.0  ;;  %v293_v5 = vmax.f32 %v261_v53, 0.0 }
  0x1b   : > { %v294_v6 = vmax.f32 %v262_v54, 0.0  ;;  %v264_v7 = vadd.f32 %v472_v1, %v225_v55  ;;  %321 = vst [vmem:[%s495_s24 + $0x40] sm:$0xff] %v289_v59  ;;  %322 = vst [vmem:[%s495_s24 + $0x48] sm:$0xff] %v290_v60  ;;  %v226_v10 = vmul.f32 %v462_v0, %v187_v56  ;;  %v227_v11 = vmul.f32 %v462_v0, %v188_v57 }
  0x1c   : > { %323 = vst [vmem:[%s495_s24 + $0x50] sm:$0xff] %v291_v61  ;;  %v295_v9 = vmax.f32 %v263_v62, 0.0  ;;  %v228_v12 = vmul.f32 %v462_v0, %v189_v58  ;;  %324 = vst [vmem:[%s495_s24 + $0x58] sm:$0xff] %v292_v4  ;;  %v229_v15 = vmul.f32 %v462_v0, %v190_v63  ;;  %v230_v16 = vmul.f32 %v462_v0, %v191_v2 }
  0x1d   : > { %325 = vst [vmem:[%s495_s24 + $0x60] sm:$0xff] %v293_v5  ;;  %326 = vst [vmem:[%s495_s24 + $0x68] sm:$0xff] %v294_v6  ;;  %v296_v14 = vmax.f32 %v264_v7, 0.0  ;;  %v231_v17 = vmul.f32 %v462_v0, %v192_v3  ;;  %v265_v18 = vadd.f32 %v472_v1, %v226_v10  ;;  %v266_v19 = vadd.f32 %v472_v1, %v227_v11 }
  0x1e   : > { %327 = vst [vmem:[%s495_s24 + $0x70] sm:$0xff] %v295_v9  ;;  %v267_v20 = vadd.f32 %v472_v1, %v228_v12  ;;  %v232_v21 = vmul.f32 %v462_v0, %v193_v8  ;;  %v268_v22 = vadd.f32 %v472_v1, %v229_v15  ;;  %v269_v23 = vadd.f32 %v472_v1, %v230_v16 }
  0x1f   : > { %328 = vst [vmem:[%s495_s24 + $0x78] sm:$0xff] %v296_v14  ;;  %v270_v24 = vadd.f32 %v472_v1, %v231_v17  ;;  %v233_v25 = vmul.f32 %v462_v0, %v194_v13  ;;  %v297_v29 = vmax.f32 %v265_v18, 0.0  ;;  %v298_v30 = vmax.f32 %v266_v19, 0.0 }
  0x20   : > { %v299_v31 = vmax.f32 %v267_v20, 0.0  ;;  %v271_v32 = vadd.f32 %v472_v1, %v232_v21  ;;  %v300_v36 = vmax.f32 %v268_v22, 0.0  ;;  %v301_v37 = vmax.f32 %v269_v23, 0.0 }
  0x21   : > { %v302_v38 = vmax.f32 %v270_v24, 0.0  ;;  %v272_v39 = vadd.f32 %v472_v1, %v233_v25  ;;  %329 = vst [vmem:[%s495_s24 + $0x80] sm:$0xff] %v297_v29  ;;  %330 = vst [vmem:[%s495_s24 + $0x88] sm:$0xff] %v298_v30  ;;  %v234_v42 = vmul.f32 %v462_v0, %v195_v26  ;;  %v235_v43 = vmul.f32 %v462_v0, %v196_v27 }
  0x22   : > { %331 = vst [vmem:[%s495_s24 + $0x90] sm:$0xff] %v299_v31  ;;  %v303_v41 = vmax.f32 %v271_v32, 0.0  ;;  %v236_v44 = vmul.f32 %v462_v0, %v197_v28  ;;  %332 = vst [vmem:[%s495_s24 + $0x98] sm:$0xff] %v300_v36  ;;  %v237_v47 = vmul.f32 %v462_v0, %v198_v33  ;;  %v238_v48 = vmul.f32 %v462_v0, %v199_v34 }
  0x23   : > { %333 = vst [vmem:[%s495_s24 + $0xa0] sm:$0xff] %v301_v37  ;;  %334 = vst [vmem:[%s495_s24 + $0xa8] sm:$0xff] %v302_v38  ;;  %v304_v46 = vmax.f32 %v272_v39, 0.0  ;;  %v239_v49 = vmul.f32 %v462_v0, %v200_v35  ;;  %v273_v50 = vadd.f32 %v472_v1, %v234_v42  ;;  %v274_v51 = vadd.f32 %v472_v1, %v235_v43 }
  0x24   : > { %335 = vst [vmem:[%s495_s24 + $0xb0] sm:$0xff] %v303_v41  ;;  %v275_v52 = vadd.f32 %v472_v1, %v236_v44  ;;  %v240_v53 = vmul.f32 %v462_v0, %v201_v40  ;;  %v276_v54 = vadd.f32 %v472_v1, %v237_v47  ;;  %v277_v55 = vadd.f32 %v472_v1, %v238_v48 }
  0x25   : > { %336 = vst [vmem:[%s495_s24 + $0xb8] sm:$0xff] %v304_v46  ;;  %v278_v56 = vadd.f32 %v472_v1, %v239_v49  ;;  %v241_v57 = vmul.f32 %v462_v0, %v202_v45  ;;  %v305_v58 = vmax.f32 %v273_v50, 0.0  ;;  %v306_v59 = vmax.f32 %v274_v51, 0.0 }
  0x26   : > { %v307_v60 = vmax.f32 %v275_v52, 0.0  ;;  %v279_v61 = vadd.f32 %v472_v1, %v240_v53  ;;  %v308_v62 = vmax.f32 %v276_v54, 0.0  ;;  %v309_v63 = vmax.f32 %v277_v55, 0.0 }
  0x27   : > { %v310_v2 = vmax.f32 %v278_v56, 0.0  ;;  %v280_v3 = vadd.f32 %v472_v1, %v241_v57  ;;  %337 = vst [vmem:[%s495_s24 + $0xc0] sm:$0xff] %v305_v58  ;;  %338 = vst [vmem:[%s495_s24 + $0xc8] sm:$0xff] %v306_v59 }
  0x28   : > { %339 = vst [vmem:[%s495_s24 + $0xd0] sm:$0xff] %v307_v60  ;;  %v311_v4 = vmax.f32 %v279_v61, 0.0  ;;  %340 = vst [vmem:[%s495_s24 + $0xd8] sm:$0xff] %v308_v62 }
  0x29   : > { %341 = vst [vmem:[%s495_s24 + $0xe0] sm:$0xff] %v309_v63  ;;  %342 = vst [vmem:[%s495_s24 + $0xe8] sm:$0xff] %v310_v2  ;;  %v312_v0 = vmax.f32 %v280_v3, 0.0 }
  0x2a   : > { %343 = vst [vmem:[%s495_s24 + $0xf0] sm:$0xff] %v311_v4 }
  0x2b   : > { %344 = vst [vmem:[%s495_s24 + $0xf8] sm:$0xff] %v312_v0 }
  0x2c PF: > { %s13_s12 = sadd.s32 1, %s429_s12  }
  0x2d   : > { %p10_p4 = scmp.ge.s32.totalorder %s13_s12, 4  }
  0x2f   :  { %12 = sbr.rel (!%p10_p4) target bundleno = 1 (0x1), region = 62 }

// kernel: conv_block_forward.4
= control target key start
LH: loop header
LB: loop body
LE: loop exit
PB: predicated region body
PF: predicated region fallthrough
CT: control target
= control target key end

     0   :  { %s2519_s18 = smov 0   ;;  %s4043_s0 = inlined_call_operand.vmem [shape: f32[2,256,128], index: 0, kind: input, shape index: {}]   ;;  %s4044_s1 = inlined_call_operand.vmem [shape: f32[1152,128], index: 1, kind: input, shape index: {}]   ;;  %s4045_s2 = inlined_call_operand.vmem [shape: f32[1,128], index: 2, kind: input, shape index: {}]   ;;  %s4046_s3 = inlined_call_operand.vmem [shape: f32[1,128], index: 3, kind: input, shape index: {}]   ;;  %s4047_s4 = inlined_call_operand.vmem [shape: f32[2,256,128], index: 4, kind: output, shape index: {0}]   ;;  %s4048_s5 = inlined_call_operand.vmem [shape: f32[2,8,128], index: 5, kind: output, shape index: {1}]  }
   0x1 LB: > { %s2272_s19 = sadd.s32 4294967295, %s2486_s18   ;;  %p2276_p0 = scmp.ge.s32.totalorder %s2486_s18, 1  ;;  %s2486_s18 = sphi %s2519_s18, %s16_s18  }
   0x2   : > { %p190_p1 = scmp.lt.s32.totalorder %s2486_s18, 3 }
   0x4   : > { %p191_p2 = pnand %p2276_p0, %p190_p1 }
   0x6   : > { %194 = sbr.rel (%p191_p2) target bundleno = 611 (0x263), region = 36 }
   0xb   : > { %v787_v0 = vld [vmem:[%s4044_s1 + $0x78] sm:$0xff]  ;;  %v2488_v2 = vmov 0.0   ;;  %v786_v3 = vld [vmem:[%s4044_s1 + $0x70] sm:$0xff]  ;;  %v785_v5 = vld [vmem:[%s4044_s1 + $0x68] sm:$0xff]  ;;  %p222_p3 = scmp.lt.s32.totalorder %s2272_s19, 1 }
   0xc   : > { %v819_v1 = vld [vmem:[%s4044_s1 + $0x178] sm:$0xff]  ;;  %916 = vmatprep.subr.mxu0 %v2488_v2  ;;  %378 = vst [vmem:[#allocation2] sm:$0xff] %v2488_v2  ;;  %379 = vst [vmem:[#allocation2 + $0x8] sm:$0xff] %v2488_v2  ;;  %1141 = vmatprep.subr.mxu1 %v2488_v2  ;;  %v818_v4 = vld [vmem:[%s4044_s1 + $0x170] sm:$0xff] }
   0xd   : > { %380 = vst [vmem:[#allocation2 + $0x10] sm:$0xff] %v2488_v2  ;;  %381 = vst [vmem:[#allocation2 + $0x18] sm:$0xff] %v2488_v2  ;;  %917 = vmatpush1.msra.mxu0 %v787_v0  ;;  %1142 = vmatpush1.msra.mxu1 %v819_v1  ;;  %v817_v6 = vld [vmem:[%s4044_s1 + $0x168] sm:$0xff]  ;;  %v784_v7 = vld [vmem:[%s4044_s1 + $0x60] sm:$0xff]  ;;  %s4088_s19 = smov (!%p222_p3, %s2272_s19), 1 }
   0xe   : > { %382 = vst [vmem:[#allocation2 + $0x20] sm:$0xff] %v2488_v2  ;;  %385 = vst [vmem:[#allocation2 + $0x38] sm:$0xff] %v2488_v2  ;;  %918 = vmatprep.subr.mxu0 %v2488_v2  ;;  %1143 = vmatprep.subr.mxu1 %v2488_v2  ;;  %v816_v8 = vld [vmem:[%s4044_s1 + $0x160] sm:$0xff]  ;;  %v783_v9 = vld [vmem:[%s4044_s1 + $0x58] sm:$0xff]  ;;  %s2286_s8 = sshll.u32 %s4088_s19, 8 }
   0xf   : > { %386 = vst [vmem:[#allocation2 + $0x40] sm:$0xff] %v2488_v2  ;;  %389 = vst [vmem:[#allocation2 + $0x58] sm:$0xff] %v2488_v2  ;;  %919 = vmatpush1.msra.mxu0 %v786_v3  ;;  %1144 = vmatpush1.msra.mxu1 %v818_v4  ;;  %v815_v10 = vld [vmem:[%s4044_s1 + $0x158] sm:$0xff]  ;;  %v782_v11 = vld [vmem:[%s4044_s1 + $0x50] sm:$0xff]  ;;  %s2657_s15 = scalar_lea.vmem %s4043_s0, %s2286_s8  ;;  %s3858_s10 = scalar_lea.vmem %s4047_s4, %s2286_s8 }
  0x10   : > { %390 = vst [vmem:[#allocation2 + $0x60] sm:$0xff] %v2488_v2  ;;  %393 = vst [vmem:[#allocation2 + $0x78] sm:$0xff] %v2488_v2  ;;  %920 = vmatprep.subr.mxu0 %v2488_v2  ;;  %1145 = vmatprep.subr.mxu1 %v2488_v2  ;;  %v814_v12 = vld [vmem:[%s4044_s1 + $0x150] sm:$0xff]  ;;  %v781_v13 = vld [vmem:[%s4044_s1 + $0x48] sm:$0xff]  ;;  %s2281_s8 = sshll.u32 %s4088_s19, 3 }
  0x11   : > { %394 = vst [vmem:[#allocation2 + $0x80] sm:$0xff] %v2488_v2  ;;  %397 = vst [vmem:[#allocation2 + $0x98] sm:$0xff] %v2488_v2  ;;  %921 = vmatpush1.msra.mxu0 %v785_v5  ;;  %1146 = vmatpush1.msra.mxu1 %v817_v6  ;;  %v813_v14 = vld [vmem:[%s4044_s1 + $0x148] sm:$0xff]  ;;  %v780_v15 = vld [vmem:[%s4044_s1 + $0x40] sm:$0xff]  ;;  %s235_s13 = scalar_lea.vmem %s4048_s5, %s2281_s8 }
  0x12   : > { %398 = vst [vmem:[#allocation2 + $0xa0] sm:$0xff] %v2488_v2  ;;  %401 = vst [vmem:[#allocation2 + $0xb8] sm:$0xff] %v2488_v2  ;;  %922 = vmatprep.subr.mxu0 %v2488_v2  ;;  %1147 = vmatprep.subr.mxu1 %v2488_v2  ;;  %v812_v16 = vld [vmem:[%s4044_s1 + $0x140] sm:$0xff]  ;;  %v779_v17 = vld [vmem:[%s4044_s1 + $0x38] sm:$0xff] }
  0x13   : > { %402 = vst [vmem:[#allocation2 + $0xc0] sm:$0xff] %v2488_v2  ;;  %405 = vst [vmem:[#allocation2 + $0xd8] sm:$0xff] %v2488_v2  ;;  %923 = vmatpush1.msra.mxu0 %v784_v7  ;;  %1148 = vmatpush1.msra.mxu1 %v816_v8  ;;  %v811_v18 = vld [vmem:[%s4044_s1 + $0x138] sm:$0xff]  ;;  %v778_v19 = vld [vmem:[%s4044_s1 + $0x30] sm:$0xff] }
  0x14   : > { %406 = vst [vmem:[#allocation2 + $0xe0] sm:$0xff] %v2488_v2  ;;  %409 = vst [vmem:[#allocation2 + $0xf8] sm:$0xff] %v2488_v2  ;;  %924 = vmatprep.subr.mxu0 %v2488_v2  ;;  %1149 = vmatprep.subr.mxu1 %v2488_v2  ;;  %v810_v20 = vld [vmem:[%s4044_s1 + $0x130] sm:$0xff]  ;;  %v777_v21 = vld [vmem:[%s4044_s1 + $0x28] sm:$0xff] }
  0x15   : > { %410 = vst [vmem:[#allocation2 + $0x100] sm:$0xff] %v2488_v2  ;;  %413 = vst [vmem:[#allocation2 + $0x118] sm:$0xff] %v2488_v2  ;;  %925 = vmatpush1.msra.mxu0 %v783_v9  ;;  %1150 = vmatpush1.msra.mxu1 %v815_v10  ;;  %v809_v22 = vld [vmem:[%s4044_s1 + $0x128] sm:$0xff]  ;;  %v776_v23 = vld [vmem:[%s4044_s1 + $0x20] sm:$0xff] }
  0x16   : > { %414 = vst [vmem:[#allocation2 + $0x120] sm:$0xff] %v2488_v2  ;;  %417 = vst [vmem:[#allocation2 + $0x138] sm:$0xff] %v2488_v2  ;;  %926 = vmatprep.subr.mxu0 %v2488_v2  ;;  %1151 = vmatprep.subr.mxu1 %v2488_v2  ;;  %v808_v24 = vld [vmem:[%s4044_s1 + $0x120] sm:$0xff]  ;;  %v775_v29 = vld [vmem:[%s4044_s1 + $0x18] sm:$0xff] }
  0x17   : > { %418 = vst [vmem:[#allocation2 + $0x140] sm:$0xff] %v2488_v2  ;;  %421 = vst [vmem:[#allocation2 + $0x158] sm:$0xff] %v2488_v2  ;;  %927 = vmatpush1.msra.mxu0 %v782_v11  ;;  %1152 = vmatpush1.msra.mxu1 %v814_v12  ;;  %v236_v25 = vld [vmem:[%s2657_s15] sm:$0xff]  ;;  %v807_v30 = vld [vmem:[%s4044_s1 + $0x118] sm:$0xff] }
  0x18   : > { %422 = vst [vmem:[#allocation2 + $0x160] sm:$0xff] %v2488_v2  ;;  %425 = vst [vmem:[#allocation2 + $0x178] sm:$0xff] %v2488_v2  ;;  %928 = vmatprep.subr.mxu0 %v2488_v2  ;;  %1153 = vmatprep.subr.mxu1 %v2488_v2  ;;  %v2679_v26 = vld [vmem:[%s4045_s2] ss:$0 sm:$0xff]  ;;  %v237_v31 = vld [vmem:[%s2657_s15 + $0x8] sm:$0xff] }
  0x19   : > { %426 = vst [vmem:[#allocation2 + $0x180] sm:$0xff] %v2488_v2  ;;  %429 = vst [vmem:[#allocation2 + $0x198] sm:$0xff] %v2488_v2  ;;  %929 = vmatpush1.msra.mxu0 %v781_v13  ;;  %1154 = vmatpush1.msra.mxu1 %v813_v14  ;;  %v275_v27 = vmul.f32 %v2679_v26, %v236_v25  ;;  %v2685_v28 = vld [vmem:[%s4046_s3] ss:$0 sm:$0xff]  ;;  %v276_v33 = vmul.f32 %v2679_v26, %v237_v31  ;;  %v238_v34 = vld [vmem:[%s2657_s15 + $0x10] sm:$0xff] }
  0x1a   : > { %430 = vst [vmem:[#allocation2 + $0x1a0] sm:$0xff] %v2488_v2  ;;  %433 = vst [vmem:[#allocation2 + $0x1b8] sm:$0xff] %v2488_v2  ;;  %930 = vmatprep.subr.mxu0 %v2488_v2  ;;  %1155 = vmatprep.subr.mxu1 %v2488_v2  ;;  %v774_v35 = vld [vmem:[%s4044_s1 + $0x10] sm:$0xff]  ;;  %v277_v37 = vmul.f32 %v2679_v26, %v238_v34  ;;  %v239_v38 = vld [vmem:[%s2657_s15 + $0x18] sm:$0xff] }
  0x1b   : > { %434 = vst [vmem:[#allocation2 + $0x1c0] sm:$0xff] %v2488_v2  ;;  %437 = vst [vmem:[#allocation2 + $0x1d8] sm:$0xff] %v2488_v2  ;;  %931 = vmatpush1.msra.mxu0 %v780_v15  ;;  %1156 = vmatpush1.msra.mxu1 %v812_v16  ;;  %v2697_v32 = vadd.f32 %v2685_v28, %v275_v27  ;;  %v806_v36 = vld [vmem:[%s4044_s1 + $0x110] sm:$0xff]  ;;  %v2713_v40 = vadd.f32 %v2685_v28, %v276_v33  ;;  %v240_v42 = vld [vmem:[%s2657_s15 + $0x20] sm:$0xff] }
  0x1c   : > { %438 = vst [vmem:[#allocation2 + $0x1e0] sm:$0xff] %v2488_v2  ;;  %441 = vst [vmem:[#allocation2 + $0x1f8] sm:$0xff] %v2488_v2  ;;  %932 = vmatprep.subr.mxu0 %v2488_v2  ;;  %1157 = vmatprep.subr.mxu1 %v2488_v2  ;;  %v278_v41 = vmul.f32 %v2679_v26, %v239_v38  ;;  %v241_v43 = vld [vmem:[%s2657_s15 + $0x28] sm:$0xff]  ;;  %v2727_v46 = vadd.f32 %v2685_v28, %v277_v37  ;;  %v242_v49 = vld [vmem:[%s2657_s15 + $0x30] sm:$0xff] }
  0x1d   : > { %442 = vst [vmem:[#allocation2 + $0x200] sm:$0xff] %v2488_v2  ;;  %445 = vst [vmem:[#allocation2 + $0x218] sm:$0xff] %v2488_v2  ;;  %933 = vmatpush1.msra.mxu0 %v779_v17  ;;  %1158 = vmatpush1.msra.mxu1 %v811_v18  ;;  %v346_v39 = vmax.f32 %v2697_v32, 0.0  ;;  %v773_v44 = vld [vmem:[%s4044_s1 + $0x8] sm:$0xff]  ;;  %v279_v47 = vmul.f32 %v2679_v26, %v240_v42  ;;  %v280_v48 = vmul.f32 %v2679_v26, %v241_v43  ;;  %v243_v53 = vld [vmem:[%s2657_s15 + $0x38] sm:$0xff] }
  0x1e   : > { %446 = vst [vmem:[#allocation2 + $0x220] sm:$0xff] %v2488_v2  ;;  %447 = vst [vmem:[#allocation2 + $0x228] sm:$0xff] %v2488_v2  ;;  %934 = vmatprep.subr.mxu0 %v2488_v2  ;;  %1159 = vmatprep.subr.mxu1 %v2488_v2  ;;  %v805_v45 = vld [vmem:[%s4044_s1 + $0x108] sm:$0xff]  ;;  %v347_v50 = vmax.f32 %v2713_v40, 0.0  ;;  %v2736_v51 = vadd.f32 %v2685_v28, %v278_v41  ;;  %v281_v52 = vmul.f32 %v2679_v26, %v242_v49  ;;  %v244_v54 = vld [vmem:[%s2657_s15 + $0x40] sm:$0xff] }
  0x1f   : > { %448 = vst [vmem:[#allocation2 + $0x230] sm:$0xff] %v2488_v2  ;;  %449 = vst [vmem:[#allocation2 + $0x238] sm:$0xff] %v2488_v2  ;;  %935 = vmatpush1.msra.mxu0 %v778_v19  ;;  %1160 = vmatpush1.msra.mxu1 %v810_v20  ;;  %v772_v55 = vld [vmem:[%s4044_s1] sm:$0xff]  ;;  %v348_v57 = vmax.f32 %v2727_v46, 0.0  ;;  %v2751_v58 = vadd.f32 %v2685_v28, %v279_v47  ;;  %v2754_v59 = vadd.f32 %v2685_v28, %v280_v48  ;;  %v245_v61 = vld [vmem:[%s2657_s15 + $0x48] sm:$0xff] }
  0x20   : > { %936 = vmatprep.subr.mxu0 %v2488_v2  ;;  %1161 = vmatprep.subr.mxu1 %v2488_v2  ;;  %451 = vst [vmem:[#allocation2 + $0x28] sm:$0xff] %v346_v39  ;;  %v804_v56 = vld [vmem:[%s4044_s1 + $0x100] sm:$0xff]  ;;  %v282_v60 = vmul.f32 %v2679_v26, %v243_v53  ;;  %452 = vst [vmem:[#allocation2 + $0x30] sm:$0xff] %v347_v50  ;;  %v349_v62 = vmax.f32 %v2736_v51, 0.0  ;;  %v2762_v63 = vadd.f32 %v2685_v28, %v281_v52  ;;  %v246_v3 = vld [vmem:[%s2657_s15 + $0x50] sm:$0xff] }
  0x21   : > { %937 = vmatpush1.msra.mxu0 %v777_v21  ;;  %1162 = vmatpush1.msra.mxu1 %v809_v22  ;;  %v283_v0 = vmul.f32 %v2679_v26, %v244_v54  ;;  %v284_v1 = vmul.f32 %v2679_v26, %v245_v61  ;;  %v803_v4 = vld [vmem:[%s4044_s1 + $0xf8] sm:$0xff]  ;;  %453 = vst [vmem:[#allocation2 + $0x48] sm:$0xff] %v348_v57  ;;  %v350_v6 = vmax.f32 %v2751_v58, 0.0  ;;  %v351_v7 = vmax.f32 %v2754_v59, 0.0  ;;  %v248_v15 = vld [vmem:[%s2657_s15 + $0x60] sm:$0xff]  ;;  %v802_v16 = vld [vmem:[%s4044_s1 + $0xf0] sm:$0xff] }
  0x22   : > { %938 = vmatprep.subr.mxu0 %v2488_v2  ;;  %1163 = vmatprep.subr.mxu1 %v2488_v2  ;;  %v835_v5 = vld [vmem:[%s4044_s1 + $0x1f8] sm:$0xff]  ;;  %v2780_v8 = vadd.f32 %v2685_v28, %v282_v60  ;;  %v285_v9 = vmul.f32 %v2679_v26, %v246_v3  ;;  %454 = vst [vmem:[#allocation2 + $0x50] sm:$0xff] %v349_v62  ;;  %v352_v11 = vmax.f32 %v2762_v63, 0.0  ;;  %v834_v17 = vld [vmem:[%s4044_s1 + $0x1f0] sm:$0xff]  ;;  %v249_v21 = vld [vmem:[%s2657_s15 + $0x68] sm:$0xff] }
  0x23   : > { %939 = vmatpush1.msra.mxu0 %v776_v23  ;;  %1164 = vmatpush1.msra.mxu1 %v808_v24  ;;  %v247_v10 = vld [vmem:[%s2657_s15 + $0x58] sm:$0xff]  ;;  %v2788_v12 = vadd.f32 %v2685_v28, %v283_v0  ;;  %v2791_v13 = vadd.f32 %v2685_v28, %v284_v1  ;;  %455 = vst [vmem:[#allocation2 + $0x68] sm:$0xff] %v350_v6  ;;  %456 = vst [vmem:[#allocation2 + $0x70] sm:$0xff] %v351_v7  ;;  %v250_v27 = vld [vmem:[%s2657_s15 + $0x70] sm:$0xff] }
  0x24   : > { %940 = vmatprep.subr.mxu0 %v2488_v2  ;;  %1165 = vmatprep.subr.mxu1 %v2488_v2  ;;  %v286_v14 = vmul.f32 %v2679_v26, %v247_v10  ;;  %v353_v18 = vmax.f32 %v2780_v8, 0.0  ;;  %v2809_v19 = vadd.f32 %v2685_v28, %v285_v9  ;;  %v287_v20 = vmul.f32 %v2679_v26, %v248_v15  ;;  %v251_v37 = vld [vmem:[%s2657_s15 + $0x78] sm:$0xff]  ;;  %v800_v38 = vld [vmem:[%s4044_s1 + $0xe0] sm:$0xff]  ;;  %v797_v0 = vld [vmem:[%s4044_s1 + $0xc8] sm:$0xff] }
  0x25   : > { %941 = vmatpush1.msra.mxu0 %v775_v29  ;;  %1166 = vmatpush1.msra.mxu1 %v807_v30  ;;  %457 = vst [vmem:[#allocation2 + $0x88] sm:$0xff] %v352_v11  ;;  %v354_v22 = vmax.f32 %v2788_v12, 0.0  ;;  %v355_v23 = vmax.f32 %v2791_v13, 0.0  ;;  %v288_v25 = vmul.f32 %v2679_v26, %v249_v21  ;;  %v801_v29 = vld [vmem:[%s4044_s1 + $0xe8] sm:$0xff]  ;;  %v289_v34 = vmul.f32 %v2679_v26, %v250_v27  ;;  %v832_v41 = vld [vmem:[%s4044_s1 + $0x1e0] sm:$0xff]  ;;  %v799_v48 = vld [vmem:[%s4044_s1 + $0xd8] sm:$0xff] }
  0x26   : > { %942 = vmatprep.subr.mxu0 %v2488_v2  ;;  %1167 = vmatprep.subr.mxu1 %v2488_v2  ;;  %v2818_v24 = vadd.f32 %v2685_v28, %v286_v14  ;;  %v833_v30 = vld [vmem:[%s4044_s1 + $0x1e8] sm:$0xff]  ;;  %458 = vst [vmem:[#allocation2 + $0x90] sm:$0xff] %v353_v18  ;;  %v356_v31 = vmax.f32 %v2809_v19, 0.0  ;;  %v2834_v33 = vadd.f32 %v2685_v28, %v287_v20  ;;  %v252_v47 = vld [vmem:[%s2657_s15 + $0x80] sm:$0xff]  ;;  %v831_v49 = vld [vmem:[%s4044_s1 + $0x1d8] sm:$0xff] }
  0x27   : > { %943 = vmatpush1.msra.mxu0 %v774_v35  ;;  %1168 = vmatpush1.msra.mxu1 %v806_v36  ;;  %459 = vst [vmem:[#allocation2 + $0xa8] sm:$0xff] %v354_v22  ;;  %460 = vst [vmem:[#allocation2 + $0xb0] sm:$0xff] %v355_v23  ;;  %v2843_v36 = vadd.f32 %v2685_v28, %v288_v25  ;;  %v2858_v43 = vadd.f32 %v2685_v28, %v289_v34  ;;  %v829_v1 = vld [vmem:[%s4044_s1 + $0x1c8] sm:$0xff]  ;;  %v828_v9 = vld [vmem:[%s4044_s1 + $0x1c0] sm:$0xff] }
  0x28   : > { %944 = vmatprep.subr.mxu0 %v2488_v2  ;;  %1169 = vmatprep.subr.mxu1 %v2488_v2  ;;  %v357_v35 = vmax.f32 %v2818_v24, 0.0  ;;  %461 = vst [vmem:[#allocation2 + $0xc8] sm:$0xff] %v356_v31  ;;  %v358_v42 = vmax.f32 %v2834_v33, 0.0  ;;  %v291_v54 = vmul.f32 %v2679_v26, %v252_v47  ;;  %v795_v14 = vld [vmem:[%s4044_s1 + $0xb8] sm:$0xff]  ;;  %v794_v20 = vld [vmem:[%s4044_s1 + $0xb0] sm:$0xff]  ;;  %v793_v34 = vld [vmem:[%s4044_s1 + $0xa8] sm:$0xff] }
  0x29   : > { %945 = vmatpush1.msra.mxu0 %v773_v44  ;;  %1170 = vmatpush1.msra.mxu1 %v805_v45  ;;  %v290_v44 = vmul.f32 %v2679_v26, %v251_v37  ;;  %v359_v45 = vmax.f32 %v2843_v36, 0.0  ;;  %v360_v52 = vmax.f32 %v2858_v43, 0.0  ;;  %v827_v15 = vld [vmem:[%s4044_s1 + $0x1b8] sm:$0xff]  ;;  %v826_v21 = vld [vmem:[%s4044_s1 + $0x1b0] sm:$0xff]  ;;  %v825_v37 = vld [vmem:[%s4044_s1 + $0x1a8] sm:$0xff] }
  0x2a   : > { %946 = vmatprep.subr.mxu0 %v2488_v2  ;;  %1171 = vmatprep.subr.mxu1 %v2488_v2  ;;  %462 = vst [vmem:[#allocation2 + $0xd0] sm:$0xff] %v357_v35  ;;  %463 = vst [vmem:[#allocation2 + $0xe8] sm:$0xff] %v358_v42  ;;  %v2894_v61 = vadd.f32 %v2685_v28, %v291_v54  ;;  %v824_v54 = vld [vmem:[%s4044_s1 + $0x1a0] sm:$0xff]  ;;  %v551_v40 = vld [vmem:[#allocation2 + $0x49] sm:$0xff] }
  0x2b   : > { %947 = vmatpush1.msra.mxu0 %v772_v55  ;;  %1172 = vmatpush1.msra.mxu1 %v804_v56  ;;  %v2877_v53 = vadd.f32 %v2685_v28, %v290_v44  ;;  %464 = vst [vmem:[#allocation2 + $0xf0] sm:$0xff] %v359_v45  ;;  %v798_v55 = vld [vmem:[%s4044_s1 + $0xd0] sm:$0xff]  ;;  %465 = vst [vmem:[#allocation2 + $0x108] sm:$0xff] %v360_v52  ;;  %v848_v32 = vld [vmem:[%s4044_s1 + $0x260] sm:$0xff] }
  0x2c   : > { %948 = vmatprep.subr.mxu0 %v2488_v2  ;;  %1173 = vmatprep.subr.mxu1 %v2488_v2  ;;  %v830_v56 = vld [vmem:[%s4044_s1 + $0x1d0] sm:$0xff]  ;;  %v362_v3 = vmax.f32 %v2894_v61, 0.0  ;;  %v880_v46 = vld [vmem:[%s4044_s1 + $0x360] sm:$0xff]  ;;  %v879_v51 = vld [vmem:[%s4044_s1 + $0x358] sm:$0xff] }
  0x2d   : > { %949 = vmatpush2.msra.mxu0 %v803_v4  ;;  %1174 = vmatpush2.msra.mxu1 %v835_v5  ;;  %v361_v60 = vmax.f32 %v2877_v53, 0.0  ;;  %v253_v4 = vld [vmem:[%s2657_s15 + $0x88] sm:$0xff]  ;;  %v796_v5 = vld [vmem:[%s4044_s1 + $0xc0] sm:$0xff]  ;;  %v878_v58 = vld [vmem:[%s4044_s1 + $0x350] sm:$0xff] }
  0x2e   : > { %950 = vmatprep.subr.mxu0 %v2488_v2  ;;  %1175 = vmatprep.subr.mxu1 %v2488_v2  ;;  %467 = vst [vmem:[#allocation2 + $0x128] sm:$0xff] %v362_v3  ;;  %v292_v10 = vmul.f32 %v2679_v26, %v253_v4  ;;  %v877_v59 = vld [vmem:[%s4044_s1 + $0x348] sm:$0xff]  ;;  %v876_v63 = vld [vmem:[%s4044_s1 + $0x340] sm:$0xff]  ;;  %v875_v8 = vld [vmem:[%s4044_s1 + $0x338] sm:$0xff] }
  0x2f   : > { %951 = vmatpush2.msra.mxu0 %v802_v16  ;;  %1176 = vmatpush2.msra.mxu1 %v834_v17  ;;  %466 = vst [vmem:[#allocation2 + $0x110] sm:$0xff] %v361_v60  ;;  %v254_v17 = vld [vmem:[%s2657_s15 + $0x90] sm:$0xff]  ;;  %v840_v12 = vld [vmem:[%s4044_s1 + $0x220] sm:$0xff]  ;;  %v839_v13 = vld [vmem:[%s4044_s1 + $0x218] sm:$0xff] }
  0x30   : > { %952 = vmatprep.subr.mxu0 %v2488_v2  ;;  %1177 = vmatprep.subr.mxu1 %v2488_v2  ;;  %v2928_v16 = vadd.f32 %v2685_v28, %v292_v10  ;;  %v293_v27 = vmul.f32 %v2679_v26, %v254_v17  ;;  %v791_v10 = vld [vmem:[%s4044_s1 + $0x98] sm:$0xff]  ;;  %v838_v19 = vld [vmem:[%s4044_s1 + $0x210] sm:$0xff]  ;;  %v837_v24 = vld [vmem:[%s4044_s1 + $0x208] sm:$0xff] }
  0x31   : > { %953 = vmatpush2.msra.mxu0 %v801_v29  ;;  %1178 = vmatpush2.msra.mxu1 %v833_v30  ;;  %v255_v29 = vld [vmem:[%s2657_s15 + $0x98] sm:$0xff]  ;;  %v836_v33 = vld [vmem:[%s4044_s1 + $0x200] sm:$0xff]  ;;  %v866_v43 = vld [vmem:[%s4044_s1 + $0x2f0] sm:$0xff] }
  0x32   : > { %954 = vmatprep.subr.mxu0 %v2488_v2  ;;  %1179 = vmatprep.subr.mxu1 %v2488_v2  ;;  %v4060_v25 = vmax.f32 %v2928_v16, 0.0  ;;  %v294_v30 = vmul.f32 %v2679_v26, %v255_v29  ;;  %v867_v36 = vld [vmem:[%s4044_s1 + $0x2f8] sm:$0xff]  ;;  %v865_v53 = vld [vmem:[%s4044_s1 + $0x2e8] sm:$0xff]  ;;  %v864_v61 = vld [vmem:[%s4044_s1 + $0x2e0] sm:$0xff] }
  0x33   : > { %955 = vmatpush2.msra.mxu0 %v800_v38  ;;  %1180 = vmatpush2.msra.mxu1 %v832_v41  ;;  %v2954_v38 = vadd.f32 %v2685_v28, %v293_v27  ;;  %v256_v41 = vld [vmem:[%s2657_s15 + $0xa0] sm:$0xff] }
  0x34   : > { %956 = vmatprep.subr.mxu0 %v2488_v2  ;;  %1181 = vmatprep.subr.mxu1 %v2488_v2  ;;  %468 = vst [vmem:[#allocation2 + $0x130] sm:$0xff] %v4060_v25  ;;  %v2958_v44 = vadd.f32 %v2685_v28, %v294_v30  ;;  %v295_v47 = vmul.f32 %v2679_v26, %v256_v41  ;;  %v261_v30 = vld [vmem:[%s2657_s15 + $0xc8] sm:$0xff] }
  0x35   : > { %957 = vmatpush2.msra.mxu0 %v799_v48  ;;  %1182 = vmatpush2.msra.mxu1 %v831_v49  ;;  %v257_v48 = vld [vmem:[%s2657_s15 + $0xa8] sm:$0xff]  ;;  %v792_v49 = vld [vmem:[%s4044_s1 + $0xa0] sm:$0xff] }
  0x36   : > { %958 = vmatprep.subr.mxu0 %v2488_v2  ;;  %1183 = vmatprep.subr.mxu1 %v2488_v2  ;;  %v2975_v4 = vadd.f32 %v2685_v28, %v295_v47 }
  0x37   : > { %959 = vmatpush2.msra.mxu0 %v798_v55  ;;  %1184 = vmatpush2.msra.mxu1 %v830_v56  ;;  %v4059_v55 = vmax.f32 %v2954_v38, 0.0  ;;  %v296_v56 = vmul.f32 %v2679_v26, %v257_v48  ;;  %v300_v48 = vmul.f32 %v2679_v26, %v261_v30 }
  0x38   : > { %960 = vmatprep.subr.mxu0 %v2488_v2  ;;  %1185 = vmatprep.subr.mxu1 %v2488_v2 }
  0x39   : > { %961 = vmatpush2.msra.mxu0 %v797_v0  ;;  %1186 = vmatpush2.msra.mxu1 %v829_v1  ;;  %v258_v0 = vld [vmem:[%s2657_s15 + $0xb0] sm:$0xff]  ;;  %v4055_v1 = vmax.f32 %v2958_v44, 0.0  ;;  %469 = vst [vmem:[#allocation2 + $0x148] sm:$0xff] %v4059_v55 }
  0x3a   : > { %962 = vmatprep.subr.mxu0 %v2488_v2  ;;  %1187 = vmatprep.subr.mxu1 %v2488_v2 }
  0x3b   : > { %963 = vmatpush2.msra.mxu0 %v796_v5  ;;  %1188 = vmatpush2.msra.mxu1 %v828_v9  ;;  %v297_v5 = vmul.f32 %v2679_v26, %v258_v0  ;;  %v259_v9 = vld [vmem:[%s2657_s15 + $0xb8] sm:$0xff]  ;;  %470 = vst [vmem:[#allocation2 + $0x150] sm:$0xff] %v4055_v1  ;;  %v821_v0 = vld [vmem:[%s4044_s1 + $0x188] sm:$0xff] }
  0x3c   : > { %964 = vmatprep.subr.mxu0 %v2488_v2  ;;  %1189 = vmatprep.subr.mxu1 %v2488_v2  ;;  %v298_v17 = vmul.f32 %v2679_v26, %v259_v9  ;;  %v3033_v9 = vadd.f32 %v2685_v28, %v300_v48  ;;  %v820_v48 = vld [vmem:[%s4044_s1 + $0x180] sm:$0xff] }
  0x3d   : > { %965 = vmatpush2.msra.mxu0 %v795_v14  ;;  %1190 = vmatpush2.msra.mxu1 %v827_v15  ;;  %v823_v14 = vld [vmem:[%s4044_s1 + $0x198] sm:$0xff]  ;;  %v2990_v15 = vadd.f32 %v2685_v28, %v296_v56  ;;  %v2998_v27 = vadd.f32 %v2685_v28, %v297_v5  ;;  %v789_v56 = vld [vmem:[%s4044_s1 + $0x88] sm:$0xff] }
  0x3e   : > { %966 = vmatprep.subr.mxu0 %v2488_v2  ;;  %1191 = vmatprep.subr.mxu1 %v2488_v2  ;;  %v3012_v47 = vadd.f32 %v2685_v28, %v298_v17  ;;  %v4053_v30 = vmax.f32 %v3033_v9, 0.0 }
  0x3f   : > { %967 = vmatpush2.msra.mxu0 %v794_v20  ;;  %1192 = vmatpush2.msra.mxu1 %v826_v21  ;;  %v260_v20 = vld [vmem:[%s2657_s15 + $0xc0] sm:$0xff]  ;;  %v4054_v21 = vmax.f32 %v2975_v4, 0.0  ;;  %v4052_v41 = vmax.f32 %v2990_v15, 0.0 }
  0x40   : > { %968 = vmatprep.subr.mxu0 %v2488_v2  ;;  %1193 = vmatprep.subr.mxu1 %v2488_v2  ;;  %v299_v29 = vmul.f32 %v2679_v26, %v260_v20  ;;  %v4050_v5 = vmax.f32 %v3012_v47, 0.0  ;;  %v263_v20 = vld [vmem:[%s2657_s15 + $0xd8] sm:$0xff]  ;;  %476 = vst [vmem:[#allocation2 + $0x1b0] sm:$0xff] %v4053_v30  ;;  %v580_v30 = vld [vmem:[#allocation2 + $0x2f] sm:$0xff] }
  0x41   : > { %969 = vmatpush2.msra.mxu0 %v793_v34  ;;  %1194 = vmatpush2.msra.mxu1 %v825_v37  ;;  %v790_v34 = vld [vmem:[%s4044_s1 + $0x90] sm:$0xff]  ;;  %471 = vst [vmem:[#allocation2 + $0x168] sm:$0xff] %v4054_v21  ;;  %472 = vst [vmem:[#allocation2 + $0x170] sm:$0xff] %v4052_v41  ;;  %v851_v41 = vld [vmem:[%s4044_s1 + $0x278] sm:$0xff] }
  0x42   : > { %970 = vmatprep.subr.mxu0 %v2488_v2  ;;  %1195 = vmatprep.subr.mxu1 %v2488_v2  ;;  %v822_v37 = vld [vmem:[%s4044_s1 + $0x190] sm:$0xff]  ;;  %474 = vst [vmem:[#allocation2 + $0x190] sm:$0xff] %v4050_v5 }
  0x43   : > { %971 = vmatpush2.msra.mxu0 %v792_v49  ;;  %1196 = vmatpush2.msra.mxu1 %v824_v54  ;;  %v4049_v49 = vmax.f32 %v2998_v27, 0.0  ;;  %v3019_v54 = vadd.f32 %v2685_v28, %v299_v29  ;;  %v788_v29 = vld [vmem:[%s4044_s1 + $0x80] sm:$0xff]  ;;  %v548_v21 = vld [vmem:[#allocation2 + $0x11] sm:$0xff] }
  0x44   : > { %972 = vmatprep.subr.mxu0 %v2488_v2  ;;  %1197 = vmatprep.subr.mxu1 %v2488_v2 }
  0x45   : > { %973 = vmatpush2.msra.mxu0 %v791_v10  ;;  %1198 = vmatpush2.msra.mxu1 %v823_v14  ;;  %v262_v10 = vld [vmem:[%s2657_s15 + $0xd0] sm:$0xff]  ;;  %473 = vst [vmem:[#allocation2 + $0x188] sm:$0xff] %v4049_v49  ;;  %v4051_v14 = vmax.f32 %v3019_v54, 0.0 }
  0x46   : > { %974 = vmatprep.subr.mxu0 %v2488_v2  ;;  %1199 = vmatprep.subr.mxu1 %v2488_v2  ;;  %v301_v17 = vmul.f32 %v2679_v26, %v262_v10  ;;  %v579_v10 = vld [vmem:[#allocation2 + $0x27] sm:$0xff] }
  0x47   : > { %975 = vmatpush2.msra.mxu0 %v790_v34  ;;  %1200 = vmatpush2.msra.mxu1 %v822_v37  ;;  %v302_v34 = vmul.f32 %v2679_v26, %v263_v20  ;;  %v264_v37 = vld [vmem:[%s2657_s15 + $0xe0] sm:$0xff]  ;;  %475 = vst [vmem:[#allocation2 + $0x1a8] sm:$0xff] %v4051_v14 }
  0x48   : > { %976 = vmatprep.subr.mxu0 %v2488_v2  ;;  %1201 = vmatprep.subr.mxu1 %v2488_v2  ;;  %v3057_v49 = vadd.f32 %v2685_v28, %v301_v17  ;;  %v303_v5 = vmul.f32 %v2679_v26, %v264_v37  ;;  %v265_v37 = vld [vmem:[%s2657_s15 + $0xe8] sm:$0xff] }
  0x49   : > { %977 = vmatpush2.msra.mxu0 %v789_v56  ;;  %1202 = vmatpush2.msra.mxu1 %v821_v0  ;;  %v483_v56 = vld [vmem:[#allocation2 + $0x7] sm:$0xff]  ;;  %v3065_v20 = vadd.f32 %v2685_v28, %v302_v34 }
  0x4a   : > { %978 = vmatprep.subr.mxu0 %v2488_v2  ;;  %1203 = vmatprep.subr.mxu1 %v2488_v2  ;;  %v547_v0 = vld [vmem:[#allocation2 + $0x9] sm:$0xff]  ;;  %v4056_v17 = vmax.f32 %v3057_v49, 0.0  ;;  %v3070_v14 = vadd.f32 %v2685_v28, %v303_v5 }
  0x4b   : > { %979 = vmatpush2.msra.mxu0 %v788_v29  ;;  %980 = vmatprep.mubr.f32.mxu0 %v2488_v2  ;;  %v4057_v34 = vmax.f32 %v3065_v20, 0.0  ;;  %v304_v29 = vmul.f32 %v2679_v26, %v265_v37  ;;  %v266_v37 = vld [vmem:[%s2657_s15 + $0xf0] sm:$0xff] }
  0x4c   : > { %1204 = vmatpush2.msra.mxu1 %v820_v48  ;;  %1205 = vmatprep.mubr.f32.mxu1 %v579_v10  ;;  %477 = vst [vmem:[#allocation2 + $0x1c8] sm:$0xff] %v4056_v17  ;;  %v4058_v5 = vmax.f32 %v3070_v14, 0.0  ;;  %v484_v48 = vld [vmem:[#allocation2 + $0xf] sm:$0xff]  ;;  %v581_v17 = vld [vmem:[#allocation2 + $0x47] sm:$0xff] }
  0x4d   : > { %981 = vmatmul.mubr.f32.vlgmr.msra.gmra.mxu0 %v483_v56  ;;  %1206 = vmatmul.mubr.f32.vlgmr.msra.gmra.mxu1 %v547_v0  ;;  %478 = vst [vmem:[#allocation2 + $0x1d0] sm:$0xff] %v4057_v34  ;;  %v3086_v1 = vadd.f32 %v2685_v28, %v304_v29  ;;  %v850_v56 = vld [vmem:[%s4044_s1 + $0x270] sm:$0xff]  ;;  %v305_v0 = vmul.f32 %v2679_v26, %v266_v37  ;;  %v883_v34 = vld [vmem:[%s4044_s1 + $0x378] sm:$0xff] }
  0x4e   : > { %1366 = vmatprep.subr.mxu0 %v2488_v2  ;;  %985 = vmatprep.mubr.f32.mxu0 %v2488_v2  ;;  %479 = vst [vmem:[#allocation2 + $0x1e8] sm:$0xff] %v4058_v5  ;;  %v549_v37 = vld [vmem:[#allocation2 + $0x29] sm:$0xff] }
  0x4f   : > { %1367 = vmatpush1.msra.mxu0 %v851_v41  ;;  %1210 = vmatprep.mubr.f32.mxu1 %v580_v30  ;;  %v375_v29 = vmax.f32 %v3086_v1, 0.0  ;;  %v849_v41 = vld [vmem:[%s4044_s1 + $0x268] sm:$0xff]  ;;  %v344_v5 = vadd.f32 %v2685_v28, %v305_v0  ;;  %v844_v0 = vld [vmem:[%s4044_s1 + $0x240] sm:$0xff] }
  0x50   : > { %1368 = vmatprep.subr.mxu0 %v2488_v2  ;;  %1591 = vmatprep.subr.mxu1 %v2488_v2  ;;  %v884_v1 = vld [vmem:[%s4044_s1 + $0x380] sm:$0xff] }
  0x51   : > { %986 = vmatmul.mubr.f32.gmra.mxu0 %v484_v48  ;;  %1211 = vmatmul.mubr.f32.gmra.mxu1 %v548_v21  ;;  %480 = vst [vmem:[#allocation2 + $0x1f0] sm:$0xff] %v375_v29  ;;  %v267_v48 = vld [vmem:[%s2657_s15 + $0xf8] sm:$0xff]  ;;  %v582_v21 = vld [vmem:[#allocation2 + $0x4f] sm:$0xff]  ;;  %v376_v55 = vmax.f32 %v344_v5, 0.0 }
  0x52   : > { %1369 = vmatpush1.msra.mxu0 %v850_v56  ;;  %990 = vmatprep.mubr.f32.mxu0 %v346_v39  ;;  %v306_v25 = vmul.f32 %v2679_v26, %v267_v48  ;;  %v882_v39 = vld [vmem:[%s4044_s1 + $0x370] sm:$0xff] }
  0x53   : > { %1215 = vmatprep.mubr.f32.mxu1 %v581_v17  ;;  %1370 = vmatprep.subr.mxu0 %v2488_v2  ;;  %481 = vst [vmem:[#allocation2 + $0x208] sm:$0xff] %v376_v55  ;;  %v550_v26 = vld [vmem:[#allocation2 + $0x31] sm:$0xff] }
  0x54   : > { %1371 = vmatpush1.msra.mxu0 %v849_v41  ;;  %1592 = vmatpush1.msra.mxu1 %v883_v34  ;;  %v345_v56 = vadd.f32 %v2685_v28, %v306_v25  ;;  %v847_v55 = vld [vmem:[%s4044_s1 + $0x258] sm:$0xff]  ;;  %v881_v28 = vld [vmem:[%s4044_s1 + $0x368] sm:$0xff]  ;;  %v846_v25 = vld [vmem:[%s4044_s1 + $0x250] sm:$0xff] }
  0x55   : > { %991 = vmatmul.mubr.f32.gmra.mxu0 %v579_v10  ;;  %1216 = vmatmul.mubr.f32.gmra.mxu1 %v549_v37  ;;  %v583_v10 = vld [vmem:[#allocation2 + $0x67] sm:$0xff]  ;;  %v586_v5 = vld [vmem:[#allocation2 + $0x8f] sm:$0xff]  ;;  %v843_v37 = vld [vmem:[%s4044_s1 + $0x238] sm:$0xff] }
  0x56   : > { %995 = vmatprep.mubr.f32.mxu0 %v347_v50  ;;  %1220 = vmatprep.mubr.f32.mxu1 %v582_v21  ;;  %v377_v34 = vmax.f32 %v345_v56, 0.0  ;;  %v584_v50 = vld [vmem:[#allocation2 + $0x6f] sm:$0xff]  ;;  %v587_v41 = vld [vmem:[#allocation2 + $0xa7] sm:$0xff] }
  0x57   : > { %1372 = vmatprep.subr.mxu0 %v2488_v2  ;;  %1593 = vmatprep.subr.mxu1 %v2488_v2  ;;  %v588_v48 = vld [vmem:[#allocation2 + $0xaf] sm:$0xff]  ;;  %v3193_v56 = vld [vmem:[#allocation2] sm:$0xff] }
  0x58   : > { %1373 = vmatpush1.msra.mxu0 %v848_v32  ;;  %1594 = vmatpush1.msra.mxu1 %v882_v39  ;;  %482 = vst [vmem:[#allocation2 + $0x210] sm:$0xff] %v377_v34  ;;  %v589_v32 = vld [vmem:[#allocation2 + $0xc7] sm:$0xff] }
  0x59   : > { %996 = vmatmul.mubr.f32.gmra.mxu0 %v580_v30  ;;  %1221 = vmatmul.mubr.f32.gmra.mxu1 %v550_v26  ;;  %v585_v30 = vld [vmem:[#allocation2 + $0x87] sm:$0xff]  ;;  %v3209_v26 = vld [vmem:[#allocation2 + $0xb1] sm:$0xff] }
  0x5a   : > { %1000 = vmatprep.mubr.f32.mxu0 %v348_v57  ;;  %1225 = vmatprep.mubr.f32.mxu1 %v583_v10  ;;  %v552_v57 = vld [vmem:[#allocation2 + $0x51] sm:$0xff]  ;;  %v841_v39 = vld [vmem:[%s4044_s1 + $0x228] sm:$0xff] }
  0x5b   : > { %1374 = vmatprep.subr.mxu0 %v2488_v2  ;;  %1595 = vmatprep.subr.mxu1 %v2488_v2  ;;  %v3225_v34 = vld [vmem:[#allocation2 + $0xc9] sm:$0xff] }
  0x5c   : > { %1375 = vmatpush1.msra.mxu0 %v847_v55  ;;  %1596 = vmatpush1.msra.mxu1 %v881_v28  ;;  %v3228_v55 = vld [vmem:[#allocation2 + $0xef] sm:$0xff] }
  0x5d   : > { %1001 = vmatmul.mubr.f32.gmra.mxu0 %v581_v17  ;;  %1226 = vmatmul.mubr.f32.gmra.mxu1 %v551_v40  ;;  %v845_v17 = vld [vmem:[%s4044_s1 + $0x248] sm:$0xff]  ;;  %v3241_v28 = vld [vmem:[#allocation2 + $0xd1] sm:$0xff] }
  0x5e   : > { %1005 = vmatprep.mubr.f32.mxu0 %v349_v62  ;;  %1230 = vmatprep.mubr.f32.mxu1 %v584_v50  ;;  %v553_v62 = vld [vmem:[#allocation2 + $0x69] sm:$0xff] }
  0x5f   : > { %1376 = vmatprep.subr.mxu0 %v2488_v2  ;;  %1597 = vmatprep.subr.mxu1 %v2488_v2  ;;  %v3244_v40 = vld [vmem:[#allocation2 + $0x107] sm:$0xff] }
  0x60   : > { %1377 = vmatpush1.msra.mxu0 %v846_v25  ;;  %1598 = vmatpush1.msra.mxu1 %v880_v46  ;;  %v3261_v25 = vld [vmem:[#allocation2 + $0x10f] sm:$0xff] }
  0x61   : > { %1006 = vmatmul.mubr.f32.gmra.mxu0 %v582_v21  ;;  %1231 = vmatmul.mubr.f32.gmra.mxu1 %v552_v57  ;;  %v842_v21 = vld [vmem:[%s4044_s1 + $0x230] sm:$0xff]  ;;  %v3278_v57 = vld [vmem:[#allocation2 + $0x127] sm:$0xff] }
  0x62   : > { %1010 = vmatprep.mubr.f32.mxu0 %v350_v6  ;;  %1235 = vmatprep.mubr.f32.mxu1 %v585_v30  ;;  %v554_v6 = vld [vmem:[#allocation2 + $0x71] sm:$0xff] }
  0x63   : > { %1378 = vmatprep.subr.mxu0 %v2488_v2  ;;  %1599 = vmatprep.subr.mxu1 %v2488_v2  ;;  %v3275_v46 = vld [vmem:[#allocation2 + $0xf1] sm:$0xff] }
  0x64   : > { %1379 = vmatpush1.msra.mxu0 %v845_v17  ;;  %1600 = vmatpush1.msra.mxu1 %v879_v51  ;;  %v3295_v17 = vld [vmem:[#allocation2 + $0x12f] sm:$0xff] }
  0x65   : > { %1011 = vmatmul.mubr.f32.gmra.mxu0 %v583_v10  ;;  %1236 = vmatmul.mubr.f32.gmra.mxu1 %v553_v62  ;;  %v3212_v10 = vld [vmem:[#allocation2 + $0xe7] sm:$0xff]  ;;  %v3309_v51 = vld [vmem:[#allocation2 + $0x111] sm:$0xff] }
  0x66   : > { %1015 = vmatprep.mubr.f32.mxu0 %v351_v7  ;;  %1240 = vmatprep.mubr.f32.mxu1 %v586_v5  ;;  %v555_v7 = vld [vmem:[#allocation2 + $0x89] sm:$0xff] }
  0x67   : > { %1380 = vmatprep.subr.mxu0 %v2488_v2  ;;  %1601 = vmatprep.subr.mxu1 %v2488_v2  ;;  %v3312_v62 = vld [vmem:[#allocation2 + $0x147] sm:$0xff] }
  0x68   : > { %1381 = vmatpush1.msra.mxu0 %v844_v0  ;;  %1602 = vmatpush1.msra.mxu1 %v878_v58  ;;  %v3329_v0 = vld [vmem:[#allocation2 + $0x14f] sm:$0xff]  ;;  %v4061_v58 = vmax.f32 %v2928_v16, 0.0  ;;  %v863_v16 = vld [vmem:[%s4044_s1 + $0x2d8] sm:$0xff] }
  0x69   : > { %1016 = vmatmul.mubr.f32.gmra.mxu0 %v584_v50  ;;  %1241 = vmatmul.mubr.f32.gmra.mxu1 %v554_v6  ;;  %v3258_v50 = vld [vmem:[#allocation2 + $0xe9] sm:$0xff]  ;;  %v3343_v6 = vld [vmem:[#allocation2 + $0x131] sm:$0xff] }
  0x6a   : > { %1020 = vmatprep.mubr.f32.mxu0 %v352_v11  ;;  %1245 = vmatprep.mubr.f32.mxu1 %v587_v41  ;;  %v556_v11 = vld [vmem:[#allocation2 + $0x91] sm:$0xff] }
  0x6b   : > { %1382 = vmatprep.subr.mxu0 %v2488_v2  ;;  %1603 = vmatprep.subr.mxu1 %v2488_v2 }
  0x6c   : > { %1383 = vmatpush1.msra.mxu0 %v843_v37  ;;  %1604 = vmatpush1.msra.mxu1 %v877_v59  ;;  %v897_v37 = vld [vmem:[%s4044_s1 + $0x3e8] sm:$0xff]  ;;  %v4062_v59 = vmax.f32 %v2954_v38, 0.0  ;;  %v862_v38 = vld [vmem:[%s4044_s1 + $0x2d0] sm:$0xff] }
  0x6d   : > { %1021 = vmatmul.mubr.f32.gmra.mxu0 %v585_v30  ;;  %1246 = vmatmul.mubr.f32.gmra.mxu1 %v555_v7  ;;  %v3292_v30 = vld [vmem:[#allocation2 + $0x109] sm:$0xff] }
  0x6e   : > { %1025 = vmatprep.mubr.f32.mxu0 %v353_v18  ;;  %1250 = vmatprep.mubr.f32.mxu1 %v588_v48  ;;  %v3191_v18 = vld [vmem:[#allocation2 + $0xa9] sm:$0xff] }
  0x6f   : > { %1384 = vmatprep.subr.mxu0 %v2488_v2  ;;  %1605 = vmatprep.subr.mxu1 %v2488_v2  ;;  %v3196_v2 = vld [vmem:[#allocation2 + $0xcf] sm:$0xff] }
  0x70   : > { %1385 = vmatpush1.msra.mxu0 %v842_v21  ;;  %1606 = vmatpush1.msra.mxu1 %v876_v63  ;;  %v3360_v7 = vld [vmem:[#allocation2 + $0x149] sm:$0xff]  ;;  %v896_v21 = vld [vmem:[%s4044_s1 + $0x3e0] sm:$0xff]  ;;  %v4063_v63 = vmax.f32 %v2958_v44, 0.0 }
  0x71   : > { %1026 = vmatmul.mubr.f32.gmra.mxu0 %v586_v5  ;;  %1251 = vmatmul.mubr.f32.gmra.mxu1 %v556_v11  ;;  %v3326_v5 = vld [vmem:[#allocation2 + $0x129] sm:$0xff]  ;;  %v3377_v11 = vld [vmem:[#allocation2 + $0x151] sm:$0xff] }
  0x72   : > { %1030 = vmatprep.mubr.f32.mxu0 %v354_v22  ;;  %1255 = vmatprep.mubr.f32.mxu1 %v589_v32  ;;  %v874_v22 = vld [vmem:[%s4044_s1 + $0x330] sm:$0xff]  ;;  %v861_v44 = vld [vmem:[%s4044_s1 + $0x2c8] sm:$0xff] }
  0x73   : > { %1386 = vmatprep.subr.mxu0 %v3193_v56  ;;  %1607 = vmatprep.subr.mxu1 %v3193_v56 }
  0x74   : > { %1387 = vmatpush1.msra.mxu0 %v841_v39  ;;  %1608 = vmatpush1.msra.mxu1 %v875_v8  ;;  %v895_v39 = vld [vmem:[%s4044_s1 + $0x3d8] sm:$0xff]  ;;  %v4064_v8 = vmax.f32 %v2975_v4, 0.0  ;;  %v860_v4 = vld [vmem:[%s4044_s1 + $0x2c0] sm:$0xff] }
  0x75   : > { %1031 = vmatmul.mubr.f32.gmra.mxu0 %v587_v41  ;;  %1256 = vmatmul.mubr.f32.gmra.mxu1 %v3191_v18  ;;  %v3346_v41 = vld [vmem:[#allocation2 + $0x167] sm:$0xff] }
  0x76   : > { %1035 = vmatprep.mubr.f32.mxu0 %v355_v23  ;;  %1260 = vmatprep.mubr.f32.mxu1 %v3196_v2  ;;  %v873_v23 = vld [vmem:[%s4044_s1 + $0x328] sm:$0xff] }
  0x77   : > { %1388 = vmatprep.subr.mxu0 %v3193_v56  ;;  %1609 = vmatprep.subr.mxu1 %v3193_v56 }
  0x78   : > { %1389 = vmatpush1.msra.mxu0 %v840_v12  ;;  %1610 = vmatpush1.msra.mxu1 %v874_v22  ;;  %v3394_v12 = vld [vmem:[#allocation2 + $0x169] sm:$0xff] }
  0x79   : > { %1036 = vmatmul.mubr.f32.gmra.mxu0 %v588_v48  ;;  %1261 = vmatmul.mubr.f32.gmra.mxu1 %v3209_v26  ;;  %v3363_v48 = vld [vmem:[#allocation2 + $0x16f] sm:$0xff] }
  0x7a   : > { %1040 = vmatprep.mubr.f32.mxu0 %v356_v31  ;;  %1265 = vmatprep.mubr.f32.mxu1 %v3212_v10  ;;  %v872_v31 = vld [vmem:[%s4044_s1 + $0x320] sm:$0xff]  ;;  %v3397_v22 = vld [vmem:[#allocation2 + $0x18f] sm:$0xff] }
  0x7b   : > { %1390 = vmatprep.subr.mxu0 %v3193_v56  ;;  %1611 = vmatprep.subr.mxu1 %v3193_v56 }
  0x7c   : > { %1391 = vmatpush1.msra.mxu0 %v839_v13  ;;  %1612 = vmatpush1.msra.mxu1 %v873_v23  ;;  %v894_v13 = vld [vmem:[%s4044_s1 + $0x3d0] sm:$0xff]  ;;  %v4065_v23 = vmax.f32 %v2990_v15, 0.0  ;;  %v859_v15 = vld [vmem:[%s4044_s1 + $0x2b8] sm:$0xff] }
  0x7d   : > { %1041 = vmatmul.mubr.f32.gmra.mxu0 %v589_v32  ;;  %1266 = vmatmul.mubr.f32.gmra.mxu1 %v3225_v34  ;;  %v3380_v32 = vld [vmem:[#allocation2 + $0x187] sm:$0xff] }
  0x7e   : > { %1045 = vmatprep.mubr.f32.mxu0 %v357_v35  ;;  %1270 = vmatprep.mubr.f32.mxu1 %v3228_v55  ;;  %v871_v35 = vld [vmem:[%s4044_s1 + $0x318] sm:$0xff] }
  0x7f   : > { %1392 = vmatprep.subr.mxu0 %v3193_v56  ;;  %1613 = vmatprep.subr.mxu1 %v3193_v56 }
  0x80   : > { %1393 = vmatpush1.msra.mxu0 %v838_v19  ;;  %1614 = vmatpush1.msra.mxu1 %v872_v31  ;;  %v3411_v19 = vld [vmem:[#allocation2 + $0x171] sm:$0xff]  ;;  %v3414_v31 = vld [vmem:[#allocation2 + $0x1a7] sm:$0xff] }
  0x81   : > { %1046 = vmatmul.mubr.f32.gmra.mxu0 %v3196_v2  ;;  %1271 = vmatmul.mubr.f32.gmra.mxu1 %v3241_v28 }
  0x82   : > { %1050 = vmatprep.mubr.f32.mxu0 %v358_v42  ;;  %1275 = vmatprep.mubr.f32.mxu1 %v3244_v40  ;;  %v870_v42 = vld [vmem:[%s4044_s1 + $0x310] sm:$0xff] }
  0x83   : > { %1394 = vmatprep.subr.mxu0 %v3193_v56  ;;  %1615 = vmatprep.subr.mxu1 %v3193_v56 }
  0x84   : > { %1395 = vmatpush1.msra.mxu0 %v837_v24  ;;  %1616 = vmatpush1.msra.mxu1 %v871_v35  ;;  %v893_v24 = vld [vmem:[%s4044_s1 + $0x3c8] sm:$0xff]  ;;  %v4066_v35 = vmax.f32 %v2998_v27, 0.0  ;;  %v858_v27 = vld [vmem:[%s4044_s1 + $0x2b0] sm:$0xff] }
  0x85   : > { %1051 = vmatmul.mubr.f32.gmra.mxu0 %v3212_v10  ;;  %1276 = vmatmul.mubr.f32.gmra.mxu1 %v3258_v50 }
  0x86   : > { %1055 = vmatprep.mubr.f32.mxu0 %v359_v45  ;;  %1280 = vmatprep.mubr.f32.mxu1 %v3261_v25  ;;  %v869_v45 = vld [vmem:[%s4044_s1 + $0x308] sm:$0xff] }
  0x87   : > { %1396 = vmatprep.subr.mxu0 %v3193_v56  ;;  %1617 = vmatprep.subr.mxu1 %v3193_v56 }
  0x88   : > { %1397 = vmatpush1.msra.mxu0 %v836_v33  ;;  %1618 = vmatpush1.msra.mxu1 %v870_v42  ;;  %v3428_v33 = vld [vmem:[#allocation2 + $0x189] sm:$0xff] }
  0x89   : > { %1056 = vmatmul.mubr.f32.gmra.mxu0 %v3228_v55  ;;  %1281 = vmatmul.mubr.f32.gmra.mxu1 %v3275_v46  ;;  %v3431_v42 = vld [vmem:[#allocation2 + $0x1af] sm:$0xff] }
  0x8a   : > { %1060 = vmatprep.mubr.f32.mxu0 %v360_v52  ;;  %1285 = vmatprep.mubr.f32.mxu1 %v3278_v57  ;;  %v868_v52 = vld [vmem:[%s4044_s1 + $0x300] sm:$0xff] }
  0x8b   : > { %1398 = vmatprep.subr.mxu0 %v3193_v56  ;;  %1619 = vmatprep.subr.mxu1 %v3193_v56 }
  0x8c   : > { %1399 = vmatpush2.msra.mxu0 %v867_v36  ;;  %1620 = vmatpush1.msra.mxu1 %v869_v45  ;;  %v892_v36 = vld [vmem:[%s4044_s1 + $0x3c0] sm:$0xff]  ;;  %v4067_v45 = vmax.f32 %v3012_v47, 0.0  ;;  %v857_v47 = vld [vmem:[%s4044_s1 + $0x2a8] sm:$0xff] }
  0x8d   : > { %1061 = vmatmul.mubr.f32.gmra.mxu0 %v3244_v40  ;;  %1286 = vmatmul.mubr.f32.gmra.mxu1 %v3292_v30 }
  0x8e   : > { %1065 = vmatprep.mubr.f32.mxu0 %v361_v60  ;;  %1290 = vmatprep.mubr.f32.mxu1 %v3295_v17  ;;  %v899_v60 = vld [vmem:[%s4044_s1 + $0x3f8] sm:$0xff] }
  0x8f   : > { %1400 = vmatprep.subr.mxu0 %v3193_v56  ;;  %1621 = vmatprep.subr.mxu1 %v3193_v56 }
  0x90   : > { %1401 = vmatpush2.msra.mxu0 %v866_v43  ;;  %1622 = vmatpush1.msra.mxu1 %v868_v52  ;;  %v3445_v43 = vld [vmem:[#allocation2 + $0x191] sm:$0xff]  ;;  %v3448_v52 = vld [vmem:[#allocation2 + $0x1c7] sm:$0xff] }
  0x91   : > { %1066 = vmatmul.mubr.f32.gmra.mxu0 %v3261_v25  ;;  %1291 = vmatmul.mubr.f32.gmra.mxu1 %v3309_v51 }
  0x92   : > { %1070 = vmatprep.mubr.f32.mxu0 %v362_v3  ;;  %1295 = vmatprep.mubr.f32.mxu1 %v3312_v62  ;;  %v898_v3 = vld [vmem:[%s4044_s1 + $0x3f0] sm:$0xff] }
  0x93   : > { %1402 = vmatprep.subr.mxu0 %v3193_v56  ;;  %1623 = vmatprep.subr.mxu1 %v3193_v56 }
  0x94   : > { %1403 = vmatpush2.msra.mxu0 %v865_v53  ;;  %1624 = vmatpush2.msra.mxu1 %v899_v60  ;;  %v891_v53 = vld [vmem:[%s4044_s1 + $0x3b8] sm:$0xff]  ;;  %v4068_v60 = vmax.f32 %v3019_v54, 0.0  ;;  %v856_v54 = vld [vmem:[%s4044_s1 + $0x2a0] sm:$0xff] }
  0x95   : > { %1071 = vmatmul.mubr.f32.gmra.mxu0 %v3278_v57  ;;  %1296 = vmatmul.mubr.f32.gmra.mxu1 %v3326_v5 }
  0x96   : > { %1075 = vmatprep.mubr.f32.mxu0 %v4061_v58  ;;  %1300 = vmatprep.mubr.f32.mxu1 %v3329_v0  ;;  %v890_v58 = vld [vmem:[%s4044_s1 + $0x3b0] sm:$0xff] }
  0x97   : > { %1404 = vmatprep.subr.mxu0 %v3193_v56  ;;  %1625 = vmatprep.subr.mxu1 %v3193_v56 }
  0x98   : > { %1405 = vmatpush2.msra.mxu0 %v864_v61  ;;  %1626 = vmatpush2.msra.mxu1 %v898_v3  ;;  %v3462_v61 = vld [vmem:[#allocation2 + $0x1a9] sm:$0xff] }
  0x99   : > { %1076 = vmatmul.mubr.f32.gmra.mxu0 %v3295_v17  ;;  %1301 = vmatmul.mubr.f32.gmra.mxu1 %v3343_v6  ;;  %v3465_v3 = vld [vmem:[#allocation2 + $0x1cf] sm:$0xff] }
  0x9a   : > { %1080 = vmatprep.mubr.f32.mxu0 %v4062_v59  ;;  %1305 = vmatprep.mubr.f32.mxu1 %v3346_v41  ;;  %v3482_v59 = vld [vmem:[#allocation2 + $0x1e7] sm:$0xff] }
  0x9b   : > { %1406 = vmatprep.subr.mxu0 %v3193_v56  ;;  %1627 = vmatprep.subr.mxu1 %v3193_v56 }
  0x9c   : > { %1407 = vmatpush2.msra.mxu0 %v863_v16  ;;  %1628 = vmatpush2.msra.mxu1 %v897_v37  ;;  %v4069_v16 = vmax.f32 %v3033_v9, 0.0  ;;  %v3479_v37 = vld [vmem:[#allocation2 + $0x1b1] sm:$0xff] }
  0x9d   : > { %1081 = vmatmul.mubr.f32.gmra.mxu0 %v3312_v62  ;;  %1306 = vmatmul.mubr.f32.gmra.mxu1 %v3360_v7  ;;  %v855_v9 = vld [vmem:[%s4044_s1 + $0x298] sm:$0xff] }
  0x9e   : > { %1085 = vmatprep.mubr.f32.mxu0 %v4063_v63  ;;  %1310 = vmatprep.mubr.f32.mxu1 %v3363_v48  ;;  %v3496_v63 = vld [vmem:[#allocation2 + $0x1c9] sm:$0xff] }
  0x9f   : > { %1408 = vmatprep.subr.mxu0 %v3193_v56  ;;  %1629 = vmatprep.subr.mxu1 %v3193_v56 }
  0xa0   : > { %1409 = vmatpush2.msra.mxu0 %v862_v38  ;;  %1630 = vmatpush2.msra.mxu1 %v896_v21  ;;  %v889_v38 = vld [vmem:[%s4044_s1 + $0x3a8] sm:$0xff]  ;;  %v4070_v21 = vmax.f32 %v3057_v49, 0.0  ;;  %v854_v49 = vld [vmem:[%s4044_s1 + $0x290] sm:$0xff] }
  0xa1   : > { %1086 = vmatmul.mubr.f32.gmra.mxu0 %v3329_v0  ;;  %1311 = vmatmul.mubr.f32.gmra.mxu1 %v3377_v11 }
  0xa2   : > { %1090 = vmatprep.mubr.f32.mxu0 %v4064_v8  ;;  %1315 = vmatprep.mubr.f32.mxu1 %v3380_v32  ;;  %v4071_v8 = vmax.f32 %v3065_v20, 0.0  ;;  %v853_v20 = vld [vmem:[%s4044_s1 + $0x288] sm:$0xff] }
  0xa3   : > { %1410 = vmatprep.subr.mxu0 %v3193_v56  ;;  %1631 = vmatprep.subr.mxu1 %v3193_v56 }
  0xa4   : > { %1411 = vmatpush2.msra.mxu0 %v861_v44  ;;  %1632 = vmatpush2.msra.mxu1 %v895_v39  ;;  %v3499_v44 = vld [vmem:[#allocation2 + $0x1ef] sm:$0xff]  ;;  %v888_v39 = vld [vmem:[%s4044_s1 + $0x3a0] sm:$0xff] }
  0xa5   : > { %1091 = vmatmul.mubr.f32.gmra.mxu0 %v3346_v41  ;;  %1316 = vmatmul.mubr.f32.gmra.mxu1 %v3394_v12 }
  0xa6   : > { %1095 = vmatprep.mubr.f32.mxu0 %v4065_v23  ;;  %1320 = vmatprep.mubr.f32.mxu1 %v3397_v22  ;;  %v887_v23 = vld [vmem:[%s4044_s1 + $0x398] sm:$0xff] }
  0xa7   : > { %1412 = vmatprep.subr.mxu0 %v3193_v56  ;;  %1633 = vmatprep.subr.mxu1 %v3193_v56 }
  0xa8   : > { %1413 = vmatpush2.msra.mxu0 %v860_v4  ;;  %1634 = vmatpush2.msra.mxu1 %v894_v13  ;;  %v3513_v4 = vld [vmem:[#allocation2 + $0x1d1] sm:$0xff]  ;;  %v3517_v13 = vld [vmem:[#allocation2 + $0x207] sm:$0xff] }
  0xa9   : > { %1096 = vmatmul.mubr.f32.gmra.mxu0 %v3363_v48  ;;  %1321 = vmatmul.mubr.f32.gmra.mxu1 %v3411_v19 }
  0xaa   : > { %1100 = vmatprep.mubr.f32.mxu0 %v4066_v35  ;;  %1325 = vmatprep.mubr.f32.mxu1 %v3414_v31  ;;  %v3534_v35 = vld [vmem:[#allocation2 + $0x20f] sm:$0xff] }
  0xab   : > { %1414 = vmatprep.subr.mxu0 %v3193_v56  ;;  %1635 = vmatprep.subr.mxu1 %v3193_v56 }
  0xac   : > { %1415 = vmatpush2.msra.mxu0 %v859_v15  ;;  %1636 = vmatpush2.msra.mxu1 %v893_v24  ;;  %v4072_v15 = vmax.f32 %v3070_v14, 0.0  ;;  %v3530_v24 = vld [vmem:[#allocation2 + $0x1e9] sm:$0xff]  ;;  %v3544_v14 = vld [vmem:[#allocation2 + $0x1f1] sm:$0xff] }
  0xad   : > { %1101 = vmatmul.mubr.f32.gmra.mxu0 %v3380_v32  ;;  %1326 = vmatmul.mubr.f32.gmra.mxu1 %v3428_v33 }
  0xae   : > { %1105 = vmatprep.mubr.f32.mxu0 %v4067_v45  ;;  %1330 = vmatprep.mubr.f32.mxu1 %v3431_v42  ;;  %v885_v45 = vld [vmem:[%s4044_s1 + $0x388] sm:$0xff] }
  0xaf   : > { %1416 = vmatprep.subr.mxu0 %v3193_v56  ;;  %1637 = vmatprep.subr.mxu1 %v3193_v56 }
  0xb0   : > { %1417 = vmatpush2.msra.mxu0 %v858_v27  ;;  %1638 = vmatpush2.msra.mxu1 %v892_v36  ;;  %v886_v27 = vld [vmem:[%s4044_s1 + $0x390] sm:$0xff]  ;;  %v852_v36 = vld [vmem:[%s4044_s1 + $0x280] sm:$0xff] }
  0xb1   : > { %1106 = vmatmul.mubr.f32.gmra.mxu0 %v3397_v22  ;;  %1331 = vmatmul.mubr.f32.gmra.mxu1 %v3445_v43 }
  0xb2   : > { %1110 = vmatprep.mubr.f32.mxu0 %v4068_v60  ;;  %1335 = vmatprep.mubr.f32.mxu1 %v3448_v52  ;;  %v676_v60 = vld [vmem:[#allocation2 + $0x47] sm:$0xff] }
  0xb3   : > { %1418 = vmatprep.subr.mxu0 %v3193_v56  ;;  %1639 = vmatprep.subr.mxu1 %v3193_v56 }
  0xb4   : > { %1419 = vmatpush2.msra.mxu0 %v857_v47  ;;  %1640 = vmatpush2.msra.mxu1 %v891_v53  ;;  %v643_v47 = vld [vmem:[#allocation2 + $0x29] sm:$0xff] }
  0xb5   : > { %1111 = vmatmul.mubr.f32.gmra.mxu0 %v3414_v31  ;;  %1336 = vmatmul.mubr.f32.gmra.mxu1 %v3462_v61  ;;  %v611_v53 = vld [vmem:[#allocation2 + $0x28] sm:$0xff] }
  0xb6   : > { %1115 = vmatprep.mubr.f32.mxu0 %v4069_v16  ;;  %1340 = vmatprep.mubr.f32.mxu1 %v3465_v3  ;;  %v709_v16 = vld [vmem:[#allocation2 + $0x50] sm:$0xff] }
  0xb7   : > { %1420 = vmatprep.subr.mxu0 %v3193_v56  ;;  %1641 = vmatprep.subr.mxu1 %v3193_v56 }
  0xb8   : > { %1421 = vmatpush2.msra.mxu0 %v856_v54  ;;  %1642 = vmatpush2.msra.mxu1 %v890_v58  ;;  %v915_v54 = vld [vmem:[%s4044_s1 + $0x478] sm:$0xff] }
  0xb9   : > { %1116 = vmatmul.mubr.f32.gmra.mxu0 %v3431_v42  ;;  %1341 = vmatmul.mubr.f32.gmra.mxu1 %v3479_v37  ;;  %v644_v58 = vld [vmem:[#allocation2 + $0x31] sm:$0xff] }
  0xba   : > { %1120 = vmatprep.mubr.f32.mxu0 %v4070_v21  ;;  %1345 = vmatprep.mubr.f32.mxu1 %v3482_v59  ;;  %v677_v21 = vld [vmem:[#allocation2 + $0x4f] sm:$0xff] }
  0xbb   : > { %1422 = vmatprep.subr.mxu0 %v3193_v56  ;;  %1643 = vmatprep.subr.mxu1 %v3193_v56 }
  0xbc   : > { %1423 = vmatpush2.msra.mxu0 %v855_v9  ;;  %1644 = vmatpush2.msra.mxu1 %v889_v38  ;;  %v914_v9 = vld [vmem:[%s4044_s1 + $0x470] sm:$0xff] }
  0xbd   : > { %1121 = vmatmul.mubr.f32.gmra.mxu0 %v3448_v52  ;;  %1346 = vmatmul.mubr.f32.gmra.mxu1 %v3496_v63  ;;  %v612_v38 = vld [vmem:[#allocation2 + $0x30] sm:$0xff] }
  0xbe   : > { %1125 = vmatprep.mubr.f32.mxu0 %v4071_v8  ;;  %1350 = vmatprep.mubr.f32.mxu1 %v3499_v44  ;;  %v678_v8 = vld [vmem:[#allocation2 + $0x67] sm:$0xff] }
  0xbf   : > { %1424 = vmatprep.subr.mxu0 %v3193_v56  ;;  %1645 = vmatprep.subr.mxu1 %v3193_v56 }
  0xc0   : > { %1425 = vmatpush2.msra.mxu0 %v854_v49  ;;  %1646 = vmatpush2.msra.mxu1 %v888_v39  ;;  %v710_v49 = vld [vmem:[#allocation2 + $0x68] sm:$0xff] }
  0xc1   : > { %1126 = vmatmul.mubr.f32.gmra.mxu0 %v3465_v3  ;;  %1351 = vmatmul.mubr.f32.gmra.mxu1 %v3513_v4  ;;  %v913_v39 = vld [vmem:[%s4044_s1 + $0x468] sm:$0xff] }
  0xc2   : > { %1130 = vmatprep.mubr.f32.mxu0 %v4072_v15  ;;  %1355 = vmatprep.mubr.f32.mxu1 %v3517_v13  ;;  %v912_v15 = vld [vmem:[%s4044_s1 + $0x460] sm:$0xff] }
  0xc3   : > { %1426 = vmatprep.subr.mxu0 %v3193_v56  ;;  %1647 = vmatprep.subr.mxu1 %v3193_v56 }
  0xc4   : > { %1427 = vmatpush2.msra.mxu0 %v853_v20  ;;  %1648 = vmatpush2.msra.mxu1 %v887_v23  ;;  %v3573_v20 = vld [vmem:[#allocation2 + $0x51] sm:$0xff] }
  0xc5   : > { %1131 = vmatmul.mubr.f32.gmra.mxu0 %v3482_v59  ;;  %1356 = vmatmul.mubr.f32.gmra.mxu1 %v3530_v24  ;;  %v711_v23 = vld [vmem:[#allocation2 + $0x70] sm:$0xff] }
  0xc6   : > { %1649 = vmatprep.subr.mxu1 %v3193_v56  ;;  %1135 = vmatprep.mubr.f32.mxu0 %v375_v29  ;;  %v708_v29 = vld [vmem:[#allocation2 + $0x48] sm:$0xff] }
  0xc7   : > { %1360 = vmatprep.mubr.f32.mxu1 %v3534_v35  ;;  %1650 = vmatpush2.msra.mxu1 %v886_v27  ;;  %v679_v27 = vld [vmem:[#allocation2 + $0x6f] sm:$0xff] }
  0xc8   : > { %1428 = vmatprep.subr.mxu0 %v3193_v56  ;;  %1651 = vmatprep.subr.mxu1 %v3193_v56 }
  0xc9   : > { %1136 = vmatmul.mubr.f32.gmra.mxu0 %v3499_v44  ;;  %1361 = vmatmul.mubr.f32.gmra.mxu1 %v3544_v14 }
  0xca   : > { %1429 = vmatpush2.msra.mxu0 %v852_v36  ;;  %1652 = vmatpush2.msra.mxu1 %v885_v45  ;;  %v3579_v36 = vld [vmem:[#allocation2 + $0x69] sm:$0xff] }
  0xcb   : > { %1653 = vmatprep.subr.mxu1 %v3193_v56  ;;  %1430 = vmatprep.mubr.f32.mxu0 %v643_v47  ;;  %v3567_v56 = vld [vmem:[#allocation2 + $0x49] sm:$0xff]  ;;  %v911_v47 = vld [vmem:[%s4044_s1 + $0x458] sm:$0xff] }
  0xcc   : > { %1654 = vmatpush2.msra.mxu1 %v884_v1  ;;  %1655 = vmatprep.mubr.f32.mxu1 %v708_v29  ;;  %v712_v45 = vld [vmem:[#allocation2 + $0x88] sm:$0xff] }
  0xcd   : > { %1431 = vmatmul.mubr.f32.vlgmr.msra.gmra.mxu0 %v611_v53  ;;  %1656 = vmatmul.mubr.f32.vlgmr.msra.gmra.mxu1 %v676_v60  ;;  %v680_v1 = vld [vmem:[#allocation2 + $0x87] sm:$0xff]  ;;  %v713_v53 = vld [vmem:[#allocation2 + $0x90] sm:$0xff] }
  0xce   : > { %2336 = vmatprep.subr.mxu0 %v915_v54  ;;  %1435 = vmatprep.mubr.f32.mxu0 %v644_v58  ;;  %v910_v60 = vld [vmem:[%s4044_s1 + $0x450] sm:$0xff] }
  0xcf   : > { %2337 = vmatpush3.msra.mxu0 %v915_v54  ;;  %1660 = vmatprep.mubr.f32.mxu1 %v709_v16  ;;  %v3591_v58 = vld [vmem:[#allocation2 + $0x89] sm:$0xff] }
  0xd0   : > { %2338 = vmatprep.subr.mxu0 %v914_v9  ;;  %2416 = vmatprep.subr.mxu1 %v915_v54 }
  0xd1   : > { %1436 = vmatmul.mubr.f32.gmra.mxu0 %v612_v38  ;;  %1661 = vmatmul.mubr.f32.gmra.mxu1 %v677_v21  ;;  %v682_v38 = vld [vmem:[#allocation2 + $0xa7] sm:$0xff]  ;;  %v3597_v21 = vld [vmem:[#allocation2 + $0x91] sm:$0xff] }
  0xd2   : > { %1440 = vmatprep.mubr.f32.mxu0 %v3567_v56  ;;  %1665 = vmatprep.mubr.f32.mxu1 %v710_v49 }
  0xd3   : > { %2339 = vmatpush3.msra.mxu0 %v914_v9  ;;  %2432 = vmatpush3.msra.mxu1 %v915_v54  ;;  %v681_v54 = vld [vmem:[#allocation2 + $0x8f] sm:$0xff] }
  0xd4   : > { %2340 = vmatprep.subr.mxu0 %v913_v39  ;;  %2417 = vmatprep.subr.mxu1 %v914_v9 }
  0xd5   : > { %1441 = vmatmul.mubr.f32.gmra.mxu0 %v708_v29  ;;  %1666 = vmatmul.mubr.f32.gmra.mxu1 %v678_v8  ;;  %v3585_v29 = vld [vmem:[#allocation2 + $0x71] sm:$0xff] }
  0xd6   : > { %1445 = vmatprep.mubr.f32.mxu0 %v3573_v20  ;;  %1670 = vmatprep.mubr.f32.mxu1 %v711_v23  ;;  %v683_v8 = vld [vmem:[#allocation2 + $0xaf] sm:$0xff] }
  0xd7   : > { %2341 = vmatpush3.msra.mxu0 %v913_v39  ;;  %2433 = vmatpush3.msra.mxu1 %v914_v9  ;;  %v909_v9 = vld [vmem:[%s4044_s1 + $0x448] sm:$0xff] }
  0xd8   : > { %2342 = vmatprep.subr.mxu0 %v912_v15  ;;  %2418 = vmatprep.subr.mxu1 %v913_v39 }
  0xd9   : > { %1446 = vmatmul.mubr.f32.gmra.mxu0 %v709_v16  ;;  %1671 = vmatmul.mubr.f32.gmra.mxu1 %v679_v27  ;;  %v714_v16 = vld [vmem:[#allocation2 + $0xa8] sm:$0xff] }
  0xda   : > { %1450 = vmatprep.mubr.f32.mxu0 %v3579_v36  ;;  %1675 = vmatprep.mubr.f32.mxu1 %v712_v45  ;;  %v684_v27 = vld [vmem:[#allocation2 + $0xc7] sm:$0xff] }
  0xdb   : > { %2343 = vmatpush3.msra.mxu0 %v912_v15  ;;  %2434 = vmatpush3.msra.mxu1 %v913_v39  ;;  %v908_v39 = vld [vmem:[%s4044_s1 + $0x440] sm:$0xff] }
  0xdc   : > { %2344 = vmatprep.subr.mxu0 %v911_v47  ;;  %2419 = vmatprep.subr.mxu1 %v912_v15 }
  0xdd   : > { %1451 = vmatmul.mubr.f32.gmra.mxu0 %v710_v49  ;;  %1676 = vmatmul.mubr.f32.gmra.mxu1 %v680_v1  ;;  %v715_v49 = vld [vmem:[#allocation2 + $0xb0] sm:$0xff]  ;;  %v2459_v1 = vld [vmem:[#allocation2 + $0xe8] sm:$0xff] }
  0xde   : > { %1455 = vmatprep.mubr.f32.mxu0 %v3585_v29  ;;  %1680 = vmatprep.mubr.f32.mxu1 %v713_v53 }
  0xdf   : > { %2345 = vmatpush3.msra.mxu0 %v911_v47  ;;  %2435 = vmatpush3.msra.mxu1 %v912_v15  ;;  %v907_v15 = vld [vmem:[%s4044_s1 + $0x438] sm:$0xff] }
  0xe0   : > { %2346 = vmatprep.subr.mxu0 %v910_v60  ;;  %2420 = vmatprep.subr.mxu1 %v911_v47 }
  0xe1   : > { %1456 = vmatmul.mubr.f32.gmra.mxu0 %v711_v23  ;;  %1681 = vmatmul.mubr.f32.gmra.mxu1 %v681_v54  ;;  %v716_v23 = vld [vmem:[#allocation2 + $0xc8] sm:$0xff]  ;;  %v624_v54 = vld [vmem:[#allocation2 + $0xf0] sm:$0xff] }
  0xe2   : > { %1460 = vmatprep.mubr.f32.mxu0 %v3591_v58  ;;  %1685 = vmatprep.mubr.f32.mxu1 %v714_v16 }
  0xe3   : > { %2347 = vmatpush3.msra.mxu0 %v910_v60  ;;  %2436 = vmatpush3.msra.mxu1 %v911_v47  ;;  %v2458_v47 = vld [vmem:[#allocation2 + $0xd0] sm:$0xff] }
  0xe4   : > { %2348 = vmatprep.subr.mxu0 %v909_v9  ;;  %2421 = vmatprep.subr.mxu1 %v910_v60 }
  0xe5   : > { %1461 = vmatmul.mubr.f32.gmra.mxu0 %v712_v45  ;;  %1686 = vmatmul.mubr.f32.gmra.mxu1 %v682_v38  ;;  %v906_v45 = vld [vmem:[%s4044_s1 + $0x430] sm:$0xff] }
  0xe6   : > { %1465 = vmatprep.mubr.f32.mxu0 %v3597_v21  ;;  %1690 = vmatprep.mubr.f32.mxu1 %v715_v49 }
  0xe7   : > { %2349 = vmatpush3.msra.mxu0 %v909_v9  ;;  %2437 = vmatpush3.msra.mxu1 %v910_v60  ;;  %v623_v60 = vld [vmem:[#allocation2 + $0xe8] sm:$0xff] }
  0xe8   : > { %2350 = vmatprep.subr.mxu0 %v908_v39  ;;  %2422 = vmatprep.subr.mxu1 %v909_v9 }
  0xe9   : > { %1466 = vmatmul.mubr.f32.gmra.mxu0 %v713_v53  ;;  %1691 = vmatmul.mubr.f32.gmra.mxu1 %v683_v8  ;;  %v622_v53 = vld [vmem:[#allocation2 + $0xd0] sm:$0xff]  ;;  %v2467_v8 = vld [vmem:[#allocation2 + $0x168] sm:$0xff] }
  0xea   : > { %1470 = vmatprep.mubr.f32.mxu0 %v3191_v18  ;;  %1695 = vmatprep.mubr.f32.mxu1 %v716_v23  ;;  %v905_v18 = vld [vmem:[%s4044_s1 + $0x428] sm:$0xff] }
  0xeb   : > { %2351 = vmatpush3.msra.mxu0 %v908_v39  ;;  %2438 = vmatpush3.msra.mxu1 %v909_v9  ;;  %v2466_v9 = vld [vmem:[#allocation2 + $0x150] sm:$0xff] }
  0xec   : > { %2352 = vmatprep.subr.mxu0 %v907_v15  ;;  %2423 = vmatprep.subr.mxu1 %v908_v39 }
  0xed   : > { %1471 = vmatmul.mubr.f32.gmra.mxu0 %v714_v16  ;;  %1696 = vmatmul.mubr.f32.gmra.mxu1 %v684_v27 }
  0xee   : > { %1475 = vmatprep.mubr.f32.mxu0 %v3209_v26  ;;  %1700 = vmatprep.mubr.f32.mxu1 %v2458_v47  ;;  %v904_v26 = vld [vmem:[%s4044_s1 + $0x420] sm:$0xff] }
  0xef   : > { %2353 = vmatpush3.msra.mxu0 %v907_v15  ;;  %2439 = vmatpush3.msra.mxu1 %v908_v39 }
  0xf0   : > { %2354 = vmatprep.subr.mxu0 %v906_v45  ;;  %2424 = vmatprep.subr.mxu1 %v907_v15 }
  0xf1   : > { %1476 = vmatmul.mubr.f32.gmra.mxu0 %v715_v49  ;;  %1701 = vmatmul.mubr.f32.gmra.mxu1 %v3196_v2  ;;  %v2460_v2 = vld [vmem:[#allocation2 + $0xf0] sm:$0xff] }
  0xf2   : > { %1480 = vmatprep.mubr.f32.mxu0 %v3225_v34  ;;  %1705 = vmatprep.mubr.f32.mxu1 %v2459_v1  ;;  %v2461_v34 = vld [vmem:[#allocation2 + $0x108] sm:$0xff] }
  0xf3   : > { %2355 = vmatpush3.msra.mxu0 %v906_v45  ;;  %2440 = vmatpush3.msra.mxu1 %v907_v15 }
  0xf4   : > { %2356 = vmatprep.subr.mxu0 %v905_v18  ;;  %2425 = vmatprep.subr.mxu1 %v906_v45 }
  0xf5   : > { %1481 = vmatmul.mubr.f32.gmra.mxu0 %v716_v23  ;;  %1706 = vmatmul.mubr.f32.gmra.mxu1 %v3212_v10  ;;  %v903_v10 = vld [vmem:[%s4044_s1 + $0x418] sm:$0xff] }
  0xf6   : > { %1485 = vmatprep.mubr.f32.mxu0 %v3241_v28  ;;  %1710 = vmatprep.mubr.f32.mxu1 %v2460_v2  ;;  %v2462_v28 = vld [vmem:[#allocation2 + $0x110] sm:$0xff] }
  0xf7   : > { %2357 = vmatpush3.msra.mxu0 %v905_v18  ;;  %2441 = vmatpush3.msra.mxu1 %v906_v45  ;;  %v2468_v45 = vld [vmem:[#allocation2 + $0x170] sm:$0xff] }
  0xf8   : > { %2358 = vmatprep.subr.mxu0 %v904_v26  ;;  %2426 = vmatprep.subr.mxu1 %v905_v18 }
  0xf9   : > { %1486 = vmatmul.mubr.f32.gmra.mxu0 %v622_v53  ;;  %1711 = vmatmul.mubr.f32.gmra.mxu1 %v3228_v55  ;;  %v902_v55 = vld [vmem:[%s4044_s1 + $0x410] sm:$0xff] }
  0xfa   : > { %1490 = vmatprep.mubr.f32.mxu0 %v3258_v50  ;;  %1715 = vmatprep.mubr.f32.mxu1 %v2461_v34  ;;  %v2463_v50 = vld [vmem:[#allocation2 + $0x128] sm:$0xff] }
  0xfb   : > { %2359 = vmatpush3.msra.mxu0 %v904_v26  ;;  %2442 = vmatpush3.msra.mxu1 %v905_v18 }
  0xfc   : > { %2360 = vmatprep.subr.mxu0 %v903_v10  ;;  %2427 = vmatprep.subr.mxu1 %v904_v26 }
  0xfd   : > { %1491 = vmatmul.mubr.f32.gmra.mxu0 %v623_v60  ;;  %1716 = vmatmul.mubr.f32.gmra.mxu1 %v3244_v40  ;;  %v901_v40 = vld [vmem:[%s4044_s1 + $0x408] sm:$0xff] }
  0xfe   : > { %1495 = vmatprep.mubr.f32.mxu0 %v3275_v46  ;;  %1720 = vmatprep.mubr.f32.mxu1 %v2462_v28  ;;  %v900_v46 = vld [vmem:[%s4044_s1 + $0x400] sm:$0xff] }
  0xff   : > { %2361 = vmatpush3.msra.mxu0 %v903_v10  ;;  %2443 = vmatpush3.msra.mxu1 %v904_v26  ;;  %v2469_v26 = vld [vmem:[#allocation2 + $0x188] sm:$0xff] }
 0x100   : > { %2362 = vmatprep.subr.mxu0 %v902_v55  ;;  %2428 = vmatprep.subr.mxu1 %v903_v10 }
 0x101   : > { %1496 = vmatmul.mubr.f32.gmra.mxu0 %v624_v54  ;;  %1721 = vmatmul.mubr.f32.gmra.mxu1 %v3261_v25  ;;  %v2464_v25 = vld [vmem:[#allocation2 + $0x130] sm:$0xff]  ;;  %v2471_v54 = vld [vmem:[#allocation2 + $0x1a8] sm:$0xff] }
 0x102   : > { %1500 = vmatprep.mubr.f32.mxu0 %v3292_v30  ;;  %1725 = vmatprep.mubr.f32.mxu1 %v2463_v50  ;;  %v2465_v30 = vld [vmem:[#allocation2 + $0x148] sm:$0xff] }
 0x103   : > { %2363 = vmatpush3.msra.mxu0 %v902_v55  ;;  %2444 = vmatpush3.msra.mxu1 %v903_v10 }
 0x104   : > { %2364 = vmatprep.subr.mxu0 %v901_v40  ;;  %2429 = vmatprep.subr.mxu1 %v902_v55 }
 0x105   : > { %1501 = vmatmul.mubr.f32.gmra.mxu0 %v2461_v34  ;;  %1726 = vmatmul.mubr.f32.gmra.mxu1 %v3278_v57  ;;  %v2470_v34 = vld [vmem:[#allocation2 + $0x190] sm:$0xff] }
 0x106   : > { %1505 = vmatprep.mubr.f32.mxu0 %v3309_v51  ;;  %1730 = vmatprep.mubr.f32.mxu1 %v2464_v25 }
 0x107   : > { %2365 = vmatpush3.msra.mxu0 %v901_v40  ;;  %2445 = vmatpush3.msra.mxu1 %v902_v55 }
 0x108   : > { %2366 = vmatprep.subr.mxu0 %v900_v46  ;;  %2430 = vmatprep.subr.mxu1 %v901_v40 }
 0x109   : > { %1506 = vmatmul.mubr.f32.gmra.mxu0 %v2462_v28  ;;  %1731 = vmatmul.mubr.f32.gmra.mxu1 %v3295_v17 }
 0x10a   : > { %1510 = vmatprep.mubr.f32.mxu0 %v3326_v5  ;;  %1735 = vmatprep.mubr.f32.mxu1 %v2465_v30 }
 0x10b   : > { %2367 = vmatpush3.msra.mxu0 %v900_v46  ;;  %2446 = vmatpush3.msra.mxu1 %v901_v40 }
 0x10c   : > { %2431 = vmatprep.subr.mxu1 %v900_v46 }
 0x10d   : > { %v982_v57 = vpop.f32.mrf.mxu0  ;;  %v1207_v16 = vpop.f32.mrf.mxu1  ;;  %1511 = vmatmul.mubr.f32.gmra.mxu0 %v2463_v50  ;;  %1736 = vmatmul.mubr.f32.gmra.mxu1 %v3312_v62 }
 0x10e   : > { %v3644_v51 = vadd.f32 %v1207_v16, %v982_v57  ;;  %1515 = vmatprep.mubr.f32.mxu0 %v3343_v6  ;;  %1740 = vmatprep.mubr.f32.mxu1 %v2466_v9 }
 0x10f   : > { %v984_v38 = vpop.f32.mrf.mxu0  ;;  %v1209_v17 = vpop.f32.mrf.mxu1  ;;  %2447 = vmatpush3.msra.mxu1 %v900_v46 }
 0x111   : > { %v987_v5 = vpop.f32.mrf.mxu0  ;;  %v1212_v49 = vpop.f32.mrf.mxu1  ;;  %1516 = vmatmul.mubr.f32.gmra.mxu0 %v2464_v25  ;;  %1741 = vmatmul.mubr.f32.gmra.mxu1 %v3329_v0  ;;  %v2472_v25 = vld [vmem:[#allocation2 + $0x1b0] sm:$0xff] }
 0x112   : > { %v3648_v39 = vadd.f32 %v1212_v49, %v987_v5  ;;  %1520 = vmatprep.mubr.f32.mxu0 %v3360_v7  ;;  %1745 = vmatprep.mubr.f32.mxu1 %v2467_v8  ;;  %v2474_v49 = vld [vmem:[#allocation2 + $0x1d0] sm:$0xff] }
 0x113   : > { %v989_v62 = vpop.f32.mrf.mxu0  ;;  %v1214_v23 = vpop.f32.mrf.mxu1 }
 0x115   : > { %v992_v15 = vpop.f32.mrf.mxu0  ;;  %v1217_v6 = vpop.f32.mrf.mxu1  ;;  %1521 = vmatmul.mubr.f32.gmra.mxu0 %v2465_v30  ;;  %1746 = vmatmul.mubr.f32.gmra.mxu1 %v3346_v41 }
 0x116   : > { %v3652_v27 = vadd.f32 %v1217_v6, %v992_v15  ;;  %1525 = vmatprep.mubr.f32.mxu0 %v3377_v11  ;;  %1750 = vmatprep.mubr.f32.mxu1 %v2468_v45  ;;  %v2475_v15 = vld [vmem:[#allocation2 + $0x1e8] sm:$0xff] }
 0x117   : > { %v994_v0 = vpop.f32.mrf.mxu0  ;;  %v1219_v47 = vpop.f32.mrf.mxu1 }
 0x118   : > { %v2476_v47 = vld [vmem:[#allocation2 + $0x1f0] sm:$0xff] }
 0x119   : > { %v997_v18 = vpop.f32.mrf.mxu0  ;;  %v1222_v1 = vpop.f32.mrf.mxu1  ;;  %1526 = vmatmul.mubr.f32.gmra.mxu0 %v2466_v9  ;;  %1751 = vmatmul.mubr.f32.gmra.mxu1 %v3363_v48  ;;  %v2473_v9 = vld [vmem:[#allocation2 + $0x1c8] sm:$0xff] }
 0x11a   : > { %v3656_v7 = vadd.f32 %v1222_v1, %v997_v18  ;;  %1530 = vmatprep.mubr.f32.mxu0 %v3394_v12  ;;  %1755 = vmatprep.mubr.f32.mxu1 %v2469_v26 }
 0x11b   : > { %v999_v41 = vpop.f32.mrf.mxu0  ;;  %v1224_v2 = vpop.f32.mrf.mxu1 }
 0x11c   : > { %v2477_v41 = vld [vmem:[#allocation2 + $0x208] sm:$0xff] }
 0x11d   : > { %v1002_v53 = vpop.f32.mrf.mxu0  ;;  %v1227_v10 = vpop.f32.mrf.mxu1  ;;  %1531 = vmatmul.mubr.f32.gmra.mxu0 %v2467_v8  ;;  %1756 = vmatmul.mubr.f32.gmra.mxu1 %v3380_v32 }
 0x11e   : > { %v3660_v11 = vadd.f32 %v1227_v10, %v1002_v53  ;;  %1535 = vmatprep.mubr.f32.mxu0 %v3411_v19  ;;  %1760 = vmatprep.mubr.f32.mxu1 %v2470_v34 }
 0x11f   : > { %v1004_v48 = vpop.f32.mrf.mxu0  ;;  %v1229_v60 = vpop.f32.mrf.mxu1 }
 0x120   : > { %v3695_v60 = vld [vmem:[#allocation2 + $0x209] sm:$0xff] }
 0x121   : > { %v1007_v55 = vpop.f32.mrf.mxu0  ;;  %v1232_v28 = vpop.f32.mrf.mxu1  ;;  %1536 = vmatmul.mubr.f32.gmra.mxu0 %v2468_v45  ;;  %1761 = vmatmul.mubr.f32.gmra.mxu1 %v3397_v22 }
 0x122   : > { %v3664_v12 = vadd.f32 %v1232_v28, %v1007_v55  ;;  %1540 = vmatprep.mubr.f32.mxu0 %v3428_v33  ;;  %1765 = vmatprep.mubr.f32.mxu1 %v2471_v54 }
 0x123   : > { %v1009_v32 = vpop.f32.mrf.mxu0  ;;  %v1234_v40 = vpop.f32.mrf.mxu1 }
 0x125   : > { %v1012_v50 = vpop.f32.mrf.mxu0  ;;  %v1237_v46 = vpop.f32.mrf.mxu1  ;;  %1541 = vmatmul.mubr.f32.gmra.mxu0 %v2469_v26  ;;  %1766 = vmatmul.mubr.f32.gmra.mxu1 %v3414_v31 }
 0x126   : > { %v3668_v19 = vadd.f32 %v1237_v46, %v1012_v50  ;;  %1545 = vmatprep.mubr.f32.mxu0 %v3445_v43  ;;  %1770 = vmatprep.mubr.f32.mxu1 %v2472_v25  ;;  %v3701_v50 = vld [vmem:[#allocation2 + $0x211] sm:$0xff] }
 0x127   : > { %v1014_v22 = vpop.f32.mrf.mxu0  ;;  %v1239_v30 = vpop.f32.mrf.mxu1 }
 0x129   : > { %v1017_v57 = vpop.f32.mrf.mxu0  ;;  %v1242_v16 = vpop.f32.mrf.mxu1  ;;  %1546 = vmatmul.mubr.f32.gmra.mxu0 %v2470_v34  ;;  %1771 = vmatmul.mubr.f32.gmra.mxu1 %v3431_v42  ;;  %v2478_v34 = vld [vmem:[#allocation2 + $0x210] sm:$0xff] }
 0x12a   : > { %v3672_v33 = vadd.f32 %v1242_v16, %v1017_v57  ;;  %1550 = vmatprep.mubr.f32.mxu0 %v3462_v61  ;;  %1775 = vmatprep.mubr.f32.mxu1 %v2473_v9  ;;  %v756_v16 = vld [vmem:[#allocation2 + $0x149] sm:$0xff] }
 0x12b   : > { %v1019_v31 = vpop.f32.mrf.mxu0  ;;  %v1244_v38 = vpop.f32.mrf.mxu1 }
 0x12d   : > { %v1022_v17 = vpop.f32.mrf.mxu0  ;;  %v1247_v5 = vpop.f32.mrf.mxu1  ;;  %1551 = vmatmul.mubr.f32.gmra.mxu0 %v2471_v54  ;;  %1776 = vmatmul.mubr.f32.gmra.mxu1 %v3448_v52  ;;  %v706_v54 = vld [vmem:[#allocation2 + $0x227] sm:$0xff] }
 0x12e   : > { %v3676_v43 = vadd.f32 %v1247_v5, %v1022_v17  ;;  %1555 = vmatprep.mubr.f32.mxu0 %v3479_v37  ;;  %1780 = vmatprep.mubr.f32.mxu1 %v2474_v49  ;;  %v757_v17 = vld [vmem:[#allocation2 + $0x151] sm:$0xff] }
 0x12f   : > { %v1024_v42 = vpop.f32.mrf.mxu0  ;;  %v1249_v8 = vpop.f32.mrf.mxu1 }
 0x130   : > { %v758_v42 = vld [vmem:[#allocation2 + $0x169] sm:$0xff] }
 0x131   : > { %v1027_v62 = vpop.f32.mrf.mxu0  ;;  %v1252_v23 = vpop.f32.mrf.mxu1  ;;  %1556 = vmatmul.mubr.f32.gmra.mxu0 %v2472_v25  ;;  %1781 = vmatmul.mubr.f32.gmra.mxu1 %v3465_v3 }
 0x132   : > { %v3680_v61 = vadd.f32 %v1252_v23, %v1027_v62  ;;  %1560 = vmatprep.mubr.f32.mxu0 %v3496_v63  ;;  %1785 = vmatprep.mubr.f32.mxu1 %v2475_v15 }
 0x133   : > { %v1029_v52 = vpop.f32.mrf.mxu0  ;;  %v1254_v6 = vpop.f32.mrf.mxu1 }
 0x135   : > { %v1032_v45 = vpop.f32.mrf.mxu0  ;;  %v1257_v0 = vpop.f32.mrf.mxu1  ;;  %1561 = vmatmul.mubr.f32.gmra.mxu0 %v2473_v9  ;;  %1786 = vmatmul.mubr.f32.gmra.mxu1 %v3482_v59 }
 0x136   : > { %v3684_v37 = vadd.f32 %v1257_v0, %v1032_v45  ;;  %1565 = vmatprep.mubr.f32.mxu0 %v3513_v4  ;;  %1790 = vmatprep.mubr.f32.mxu1 %v2476_v47  ;;  %v760_v45 = vld [vmem:[#allocation2 + $0x189] sm:$0xff] }
 0x137   : > { %v1034_v3 = vpop.f32.mrf.mxu0  ;;  %v1259_v18 = vpop.f32.mrf.mxu1 }
 0x139   : > { %v1037_v1 = vpop.f32.mrf.mxu0  ;;  %v1262_v26 = vpop.f32.mrf.mxu1  ;;  %1566 = vmatmul.mubr.f32.gmra.mxu0 %v2474_v49  ;;  %1791 = vmatmul.mubr.f32.gmra.mxu1 %v3499_v44 }
 0x13a   : > { %v3688_v63 = vadd.f32 %v1262_v26, %v1037_v1  ;;  %1570 = vmatprep.mubr.f32.mxu0 %v3530_v24  ;;  %1795 = vmatprep.mubr.f32.mxu1 %v2477_v41  ;;  %v746_v1 = vld [vmem:[#allocation2 + $0xa9] sm:$0xff] }
 0x13b   : > { %v1039_v59 = vpop.f32.mrf.mxu0  ;;  %v1264_v2 = vpop.f32.mrf.mxu1 }
 0x13c   : > { %v763_v2 = vld [vmem:[#allocation2 + $0x1b1] sm:$0xff] }
 0x13d   : > { %v1042_v53 = vpop.f32.mrf.mxu0  ;;  %v1267_v10 = vpop.f32.mrf.mxu1  ;;  %1571 = vmatmul.mubr.f32.gmra.mxu0 %v2475_v15  ;;  %1796 = vmatmul.mubr.f32.gmra.mxu1 %v3517_v13  ;;  %v2479_v13 = vld [vmem:[#allocation2] sm:$0xff]  ;;  %v759_v15 = vld [vmem:[#allocation2 + $0x171] sm:$0xff] }
 0x13e   : > { %v3692_v4 = vadd.f32 %v1267_v10, %v1042_v53  ;;  %1575 = vmatprep.mubr.f32.mxu0 %v3544_v14  ;;  %1800 = vmatprep.mubr.f32.mxu1 %v2478_v34 }
 0x13f   : > { %v1044_v44 = vpop.f32.mrf.mxu0  ;;  %v1269_v48 = vpop.f32.mrf.mxu1 }
 0x141   : > { %v1047_v24 = vpop.f32.mrf.mxu0  ;;  %v1272_v55 = vpop.f32.mrf.mxu1  ;;  %1576 = vmatmul.mubr.f32.gmra.mxu0 %v2476_v47  ;;  %1801 = vmatmul.mubr.f32.gmra.mxu1 %v3534_v35  ;;  %v707_v35 = vld [vmem:[#allocation2 + $0x22f] sm:$0xff] }
 0x142   : > { %v3698_v28 = vadd.f32 %v1272_v55, %v1047_v24  ;;  %1580 = vmatprep.mubr.f32.mxu0 %v3695_v60  ;;  %1805 = vmatprep.mubr.f32.mxu1 %v2479_v13  ;;  %v765_v55 = vld [vmem:[#allocation2 + $0x1d1] sm:$0xff] }
 0x143   : > { %v1049_v32 = vpop.f32.mrf.mxu0  ;;  %v1274_v40 = vpop.f32.mrf.mxu1 }
 0x144   : > { %v750_v32 = vld [vmem:[#allocation2 + $0xe9] sm:$0xff] }
 0x145   : > { %v1052_v46 = vpop.f32.mrf.mxu0  ;;  %v1277_v25 = vpop.f32.mrf.mxu1  ;;  %1581 = vmatmul.mubr.f32.gmra.mxu0 %v2477_v41  ;;  %1806 = vmatmul.mubr.f32.gmra.mxu1 %v706_v54  ;;  %v766_v40 = vld [vmem:[#allocation2 + $0x1e9] sm:$0xff] }
 0x146   : > { %v3703_v22 = vadd.f32 %v1277_v25, %v1052_v46  ;;  %1585 = vmatprep.mubr.f32.mxu0 %v3701_v50  ;;  %1810 = vmatprep.mubr.f32.mxu1 %v2479_v13 }
 0x147   : > { %v1054_v30 = vpop.f32.mrf.mxu0  ;;  %v1279_v57 = vpop.f32.mrf.mxu1 }
 0x148   : > { %v751_v30 = vld [vmem:[#allocation2 + $0xf1] sm:$0xff] }
 0x149   : > { %v1057_v9 = vpop.f32.mrf.mxu0  ;;  %v1282_v31 = vpop.f32.mrf.mxu1  ;;  %1586 = vmatmul.mubr.f32.gmra.mxu0 %v2478_v34  ;;  %1811 = vmatmul.mubr.f32.gmra.mxu1 %v707_v35  ;;  %v764_v34 = vld [vmem:[#allocation2 + $0x1c9] sm:$0xff] }
 0x14a   : > { %v3706_v38 = vadd.f32 %v1282_v31, %v1057_v9  ;;  %2368 = vmatprep.mubr.f32.mxu0 %v3567_v56  ;;  %2392 = vmatprep.mubr.f32.mxu1 %v756_v16  ;;  %v752_v9 = vld [vmem:[#allocation2 + $0x109] sm:$0xff] }
 0x14b   : > { %v1059_v5 = vpop.f32.mrf.mxu0  ;;  %v1284_v49 = vpop.f32.mrf.mxu1 }
 0x14c   : > { %v753_v49 = vld [vmem:[#allocation2 + $0x111] sm:$0xff] }
 0x14d   : > { %v1062_v8 = vpop.f32.mrf.mxu0  ;;  %v1287_v62 = vpop.f32.mrf.mxu1  ;;  %2369 = vmatmul.mubr.f32.vlgmr.msra.gmra.mxu0 %v3573_v20  ;;  %2393 = vmatmul.mubr.f32.vlgmr.msra.gmra.mxu1 %v757_v17  ;;  %v761_v20 = vld [vmem:[#allocation2 + $0x191] sm:$0xff] }
 0x14e   : > { %v3710_v23 = vadd.f32 %v1287_v62, %v1062_v8  ;;  %2371 = vmatprep.mubr.f32.mxu0 %v3579_v36  ;;  %2395 = vmatprep.mubr.f32.mxu1 %v758_v42  ;;  %v762_v36 = vld [vmem:[#allocation2 + $0x1a9] sm:$0xff] }
 0x14f   : > { %v1064_v52 = vpop.f32.mrf.mxu0  ;;  %v1289_v6 = vpop.f32.mrf.mxu1  ;;  %v754_v62 = vld [vmem:[#allocation2 + $0x129] sm:$0xff] }
 0x151   : > { %v1067_v56 = vpop.f32.mrf.mxu0  ;;  %v1292_v0 = vpop.f32.mrf.mxu1  ;;  %2372 = vmatmul.mubr.f32.gmra.mxu0 %v3585_v29  ;;  %2396 = vmatmul.mubr.f32.gmra.mxu1 %v759_v15  ;;  %v747_v29 = vld [vmem:[#allocation2 + $0xb1] sm:$0xff]  ;;  %v770_v15 = vld [vmem:[#allocation2 + $0x229] sm:$0xff] }
 0x152   : > { %v3714_v47 = vadd.f32 %v1292_v0, %v1067_v56  ;;  %2374 = vmatprep.mubr.f32.mxu0 %v3591_v58  ;;  %2398 = vmatprep.mubr.f32.mxu1 %v760_v45  ;;  %v748_v58 = vld [vmem:[#allocation2 + $0xc9] sm:$0xff]  ;;  %v771_v56 = vld [vmem:[#allocation2 + $0x231] sm:$0xff] }
 0x153   : > { %v1069_v3 = vpop.f32.mrf.mxu0  ;;  %v1294_v18 = vpop.f32.mrf.mxu1 }
 0x155   : > { %v1072_v26 = vpop.f32.mrf.mxu0  ;;  %v1297_v41 = vpop.f32.mrf.mxu1  ;;  %2375 = vmatmul.mubr.f32.gmra.mxu0 %v3597_v21  ;;  %2399 = vmatmul.mubr.f32.gmra.mxu1 %v761_v20  ;;  %v749_v21 = vld [vmem:[#allocation2 + $0xd1] sm:$0xff] }
 0x156   : > { %v3718_v59 = vadd.f32 %v1297_v41, %v1072_v26  ;;  %2377 = vmatprep.mubr.f32.mxu0 %v746_v1  ;;  %2401 = vmatprep.mubr.f32.mxu1 %v762_v36 }
 0x157   : > { %v1074_v53 = vpop.f32.mrf.mxu0  ;;  %v1299_v10 = vpop.f32.mrf.mxu1 }
 0x159   : > { %v1077_v44 = vpop.f32.mrf.mxu0  ;;  %v1302_v48 = vpop.f32.mrf.mxu1  ;;  %2378 = vmatmul.mubr.f32.gmra.mxu0 %v747_v29  ;;  %2402 = vmatmul.mubr.f32.gmra.mxu1 %v763_v2 }
 0x15a   : > { %v3720_v24 = vadd.f32 %v1302_v48, %v1077_v44  ;;  %2380 = vmatprep.mubr.f32.mxu0 %v748_v58  ;;  %2404 = vmatprep.mubr.f32.mxu1 %v764_v34 }
 0x15b   : > { %v1079_v13 = vpop.f32.mrf.mxu0  ;;  %v1304_v54 = vpop.f32.mrf.mxu1 }
 0x15d   : > { %v1082_v46 = vpop.f32.mrf.mxu0  ;;  %v1307_v25 = vpop.f32.mrf.mxu1  ;;  %2381 = vmatmul.mubr.f32.gmra.mxu0 %v749_v21  ;;  %2405 = vmatmul.mubr.f32.gmra.mxu1 %v765_v55 }
 0x15e   : > { %v3722_v35 = vadd.f32 %v1307_v25, %v1082_v46  ;;  %2383 = vmatprep.mubr.f32.mxu0 %v750_v32  ;;  %2407 = vmatprep.mubr.f32.mxu1 %v766_v40 }
 0x15f   : > { %v1084_v57 = vpop.f32.mrf.mxu0  ;;  %v1309_v16 = vpop.f32.mrf.mxu1 }
 0x161   : > { %v1087_v31 = vpop.f32.mrf.mxu0  ;;  %v1312_v17 = vpop.f32.mrf.mxu1  ;;  %2384 = vmatmul.mubr.f32.gmra.mxu0 %v751_v30  ;;  %2408 = vmatmul.mubr.f32.gmra.mxu1 %v3544_v14  ;;  %v755_v14 = vld [vmem:[#allocation2 + $0x131] sm:$0xff] }
 0x162   : > { %v3725_v5 = vadd.f32 %v1312_v17, %v1087_v31  ;;  %2386 = vmatprep.mubr.f32.mxu0 %v752_v9  ;;  %2410 = vmatprep.mubr.f32.mxu1 %v3695_v60 }
 0x163   : > { %v1089_v42 = vpop.f32.mrf.mxu0  ;;  %v1314_v8 = vpop.f32.mrf.mxu1 }
 0x165   : > { %v1092_v52 = vpop.f32.mrf.mxu0  ;;  %v1317_v6 = vpop.f32.mrf.mxu1  ;;  %2387 = vmatmul.mubr.f32.gmra.mxu0 %v753_v49  ;;  %2411 = vmatmul.mubr.f32.gmra.mxu1 %v3701_v50 }
 0x166   : > { %v3729_v45 = vadd.f32 %v1317_v6, %v1092_v52  ;;  %2389 = vmatprep.mubr.f32.mxu0 %v754_v62  ;;  %2413 = vmatprep.mubr.f32.mxu1 %v770_v15 }
 0x167   : > { %v1094_v0 = vpop.f32.mrf.mxu0  ;;  %v1319_v20 = vpop.f32.mrf.mxu1 }
 0x169   : > { %v1097_v3 = vpop.f32.mrf.mxu0  ;;  %v1322_v60 = vpop.f32.mrf.mxu1  ;;  %2390 = vmatmul.mubr.f32.gmra.mxu0 %v755_v14  ;;  %2414 = vmatmul.mubr.f32.gmra.mxu1 %v771_v56 }
 0x16a   : > { %v3731_v18 = vadd.f32 %v1322_v60, %v1097_v3 }
 0x16b   : > { %v1099_v1 = vpop.f32.mrf.mxu0  ;;  %v1324_v36 = vpop.f32.mrf.mxu1 }
 0x16d   : > { %v1102_v26 = vpop.f32.mrf.mxu0  ;;  %v1327_v41 = vpop.f32.mrf.mxu1 }
 0x16e   : > { %v3733_v29 = vadd.f32 %v1327_v41, %v1102_v26 }
 0x16f   : > { %v1104_v50 = vpop.f32.mrf.mxu0  ;;  %v1329_v2 = vpop.f32.mrf.mxu1 }
 0x171   : > { %v1107_v53 = vpop.f32.mrf.mxu0  ;;  %v1332_v10 = vpop.f32.mrf.mxu1 }
 0x172   : > { %v3735_v58 = vadd.f32 %v1332_v10, %v1107_v53 }
 0x173   : > { %v1109_v34 = vpop.f32.mrf.mxu0  ;;  %v1334_v44 = vpop.f32.mrf.mxu1 }
 0x175   : > { %v1112_v48 = vpop.f32.mrf.mxu0  ;;  %v1337_v21 = vpop.f32.mrf.mxu1 }
 0x176   : > { %v3737_v55 = vadd.f32 %v1337_v21, %v1112_v48 }
 0x177   : > { %v1114_v13 = vpop.f32.mrf.mxu0  ;;  %v1339_v54 = vpop.f32.mrf.mxu1 }
 0x179   : > { %v1117_v32 = vpop.f32.mrf.mxu0  ;;  %v1342_v40 = vpop.f32.mrf.mxu1 }
 0x17a   : > { %v3739_v46 = vadd.f32 %v1342_v40, %v1117_v32 }
 0x17b   : > { %v1119_v25 = vpop.f32.mrf.mxu0  ;;  %v1344_v30 = vpop.f32.mrf.mxu1 }
 0x17d   : > { %v1122_v57 = vpop.f32.mrf.mxu0  ;;  %v1347_v16 = vpop.f32.mrf.mxu1 }
 0x17e   : > { %v3741_v9 = vadd.f32 %v1347_v16, %v1122_v57 }
 0x17f   : > { %v1124_v31 = vpop.f32.mrf.mxu0  ;;  %v1349_v17 = vpop.f32.mrf.mxu1 }
 0x181   : > { %v1127_v49 = vpop.f32.mrf.mxu0  ;;  %v1352_v42 = vpop.f32.mrf.mxu1 }
 0x182   : > { %v3743_v8 = vadd.f32 %v1352_v42, %v1127_v49 }
 0x183   : > { %v1129_v62 = vpop.f32.mrf.mxu0  ;;  %v1354_v15 = vpop.f32.mrf.mxu1 }
 0x185   : > { %v1132_v52 = vpop.f32.mrf.mxu0  ;;  %v1357_v6 = vpop.f32.mrf.mxu1 }
 0x186   : > { %v3745_v14 = vadd.f32 %v1357_v6, %v1132_v52 }
 0x187   : > { %v1134_v56 = vpop.f32.mrf.mxu0  ;;  %v1359_v0 = vpop.f32.mrf.mxu1 }
 0x188   : > { %4073 = vst [vmem:[#allocation3_spill] sm:$0xff] %v3745_v14 }
 0x189   : > { %v1137_v20 = vpop.f32.mrf.mxu0  ;;  %v1362_v3 = vpop.f32.mrf.mxu1 }
 0x18a   : > { %v3747_v60 = vadd.f32 %v1362_v3, %v1137_v20 }
 0x18b   : > { %v1139_v1 = vpop.f32.mrf.mxu0  ;;  %v1364_v36 = vpop.f32.mrf.mxu1 }
 0x18c   : > { %4074 = vst [vmem:[#allocation4_spill] sm:$0xff] %v3747_v60 }
 0x18d   : > { %v1432_v26 = vpop.f32.mrf.mxu0  ;;  %v1657_v41 = vpop.f32.mrf.mxu1 }
 0x18e   : > { %v1433_v50 = vadd.f32 %v1432_v26, %v3644_v51 }
 0x18f   : > { %v1434_v2 = vpop.f32.mrf.mxu0  ;;  %v1659_v53 = vpop.f32.mrf.mxu1 }
 0x190   : > { %v3750_v10 = vadd.f32 %v1657_v41, %v1433_v50 }
 0x191   : > { %v1437_v34 = vpop.f32.mrf.mxu0  ;;  %v1662_v44 = vpop.f32.mrf.mxu1 }
 0x192   : > { %v1438_v48 = vadd.f32 %v1437_v34, %v3648_v39 }
 0x193   : > { %v1439_v21 = vpop.f32.mrf.mxu0  ;;  %v1664_v13 = vpop.f32.mrf.mxu1 }
 0x194   : > { %v3753_v54 = vadd.f32 %v1662_v44, %v1438_v48 }
 0x195   : > { %v1442_v32 = vpop.f32.mrf.mxu0  ;;  %v1667_v40 = vpop.f32.mrf.mxu1 }
 0x196   : > { %v1443_v25 = vadd.f32 %v1442_v32, %v3652_v27 }
 0x197   : > { %v1444_v30 = vpop.f32.mrf.mxu0  ;;  %v1669_v57 = vpop.f32.mrf.mxu1 }
 0x198   : > { %v3756_v16 = vadd.f32 %v1667_v40, %v1443_v25 }
 0x199   : > { %v1447_v51 = vpop.f32.mrf.mxu0  ;;  %v1672_v31 = vpop.f32.mrf.mxu1 }
 0x19a   : > { %v1448_v17 = vadd.f32 %v1447_v51, %v3656_v7 }
 0x19b   : > { %v1449_v49 = vpop.f32.mrf.mxu0  ;;  %v1674_v42 = vpop.f32.mrf.mxu1 }
 0x19c   : > { %v3759_v62 = vadd.f32 %v1672_v31, %v1448_v17 }
 0x19d   : > { %v1452_v39 = vpop.f32.mrf.mxu0  ;;  %v1677_v15 = vpop.f32.mrf.mxu1 }
 0x19e   : > { %v1453_v52 = vadd.f32 %v1452_v39, %v3660_v11 }
 0x19f   : > { %v1454_v6 = vpop.f32.mrf.mxu0  ;;  %v1679_v56 = vpop.f32.mrf.mxu1 }
 0x1a0   : > { %v3762_v0 = vadd.f32 %v1677_v15, %v1453_v52 }
 0x1a1   : > { %v1457_v27 = vpop.f32.mrf.mxu0  ;;  %v1682_v20 = vpop.f32.mrf.mxu1 }
 0x1a2   : > { %v1458_v3 = vadd.f32 %v1457_v27, %v3664_v12 }
 0x1a3   : > { %v1459_v1 = vpop.f32.mrf.mxu0  ;;  %v1684_v36 = vpop.f32.mrf.mxu1 }
 0x1a4   : > { %v3765_v26 = vadd.f32 %v1682_v20, %v1458_v3 }
 0x1a5   : > { %v1462_v7 = vpop.f32.mrf.mxu0  ;;  %v1687_v41 = vpop.f32.mrf.mxu1 }
 0x1a6   : > { %v1463_v50 = vadd.f32 %v1462_v7, %v3668_v19 }
 0x1a7   : > { %v1464_v2 = vpop.f32.mrf.mxu0  ;;  %v1689_v53 = vpop.f32.mrf.mxu1 }
 0x1a8   : > { %v3768_v34 = vadd.f32 %v1687_v41, %v1463_v50 }
 0x1a9   : > { %v1467_v11 = vpop.f32.mrf.mxu0  ;;  %v1692_v44 = vpop.f32.mrf.mxu1 }
 0x1aa   : > { %v1468_v48 = vadd.f32 %v1467_v11, %v3672_v33 }
 0x1ab   : > { %v1469_v21 = vpop.f32.mrf.mxu0  ;;  %v1694_v13 = vpop.f32.mrf.mxu1 }
 0x1ac   : > { %v3771_v32 = vadd.f32 %v1692_v44, %v1468_v48 }
 0x1ad   : > { %v1472_v12 = vpop.f32.mrf.mxu0  ;;  %v1697_v40 = vpop.f32.mrf.mxu1 }
 0x1ae   : > { %v1473_v25 = vadd.f32 %v1472_v12, %v3676_v43 }
 0x1af   : > { %v1474_v30 = vpop.f32.mrf.mxu0  ;;  %v1699_v57 = vpop.f32.mrf.mxu1 }
 0x1b0   : > { %v3774_v51 = vadd.f32 %v1697_v40, %v1473_v25 }
 0x1b1   : > { %v1477_v19 = vpop.f32.mrf.mxu0  ;;  %v1702_v31 = vpop.f32.mrf.mxu1 }
 0x1b2   : > { %v1478_v17 = vadd.f32 %v1477_v19, %v3680_v61 }
 0x1b3   : > { %v1479_v49 = vpop.f32.mrf.mxu0  ;;  %v1704_v42 = vpop.f32.mrf.mxu1 }
 0x1b4   : > { %v3777_v39 = vadd.f32 %v1702_v31, %v1478_v17 }
 0x1b5   : > { %v1482_v33 = vpop.f32.mrf.mxu0  ;;  %v1707_v15 = vpop.f32.mrf.mxu1 }
 0x1b6   : > { %v1483_v52 = vadd.f32 %v1482_v33, %v3684_v37 }
 0x1b7   : > { %v1484_v6 = vpop.f32.mrf.mxu0  ;;  %v1709_v56 = vpop.f32.mrf.mxu1 }
 0x1b8   : > { %v3780_v27 = vadd.f32 %v1707_v15, %v1483_v52 }
 0x1b9   : > { %v1487_v43 = vpop.f32.mrf.mxu0  ;;  %v1712_v20 = vpop.f32.mrf.mxu1 }
 0x1ba   : > { %v1488_v3 = vadd.f32 %v1487_v43, %v3688_v63 }
 0x1bb   : > { %v1489_v1 = vpop.f32.mrf.mxu0  ;;  %v1714_v36 = vpop.f32.mrf.mxu1 }
 0x1bc   : > { %v3783_v7 = vadd.f32 %v1712_v20, %v1488_v3 }
 0x1bd   : > { %v1492_v61 = vpop.f32.mrf.mxu0  ;;  %v1717_v41 = vpop.f32.mrf.mxu1 }
 0x1be   : > { %v1493_v50 = vadd.f32 %v1492_v61, %v3692_v4 }
 0x1bf   : > { %v1494_v2 = vpop.f32.mrf.mxu0  ;;  %v1719_v53 = vpop.f32.mrf.mxu1 }
 0x1c0   : > { %v3786_v11 = vadd.f32 %v1717_v41, %v1493_v50 }
 0x1c1   : > { %v1497_v37 = vpop.f32.mrf.mxu0  ;;  %v1722_v44 = vpop.f32.mrf.mxu1 }
 0x1c2   : > { %4075 = vst [vmem:[#allocation5_spill] sm:$0xff] %v3786_v11  ;;  %v1498_v48 = vadd.f32 %v1497_v37, %v3698_v28 }
 0x1c3   : > { %v1499_v21 = vpop.f32.mrf.mxu0  ;;  %v1724_v13 = vpop.f32.mrf.mxu1 }
 0x1c4   : > { %v3789_v12 = vadd.f32 %v1722_v44, %v1498_v48 }
 0x1c5   : > { %v1502_v63 = vpop.f32.mrf.mxu0  ;;  %v1727_v40 = vpop.f32.mrf.mxu1 }
 0x1c6   : > { %4076 = vst [vmem:[#allocation6_spill] sm:$0xff] %v3789_v12  ;;  %v1503_v25 = vadd.f32 %v1502_v63, %v3703_v22 }
 0x1c7   : > { %v1504_v30 = vpop.f32.mrf.mxu0  ;;  %v1729_v57 = vpop.f32.mrf.mxu1 }
 0x1c8   : > { %v3792_v19 = vadd.f32 %v1727_v40, %v1503_v25 }
 0x1c9   : > { %v1507_v4 = vpop.f32.mrf.mxu0  ;;  %v1732_v31 = vpop.f32.mrf.mxu1 }
 0x1ca   : > { %4077 = vst [vmem:[#allocation7_spill] sm:$0xff] %v3792_v19  ;;  %v1508_v17 = vadd.f32 %v1507_v4, %v3706_v38 }
 0x1cb   : > { %v1509_v49 = vpop.f32.mrf.mxu0  ;;  %v1734_v42 = vpop.f32.mrf.mxu1 }
 0x1cc   : > { %v3795_v33 = vadd.f32 %v1732_v31, %v1508_v17 }
 0x1cd   : > { %v1512_v28 = vpop.f32.mrf.mxu0  ;;  %v1737_v15 = vpop.f32.mrf.mxu1 }
 0x1ce   : > { %4078 = vst [vmem:[#allocation8_spill] sm:$0xff] %v3795_v33  ;;  %v1513_v52 = vadd.f32 %v1512_v28, %v3710_v23 }
 0x1cf   : > { %v1514_v6 = vpop.f32.mrf.mxu0  ;;  %v1739_v56 = vpop.f32.mrf.mxu1 }
 0x1d0   : > { %v3798_v43 = vadd.f32 %v1737_v15, %v1513_v52 }
 0x1d1   : > { %v1517_v22 = vpop.f32.mrf.mxu0  ;;  %v1742_v20 = vpop.f32.mrf.mxu1 }
 0x1d3   : > { %v1519_v3 = vpop.f32.mrf.mxu0  ;;  %v1744_v1 = vpop.f32.mrf.mxu1 }
 0x1d5   : > { %v1522_v36 = vpop.f32.mrf.mxu0  ;;  %v3800_v61 = vpop.f32.mrf.mxu1 }
 0x1d6   : > { %v1523_v60 = vadd.f32 %v1522_v36, %v3718_v59 }
 0x1d7   : > { %v1524_v38 = vpop.f32.mrf.mxu0  ;;  %v1749_v41 = vpop.f32.mrf.mxu1 }
 0x1d9   : > { %v1527_v50 = vpop.f32.mrf.mxu0  ;;  %v3802_v2 = vpop.f32.mrf.mxu1 }
 0x1db   : > { %v1529_v53 = vpop.f32.mrf.mxu0  ;;  %v1754_v37 = vpop.f32.mrf.mxu1 }
 0x1dd   : > { %v3804_v44 = vpop.f32.mrf.mxu0  ;;  %v3806_v23 = vpop.f32.mrf.mxu1 }
 0x1df   : > { %v1534_v48 = vpop.f32.mrf.mxu0  ;;  %v1759_v21 = vpop.f32.mrf.mxu1 }
 0x1e1   : > { %v1537_v13 = vpop.f32.mrf.mxu0  ;;  %v3808_v63 = vpop.f32.mrf.mxu1 }
 0x1e3   : > { %v1539_v40 = vpop.f32.mrf.mxu0  ;;  %v1764_v25 = vpop.f32.mrf.mxu1 }
 0x1e5   : > { %v3810_v30 = vpop.f32.mrf.mxu0  ;;  %v3812_v57 = vpop.f32.mrf.mxu1 }
 0x1e7   : > { %v1544_v4 = vpop.f32.mrf.mxu0  ;;  %v1769_v31 = vpop.f32.mrf.mxu1 }
 0x1e9   : > { %v3814_v17 = vpop.f32.mrf.mxu0  ;;  %v3816_v49 = vpop.f32.mrf.mxu1 }
 0x1eb   : > { %v1549_v42 = vpop.f32.mrf.mxu0  ;;  %v1774_v28 = vpop.f32.mrf.mxu1 }
 0x1ed   : > { %v3818_v15 = vpop.f32.mrf.mxu0  ;;  %v3820_v52 = vpop.f32.mrf.mxu1 }
 0x1ef   : > { %v1554_v6 = vpop.f32.mrf.mxu0  ;;  %v1779_v56 = vpop.f32.mrf.mxu1 }
 0x1f1   : > { %v3822_v3 = vpop.f32.mrf.mxu0  ;;  %v3824_v1 = vpop.f32.mrf.mxu1 }
 0x1f3   : > { %v1559_v38 = vpop.f32.mrf.mxu0  ;;  %v1784_v41 = vpop.f32.mrf.mxu1 }
 0x1f5   : > { %v3826_v53 = vpop.f32.mrf.mxu0  ;;  %v3828_v37 = vpop.f32.mrf.mxu1 }
 0x1f7   : > { %v1564_v48 = vpop.f32.mrf.mxu0  ;;  %v1789_v21 = vpop.f32.mrf.mxu1 }
 0x1f9   : > { %v3830_v40 = vpop.f32.mrf.mxu0  ;;  %v3832_v25 = vpop.f32.mrf.mxu1 }
 0x1fb   : > { %v1569_v4 = vpop.f32.mrf.mxu0  ;;  %v1794_v31 = vpop.f32.mrf.mxu1 }
 0x1fc   : > { %v1518_v31 = vadd.f32 %v1517_v22, %v3714_v47 }
 0x1fd   : > { %v3834_v42 = vpop.f32.mrf.mxu0  ;;  %v3836_v28 = vpop.f32.mrf.mxu1 }
 0x1fe   : > { %4079 = vst [vmem:[#allocation9_spill] sm:$0xff] %v3836_v28  ;;  %v1743_v12 = vadd.f32 %v1742_v20, %v1518_v31 }
 0x1ff   : > { %v1574_v6 = vpop.f32.mrf.mxu0  ;;  %v1799_v56 = vpop.f32.mrf.mxu1 }
 0x201   : > { %v3838_v38 = vpop.f32.mrf.mxu0  ;;  %v3840_v41 = vpop.f32.mrf.mxu1 }
 0x203   : > { %v1579_v19 = vpop.f32.mrf.mxu0  ;;  %v1804_v48 = vpop.f32.mrf.mxu1 }
 0x204   : > { %v1528_v19 = vadd.f32 %v1527_v50, %v3720_v24  ;;  %v1748_v50 = vadd.f32 %v3800_v61, %v1523_v60  ;;  %v1533_v60 = vadd.f32 %v3804_v44, %v3722_v35 }
 0x205   : > { %v3842_v21 = vpop.f32.mrf.mxu0  ;;  %v3844_v33 = vpop.f32.mrf.mxu1 }
 0x207   : > { %v1584_v11 = vpop.f32.mrf.mxu0  ;;  %v1809_v4 = vpop.f32.mrf.mxu1 }
 0x208   : > { %v1753_v4 = vadd.f32 %v3802_v2, %v1528_v19 }
 0x209   : > { %v3847_v14 = vpop.f32.mrf.mxu0  ;;  %v3849_v28 = vpop.f32.mrf.mxu1 }
 0x20b   : > { %v1589_v6 = vpop.f32.mrf.mxu0  ;;  %v1814_v56 = vpop.f32.mrf.mxu1 }
 0x20d   : > { %v2370_v47 = vpop.f32.mrf.mxu0  ;;  %v2394_v11 = vpop.f32.mrf.mxu1 }
 0x20e   : > { %v1888_v22 = vadd.f32 %v2370_v47, %v3753_v54  ;;  %v3861_v48 = vadd.f32 %v2394_v11, %v1743_v12  ;;  %v1538_v54 = vadd.f32 %v1537_v13, %v3725_v5 }
 0x20f   : > { %v1882_v20 = vpop.f32.mrf.mxu0  ;;  %v1962_v59 = vpop.f32.mrf.mxu1 }
 0x210   : > { %2042 = vst [vmem:[%s3858_s10 + $0x8] sm:$0xff] %v1888_v22  ;;  %2058 = vst [vmem:[%s3858_s10 + $0x88] sm:$0xff] %v3861_v48  ;;  %v1883_v24 = vadd.f32 %v1882_v20, %v3750_v10  ;;  %v3868_v36 = vadd.f32 %v1962_v59, %v3798_v43  ;;  %v2111_v6 = vmul.f32 %v1888_v22, %v1888_v22 }
 0x211   : > { %v2373_v12 = vpop.f32.mrf.mxu0  ;;  %v2397_v31 = vpop.f32.mrf.mxu1  ;;  %v1763_v11 = vadd.f32 %v3808_v63, %v1538_v54  ;;  %v1758_v59 = vadd.f32 %v3806_v23, %v1533_v60  ;;  %v1543_v63 = vadd.f32 %v3810_v30, %v3729_v45 }
 0x212   : > { %2041 = vst [vmem:[%s3858_s10] sm:$0xff] %v1883_v24  ;;  %v2073_v56 = vadd.f32 %v1888_v22, %v1883_v24  ;;  %v2110_v47 = vmul.f32 %v1883_v24, %v1883_v24  ;;  %2057 = vst [vmem:[%s3858_s10 + $0x80] sm:$0xff] %v3868_v36  ;;  %v1898_v10 = vadd.f32 %v2373_v12, %v3759_v62 }
 0x213   : > { %v3879_v43 = vadd.f32 %v2397_v31, %v1753_v4  ;;  %v1892_v61 = vpop.f32.mrf.mxu0  ;;  %v1972_v5 = vpop.f32.mrf.mxu1  ;;  %v1548_v22 = vadd.f32 %v3814_v17, %v3731_v18 }
 0x214   : > { %v2142_v2 = vadd.f32 %v2111_v6, %v2110_v47  ;;  %2044 = vst [vmem:[%s3858_s10 + $0x18] sm:$0xff] %v1898_v10  ;;  %v1893_v13 = vadd.f32 %v1892_v61, %v3756_v16  ;;  %v3883_v19 = vadd.f32 %v1972_v5, %v1748_v50  ;;  %v2113_v50 = vmul.f32 %v1898_v10, %v1898_v10 }
 0x215   : > { %2060 = vst [vmem:[%s3858_s10 + $0x98] sm:$0xff] %v3879_v43  ;;  %v2376_v35 = vpop.f32.mrf.mxu0  ;;  %v2400_v62 = vpop.f32.mrf.mxu1  ;;  %v1773_v31 = vadd.f32 %v3816_v49, %v1548_v22  ;;  %v1553_v49 = vadd.f32 %v3818_v15, %v3733_v29 }
 0x216   : > { %2043 = vst [vmem:[%s3858_s10 + $0x10] sm:$0xff] %v1893_v13  ;;  %v2074_v44 = vadd.f32 %v2073_v56, %v1893_v13  ;;  %v2112_v20 = vmul.f32 %v1893_v13, %v1893_v13  ;;  %2059 = vst [vmem:[%s3858_s10 + $0x90] sm:$0xff] %v3883_v19  ;;  %v1908_v16 = vadd.f32 %v2376_v35, %v3765_v26 }
 0x217   : > { %v3897_v18 = vadd.f32 %v2400_v62, %v1763_v11  ;;  %v1902_v17 = vpop.f32.mrf.mxu0  ;;  %v1982_v24 = vpop.f32.mrf.mxu1  ;;  %v1558_v26 = vadd.f32 %v3822_v3, %v3735_v58 }
 0x218   : > { %v2143_v4 = vadd.f32 %v2142_v2, %v2112_v20  ;;  %2046 = vst [vmem:[%s3858_s10 + $0x28] sm:$0xff] %v1908_v16  ;;  %v1903_v54 = vadd.f32 %v1902_v17, %v3762_v0  ;;  %v2075_v12 = vadd.f32 %v2074_v44, %v1898_v10  ;;  %v3906_v23 = vadd.f32 %v1982_v24, %v1758_v59 }
 0x219   : > { %2062 = vst [vmem:[%s3858_s10 + $0xa8] sm:$0xff] %v3897_v18  ;;  %v2379_v45 = vpop.f32.mrf.mxu0  ;;  %v2403_v30 = vpop.f32.mrf.mxu1  ;;  %v1768_v10 = vadd.f32 %v3812_v57, %v1543_v63  ;;  %v2115_v61 = vmul.f32 %v1908_v16, %v1908_v16  ;;  %v1568_v57 = vadd.f32 %v3830_v40, %v3739_v46  ;;  %v1778_v44 = vadd.f32 %v3820_v52, %v1553_v49 }
 0x21a   : > { %2045 = vst [vmem:[%s3858_s10 + $0x20] sm:$0xff] %v1903_v54  ;;  %v2076_v6 = vadd.f32 %v2075_v12, %v1903_v54  ;;  %v2114_v56 = vmul.f32 %v1903_v54, %v1903_v54  ;;  %v2144_v47 = vadd.f32 %v2143_v4, %v2113_v50  ;;  %v1918_v0 = vadd.f32 %v2379_v45, %v3771_v32 }
 0x21b   : > { %2061 = vst [vmem:[%s3858_s10 + $0xa0] sm:$0xff] %v3906_v23  ;;  %v3915_v58 = vadd.f32 %v2403_v30, %v1773_v31  ;;  %v1912_v3 = vpop.f32.mrf.mxu0  ;;  %v1992_v60 = vpop.f32.mrf.mxu1  ;;  %v1783_v32 = vadd.f32 %v3824_v1, %v1558_v26  ;;  %v1563_v1 = vadd.f32 %v3826_v53, %v3737_v55  ;;  %v1578_v52 = vadd.f32 %v3838_v38, %v3743_v8 }
 0x21c   : > { %v2145_v5 = vadd.f32 %v2144_v47, %v2114_v56  ;;  %2048 = vst [vmem:[%s3858_s10 + $0x38] sm:$0xff] %v1918_v0  ;;  %v1913_v2 = vadd.f32 %v1912_v3, %v3768_v34  ;;  %v2077_v13 = vadd.f32 %v2076_v6, %v1908_v16  ;;  %v3924_v29 = vadd.f32 %v1992_v60, %v1768_v10  ;;  %v4081_v3 = vld [vmem:[#allocation6_spill] sm:$0xff]  ;;  %v4082_v60 = vld [vmem:[#allocation9_spill] sm:$0xff] }
 0x21d   : > { %2064 = vst [vmem:[%s3858_s10 + $0xb8] sm:$0xff] %v3915_v58  ;;  %v2382_v15 = vpop.f32.mrf.mxu0  ;;  %v2406_v11 = vpop.f32.mrf.mxu1  ;;  %v2117_v16 = vmul.f32 %v1918_v0, %v1918_v0  ;;  %v1788_v12 = vadd.f32 %v3828_v37, %v1563_v1  ;;  %v4080_v37 = vld [vmem:[#allocation4_spill] sm:$0xff] }
 0x21e   : > { %2047 = vst [vmem:[%s3858_s10 + $0x30] sm:$0xff] %v1913_v2  ;;  %v2078_v22 = vadd.f32 %v2077_v13, %v1913_v2  ;;  %v2116_v35 = vmul.f32 %v1913_v2, %v1913_v2  ;;  %v2146_v62 = vadd.f32 %v2145_v5, %v2115_v61  ;;  %v1928_v34 = vadd.f32 %v2382_v15, %v3777_v39  ;;  %v4084_v15 = vld [vmem:[#allocation5_spill] sm:$0xff] }
 0x21f   : > { %2063 = vst [vmem:[%s3858_s10 + $0xb0] sm:$0xff] %v3924_v29  ;;  %v3933_v46 = vadd.f32 %v2406_v11, %v1783_v32  ;;  %v1922_v40 = vpop.f32.mrf.mxu0  ;;  %v2002_v20 = vpop.f32.mrf.mxu1  ;;  %v1793_v39 = vadd.f32 %v3832_v25, %v1568_v57  ;;  %v1573_v25 = vadd.f32 %v3834_v42, %v3741_v9  ;;  %v1588_v56 = vadd.f32 %v3847_v14, %v4080_v37 }
 0x220   : > { %v2147_v59 = vadd.f32 %v2146_v62, %v2116_v35  ;;  %2050 = vst [vmem:[%s3858_s10 + $0x48] sm:$0xff] %v1928_v34  ;;  %v1923_v63 = vadd.f32 %v1922_v40, %v3774_v51  ;;  %v2079_v17 = vadd.f32 %v2078_v22, %v1918_v0  ;;  %v3942_v55 = vadd.f32 %v2002_v20, %v1778_v44  ;;  %v4085_v20 = vld [vmem:[#allocation8_spill] sm:$0xff] }
 0x221   : > { %2066 = vst [vmem:[%s3858_s10 + $0xc8] sm:$0xff] %v3933_v46  ;;  %v2385_v53 = vpop.f32.mrf.mxu0  ;;  %v2409_v24 = vpop.f32.mrf.mxu1  ;;  %v2119_v26 = vmul.f32 %v1928_v34, %v1928_v34  ;;  %v1798_v61 = vadd.f32 %v4082_v60, %v1573_v25  ;;  %v1813_v35 = vadd.f32 %v3849_v28, %v1588_v56  ;;  %v2128_v37 = vmul.f32 %v3883_v19, %v3883_v19 }
 0x222   : > { %2049 = vst [vmem:[%s3858_s10 + $0x40] sm:$0xff] %v1923_v63  ;;  %v2080_v50 = vadd.f32 %v2079_v17, %v1923_v63  ;;  %v2118_v4 = vmul.f32 %v1923_v63, %v1923_v63  ;;  %v2148_v54 = vadd.f32 %v2147_v59, %v2117_v16  ;;  %v1938_v51 = vadd.f32 %v2385_v53, %v3783_v7  ;;  %v4086_v53 = vld [vmem:[#allocation7_spill] sm:$0xff] }
 0x223   : > { %2065 = vst [vmem:[%s3858_s10 + $0xc0] sm:$0xff] %v3942_v55  ;;  %v3951_v8 = vadd.f32 %v2409_v24, %v1793_v39  ;;  %v1932_v38 = vpop.f32.mrf.mxu0  ;;  %v2012_v31 = vpop.f32.mrf.mxu1  ;;  %v1803_v7 = vadd.f32 %v3840_v41, %v1578_v52  ;;  %v4083_v41 = vld [vmem:[#allocation3_spill] sm:$0xff] }
 0x224   : > { %v2149_v45 = vadd.f32 %v2148_v54, %v2118_v4  ;;  %2052 = vst [vmem:[%s3858_s10 + $0x58] sm:$0xff] %v1938_v51  ;;  %v1933_v30 = vadd.f32 %v1932_v38, %v3780_v27  ;;  %v2081_v6 = vadd.f32 %v2080_v50, %v1928_v34  ;;  %v3960_v9 = vadd.f32 %v2012_v31, %v1788_v12 }
 0x225   : > { %2068 = vst [vmem:[%s3858_s10 + $0xd8] sm:$0xff] %v3951_v8  ;;  %v2388_v42 = vpop.f32.mrf.mxu0  ;;  %v2412_v47 = vpop.f32.mrf.mxu1  ;;  %v1583_v14 = vadd.f32 %v3842_v21, %v4083_v41  ;;  %v2121_v32 = vmul.f32 %v1938_v51, %v1938_v51  ;;  %v2126_v31 = vmul.f32 %v3868_v36, %v3868_v36 }
 0x226   : > { %2051 = vst [vmem:[%s3858_s10 + $0x50] sm:$0xff] %v1933_v30  ;;  %v2082_v0 = vadd.f32 %v2081_v6, %v1933_v30  ;;  %v2120_v10 = vmul.f32 %v1933_v30, %v1933_v30  ;;  %v2150_v49 = vadd.f32 %v2149_v45, %v2119_v26  ;;  %v1948_v27 = vadd.f32 %v2388_v42, %v4081_v3 }
 0x227   : > { %2067 = vst [vmem:[%s3858_s10 + $0xd0] sm:$0xff] %v3960_v9  ;;  %v3969_v5 = vadd.f32 %v2412_v47, %v1803_v7  ;;  %v1942_v2 = vpop.f32.mrf.mxu0  ;;  %v2022_v13 = vpop.f32.mrf.mxu1  ;;  %v1808_v59 = vadd.f32 %v3844_v33, %v1583_v14  ;;  %v2127_v30 = vmul.f32 %v3861_v48, %v3861_v48  ;;  %v2129_v47 = vmul.f32 %v3879_v43, %v3879_v43 }
 0x228   : > { %v2151_v57 = vadd.f32 %v2150_v49, %v2120_v10  ;;  %2054 = vst [vmem:[%s3858_s10 + $0x68] sm:$0xff] %v1948_v27  ;;  %v1943_v11 = vadd.f32 %v1942_v2, %v4084_v15  ;;  %v2083_v22 = vadd.f32 %v2082_v0, %v1938_v51  ;;  %v3976_v62 = vadd.f32 %v2022_v13, %v1798_v61 }
 0x229   : > { %2070 = vst [vmem:[%s3858_s10 + $0xe8] sm:$0xff] %v3969_v5  ;;  %v2391_v21 = vpop.f32.mrf.mxu0  ;;  %v2415_v34 = vpop.f32.mrf.mxu1  ;;  %v2123_v39 = vmul.f32 %v1948_v27, %v1948_v27 }
 0x22a   : > { %2053 = vst [vmem:[%s3858_s10 + $0x60] sm:$0xff] %v1943_v11  ;;  %v2084_v44 = vadd.f32 %v2083_v22, %v1943_v11  ;;  %v2122_v1 = vmul.f32 %v1943_v11, %v1943_v11  ;;  %v2152_v40 = vadd.f32 %v2151_v57, %v2121_v32  ;;  %v1958_v16 = vadd.f32 %v2391_v21, %v4085_v20 }
 0x22b   : > { %2069 = vst [vmem:[%s3858_s10 + $0xe0] sm:$0xff] %v3976_v62  ;;  %v3983_v28 = vadd.f32 %v2415_v34, %v1813_v35  ;;  %v1952_v63 = vpop.f32.mrf.mxu0  ;;  %v2032_v17 = vpop.f32.mrf.mxu1 }
 0x22c   : > { %v2153_v52 = vadd.f32 %v2152_v40, %v2122_v1  ;;  %2056 = vst [vmem:[%s3858_s10 + $0x78] sm:$0xff] %v1958_v16  ;;  %v1953_v24 = vadd.f32 %v1952_v63, %v4086_v53  ;;  %v2085_v50 = vadd.f32 %v2084_v44, %v1948_v27  ;;  %v2033_v4 = vadd.f32 %v2032_v17, %v1808_v59 }
 0x22d   : > { %2072 = vst [vmem:[%s3858_s10 + $0xf8] sm:$0xff] %v3983_v28  ;;  %v2125_v12 = vmul.f32 %v1958_v16, %v1958_v16  ;;  %v2179_v53 = vlaneseq }
 0x22e   : > { %2055 = vst [vmem:[%s3858_s10 + $0x70] sm:$0xff] %v1953_v24  ;;  %v2086_v54 = vadd.f32 %v2085_v50, %v1953_v24  ;;  %v2124_v51 = vmul.f32 %v1953_v24, %v1953_v24  ;;  %v2154_v33 = vadd.f32 %v2153_v52, %v2123_v39  ;;  %2071 = vst [vmem:[%s3858_s10 + $0xf0] sm:$0xff] %v2033_v4 }
 0x22f   : > { %v2140_v20 = vmul.f32 %v2033_v4, %v2033_v4 }
 0x230   : > { %v2087_v25 = vadd.f32 %v2086_v54, %v1958_v16  ;;  %v2155_v38 = vadd.f32 %v2154_v33, %v2124_v51  ;;  %v2180_v51 = vshrl.u32 %v2179_v53, 7 }
 0x232   : > { %v2088_v26 = vadd.f32 %v2087_v25, %v3868_v36  ;;  %v2156_v45 = vadd.f32 %v2155_v38, %v2125_v12  ;;  %v2130_v36 = vmul.f32 %v3906_v23, %v3906_v23  ;;  %vm2182_vm0 = vcmp.eq.s32.totalorder %v2180_v51, 1 }
 0x233   : > { %vm2181_vm1 = vcmp.eq.s32.totalorder %v2180_v51, 0 }
 0x234   : > { %v2089_v6 = vadd.f32 %v2088_v26, %v3861_v48  ;;  %v2157_v7 = vadd.f32 %v2156_v45, %v2126_v31  ;;  %v2131_v48 = vmul.f32 %v3897_v18, %v3897_v18 }
 0x236   : > { %v2090_v56 = vadd.f32 %v2089_v6, %v3883_v19  ;;  %v2158_v42 = vadd.f32 %v2157_v7, %v2127_v30  ;;  %v2132_v19 = vmul.f32 %v3924_v29, %v3924_v29 }
 0x238   : > { %v2091_v0 = vadd.f32 %v2090_v56, %v3879_v43  ;;  %v2159_v10 = vadd.f32 %v2158_v42, %v2128_v37  ;;  %v2133_v43 = vmul.f32 %v3915_v58, %v3915_v58 }
 0x23a   : > { %v2092_v49 = vadd.f32 %v2091_v0, %v3906_v23  ;;  %v2160_v3 = vadd.f32 %v2159_v10, %v2129_v47  ;;  %v2134_v23 = vmul.f32 %v3942_v55, %v3942_v55 }
 0x23c   : > { %v2093_v27 = vadd.f32 %v2092_v49, %v3897_v18  ;;  %v2161_v60 = vadd.f32 %v2160_v3, %v2130_v36  ;;  %v2135_v18 = vmul.f32 %v3933_v46, %v3933_v46 }
 0x23e   : > { %v2162_v61 = vadd.f32 %v2161_v60, %v2131_v48  ;;  %v2094_v41 = vadd.f32 %v2093_v27, %v3924_v29  ;;  %v2136_v29 = vmul.f32 %v3960_v9, %v3960_v9 }
 0x240   : > { %v2095_v14 = vadd.f32 %v2094_v41, %v3915_v58  ;;  %v2163_v2 = vadd.f32 %v2162_v61, %v2132_v19  ;;  %v2137_v58 = vmul.f32 %v3951_v8, %v3951_v8 }
 0x242   : > { %v2096_v13 = vadd.f32 %v2095_v14, %v3942_v55  ;;  %v2164_v32 = vadd.f32 %v2163_v2, %v2133_v43  ;;  %v2138_v55 = vmul.f32 %v3976_v62, %v3976_v62 }
 0x244   : > { %v2097_v57 = vadd.f32 %v2096_v13, %v3933_v46  ;;  %v2165_v15 = vadd.f32 %v2164_v32, %v2134_v23  ;;  %v2139_v46 = vmul.f32 %v3969_v5, %v3969_v5 }
 0x246   : > { %v2098_v11 = vadd.f32 %v2097_v57, %v3960_v9  ;;  %v2166_v22 = vadd.f32 %v2165_v15, %v2135_v18 }
 0x248   : > { %v2099_v35 = vadd.f32 %v2098_v11, %v3951_v8  ;;  %v2167_v21 = vadd.f32 %v2166_v22, %v2136_v29  ;;  %v2141_v8 = vmul.f32 %v3983_v28, %v3983_v28 }
 0x24a   : > { %v2100_v34 = vadd.f32 %v2099_v35, %v3976_v62  ;;  %v2168_v44 = vadd.f32 %v2167_v21, %v2137_v58 }
 0x24c   : > { %v2101_v1 = vadd.f32 %v2100_v34, %v3969_v5  ;;  %v2169_v40 = vadd.f32 %v2168_v44, %v2138_v55 }
 0x24e   : > { %v2102_v9 = vadd.f32 %v2101_v1, %v2033_v4  ;;  %v2170_v16 = vadd.f32 %v2169_v40, %v2139_v46 }
 0x250   : > { %v2103_v59 = vadd.f32 %v2102_v9, %v3983_v28  ;;  %v2171_v63 = vadd.f32 %v2170_v16, %v2140_v20 }
 0x252   : > { %v2104_v17 = vrot.slane %v2103_v59, 4  ;;  %v2172_v39 = vadd.f32 %v2171_v63, %v2141_v8 }
 0x254   : > { %v2105_v62 = vadd.f32 %v2104_v17, %v2103_v59  ;;  %v2173_v52 = vrot.slane %v2172_v39, 4 }
 0x256   : > { %v2106_v24 = vrot.slane %v2105_v62, 2  ;;  %v2174_v50 = vadd.f32 %v2173_v52, %v2172_v39 }
 0x258   : > { %v2107_v54 = vadd.f32 %v2106_v24, %v2105_v62  ;;  %v2175_v5 = vrot.slane %v2174_v50, 2 }
 0x25a   : > { %v2176_v33 = vadd.f32 %v2175_v5, %v2174_v50  ;;  %v2108_v4 = vrot.slane %v2107_v54, 1 }
 0x25c   : > { %v2177_v12 = vrot.slane %v2176_v33, 1  ;;  %v2109_v28 = vadd.f32 %v2108_v4, %v2107_v54 }
 0x25e   : > { %v2178_v25 = vadd.f32 %v2177_v12, %v2176_v33 }
 0x260   : > { %v2183_v38 = vsel %vm2182_vm0, %v2178_v25, 0.0 }
 0x261   : > { %v2184_v31 = vsel %vm2181_vm1, %v2109_v28, %v2183_v38 }
 0x262   : > { %2185 = vst [vmem:[%s235_s13] sm:$0xff] %v2184_v31 }
 0x263 PF: > { %s16_s18 = sadd.s32 1, %s2486_s18  }
 0x264   : > { %p13_p4 = scmp.ge.s32.totalorder %s16_s18, 4  }
 0x266   :  { %15 = sbr.rel (!%p13_p4) target bundleno = 1 (0x1), region = 80 }

// kernel: conv_block_forward.3
= control target key start
LH: loop header
LB: loop body
LE: loop exit
PB: predicated region body
PF: predicated region fallthrough
CT: control target
= control target key end

     0   :  { %s5152_s18 = smov 0   ;;  %s6714_s0 = inlined_call_operand.vmem [shape: f32[2,16,16,4], index: 0, kind: input, shape index: {}]   ;;  %s6715_s1 = inlined_call_operand.vmem [shape: f32[36,128], index: 1, kind: input, shape index: {}]   ;;  %s6716_s2 = inlined_call_operand.vmem [shape: f32[1,4], index: 2, kind: input, shape index: {}]   ;;  %s6717_s3 = inlined_call_operand.vmem [shape: f32[1,4], index: 3, kind: input, shape index: {}]   ;;  %s6718_s4 = inlined_call_operand.vmem [shape: f32[2,256,128], index: 4, kind: output, shape index: {0}]   ;;  %s6719_s5 = inlined_call_operand.vmem [shape: f32[2,8,128], index: 5, kind: output, shape index: {1}]  }
   0x1 LB: > { %s4044_s2 = sadd.s32 4294967295, %s5119_s18   ;;  %p4048_p0 = scmp.ge.s32.totalorder %s5119_s18, 1  ;;  %s5119_s18 = sphi %s5152_s18, %s16_s18  }
   0x2   : > { %p190_p1 = scmp.lt.s32.totalorder %s5119_s18, 3 }
   0x4   : > { %p191_p2 = pnand %p4048_p0, %p190_p1 }
   0x6   : > { %194 = sbr.rel (%p191_p2) target bundleno = 562 (0x232), region = 36 }
   0xb   : > { %v5163_v0 = vld [vmem:[%s6715_s1 + $0x4] sm:$0xf]  ;;  %vm761_vm0 = vcmask 1043456   ;;  %vm268_vm1 = vcmask 31744   ;;  %p5167_p3 = scmp.lt.s32.totalorder %s4044_s2, 1  ;;  %v5121_v1 = vmov 0.0  }
   0xc   : > { %5102 = vmatprep.subr.msk.mxu1 %vm761_vm0, %v5163_v0  ;;  %4652 = vmatprep.subr.msk.mxu0 %vm761_vm0, %v5163_v0  ;;  %270 = vst.msk [vmem:[#allocation2 + $0x8] sm:$0xff] %vm268_vm1, %v5121_v1  ;;  %269 = vst.msk [vmem:[#allocation2] sm:$0xff] %vm268_vm1, %v5121_v1  ;;  %v5322_v2 = vld [vmem:[%s6715_s1] sm:$0xf]  ;;  %v1314_v3 = vld [vmem:[%s6715_s1 + $0x8] sm:$0xf] }
   0xd   : > { %271 = vst.msk [vmem:[#allocation2 + $0x10] sm:$0xff] %vm268_vm1, %v5121_v1  ;;  %272 = vst.msk [vmem:[#allocation2 + $0x18] sm:$0xff] %vm268_vm1, %v5121_v1  ;;  %5103 = vmatpush3.msk.msra.mxu1 %vm761_vm0, %v5163_v0  ;;  %4653 = vmatpush3.msk.msra.mxu0 %vm761_vm0, %v5163_v0  ;;  %s6938_s2 = smov (!%p5167_p3, %s4044_s2), 1  ;;  %v5360_v10 = vld [vmem:[%s6715_s1 + $0x10] sm:$0xf] }
   0xe   : > { %273 = vst.msk [vmem:[#allocation2 + $0x20] sm:$0xff] %vm268_vm1, %v5121_v1  ;;  %274 = vst.msk [vmem:[#allocation2 + $0x28] sm:$0xff] %vm268_vm1, %v5121_v1  ;;  %4702 = vmatprep.subr.msk.mxu1 %vm761_vm0, %v5322_v2  ;;  %4752 = vmatprep.subr.msk.mxu0 %vm761_vm0, %v1314_v3  ;;  %s4353_s25 = sshll.u32 %s6938_s2, 8  ;;  %v5419_v34 = vld [vmem:[%s6715_s1 + $0xc] sm:$0xf]  ;;  %s4053_s19 = sshll.u32 %s6938_s2, 3 }
   0xf   : > { %275 = vst.msk [vmem:[#allocation2 + $0x30] sm:$0xff] %vm268_vm1, %v5121_v1  ;;  %276 = vst.msk [vmem:[#allocation2 + $0x38] sm:$0xff] %vm268_vm1, %v5121_v1  ;;  %s5346_s28 = scalar_lea.vmem %s6714_s0, %s4353_s25  ;;  %s6589_s3 = scalar_lea.vmem %s6718_s4, %s4353_s25 }
  0x10   : > { %277 = vst.msk [vmem:[#allocation2 + $0x40] sm:$0xff] %vm268_vm1, %v5121_v1  ;;  %278 = vst.msk [vmem:[#allocation2 + $0x48] sm:$0xff] %vm268_vm1, %v5121_v1  ;;  %v250_v4 = vld [vmem:[%s5346_s28 + $0x70] sm:$0xff]  ;;  %v251_v5 = vld [vmem:[%s5346_s28 + $0x78] sm:$0xff]  ;;  %s235_s22 = scalar_lea.vmem %s6719_s5, %s4053_s19 }
  0x11   : > { %279 = vst.msk [vmem:[#allocation2 + $0x50] sm:$0xff] %vm268_vm1, %v5121_v1  ;;  %280 = vst.msk [vmem:[#allocation2 + $0x58] sm:$0xff] %vm268_vm1, %v5121_v1  ;;  %v236_v6 = vld [vmem:[%s5346_s28] sm:$0xff]  ;;  %v237_v8 = vld [vmem:[%s5346_s28 + $0x8] sm:$0xff] }
  0x12   : > { %281 = vst.msk [vmem:[#allocation2 + $0x60] sm:$0xff] %vm268_vm1, %v5121_v1  ;;  %282 = vst.msk [vmem:[#allocation2 + $0x68] sm:$0xff] %vm268_vm1, %v5121_v1  ;;  %v252_v7 = vld [vmem:[%s5346_s28 + $0x80] sm:$0xff]  ;;  %v253_v9 = vld [vmem:[%s5346_s28 + $0x88] sm:$0xff] }
  0x13   : > { %283 = vst.msk [vmem:[#allocation2 + $0x70] sm:$0xff] %vm268_vm1, %v5121_v1  ;;  %284 = vst.msk [vmem:[#allocation2 + $0x78] sm:$0xff] %vm268_vm1, %v5121_v1  ;;  %v406_v11 = vld [vmem:[#allocation2 + $0x8] sm:$0xff]  ;;  %v238_v13 = vld [vmem:[%s5346_s28 + $0x10] sm:$0xff] }
  0x14   : > { %285 = vst.msk [vmem:[#allocation2 + $0x80] sm:$0xff] %vm268_vm1, %v5121_v1  ;;  %286 = vst.msk [vmem:[#allocation2 + $0x88] sm:$0xff] %vm268_vm1, %v5121_v1  ;;  %v407_v12 = vld [vmem:[#allocation2 + $0x10] sm:$0xff]  ;;  %4654 = vmatprep.mubr.msk.f32.mxu0 %vm268_vm1, %v406_v11  ;;  %v239_v15 = vld [vmem:[%s5346_s28 + $0x18] sm:$0xff] }
  0x15   : > { %287 = vst.msk [vmem:[#allocation2 + $0x90] sm:$0xff] %vm268_vm1, %v5121_v1  ;;  %288 = vst.msk [vmem:[#allocation2 + $0x98] sm:$0xff] %vm268_vm1, %v5121_v1  ;;  %v254_v14 = vld [vmem:[%s5346_s28 + $0x90] sm:$0xff]  ;;  %v255_v16 = vld [vmem:[%s5346_s28 + $0x98] sm:$0xff]  ;;  %4655 = vmatmul.mubr.msk.f32.vlgmr.msra.gmra.mxu0 %vm268_vm1, %v407_v12 }
  0x16   : > { %289 = vst.msk [vmem:[#allocation2 + $0xa0] sm:$0xff] %vm268_vm1, %v5121_v1  ;;  %290 = vst.msk [vmem:[#allocation2 + $0xa8] sm:$0xff] %vm268_vm1, %v5121_v1  ;;  %v240_v17 = vld [vmem:[%s5346_s28 + $0x20] sm:$0xff]  ;;  %v241_v19 = vld [vmem:[%s5346_s28 + $0x28] sm:$0xff]  ;;  %4753 = vmatpush3.msk.msra.mxu0 %vm761_vm0, %v1314_v3 }
  0x17   : > { %291 = vst.msk [vmem:[#allocation2 + $0xb0] sm:$0xff] %vm268_vm1, %v5121_v1  ;;  %292 = vst.msk [vmem:[#allocation2 + $0xb8] sm:$0xff] %vm268_vm1, %v5121_v1  ;;  %v256_v18 = vld [vmem:[%s5346_s28 + $0xa0] sm:$0xff]  ;;  %v257_v20 = vld [vmem:[%s5346_s28 + $0xa8] sm:$0xff]  ;;  %4852 = vmatprep.subr.msk.mxu0 %vm761_vm0, %v5360_v10 }
  0x18   : > { %293 = vst.msk [vmem:[#allocation2 + $0xc0] sm:$0xff] %vm268_vm1, %v5121_v1  ;;  %294 = vst.msk [vmem:[#allocation2 + $0xc8] sm:$0xff] %vm268_vm1, %v5121_v1  ;;  %v242_v21 = vld [vmem:[%s5346_s28 + $0x30] sm:$0xff]  ;;  %v243_v23 = vld [vmem:[%s5346_s28 + $0x38] sm:$0xff] }
  0x19   : > { %295 = vst.msk [vmem:[#allocation2 + $0xd0] sm:$0xff] %vm268_vm1, %v5121_v1  ;;  %296 = vst.msk [vmem:[#allocation2 + $0xd8] sm:$0xff] %vm268_vm1, %v5121_v1  ;;  %v258_v22 = vld [vmem:[%s5346_s28 + $0xb0] sm:$0xff]  ;;  %v259_v24 = vld [vmem:[%s5346_s28 + $0xb8] sm:$0xff] }
  0x1a   : > { %297 = vst.msk [vmem:[#allocation2 + $0xe0] sm:$0xff] %vm268_vm1, %v5121_v1  ;;  %298 = vst.msk [vmem:[#allocation2 + $0xe8] sm:$0xff] %vm268_vm1, %v5121_v1  ;;  %v244_v25 = vld [vmem:[%s5346_s28 + $0x40] sm:$0xff]  ;;  %v245_v27 = vld [vmem:[%s5346_s28 + $0x48] sm:$0xff] }
  0x1b   : > { %299 = vst.msk [vmem:[#allocation2 + $0xf0] sm:$0xff] %vm268_vm1, %v5121_v1  ;;  %300 = vst.msk [vmem:[#allocation2 + $0xf8] sm:$0xff] %vm268_vm1, %v5121_v1  ;;  %v260_v26 = vld [vmem:[%s5346_s28 + $0xc0] sm:$0xff]  ;;  %v261_v28 = vld [vmem:[%s5346_s28 + $0xc8] sm:$0xff] }
  0x1c   : > { %301 = vst.msk [vmem:[#allocation2 + $0x100] sm:$0xff] %vm268_vm1, %v5121_v1  ;;  %302 = vst.msk [vmem:[#allocation2 + $0x108] sm:$0xff] %vm268_vm1, %v5121_v1  ;;  %v246_v36 = vld [vmem:[%s5346_s28 + $0x50] sm:$0xff]  ;;  %v247_v46 = vld [vmem:[%s5346_s28 + $0x58] sm:$0xff] }
  0x1d   : > { %303 = vst.msk [vmem:[#allocation2 + $0x110] sm:$0xff] %vm268_vm1, %v5121_v1  ;;  %304 = vst.msk [vmem:[#allocation2 + $0x118] sm:$0xff] %vm268_vm1, %v5121_v1  ;;  %v262_v37 = vld [vmem:[%s5346_s28 + $0xd0] sm:$0xff]  ;;  %v263_v47 = vld [vmem:[%s5346_s28 + $0xd8] sm:$0xff] }
  0x1e   : > { %305 = vst.msk [vmem:[#allocation2 + $0x120] sm:$0xff] %vm268_vm1, %v5121_v1  ;;  %306 = vst.msk [vmem:[#allocation2 + $0x128] sm:$0xff] %vm268_vm1, %v5121_v1  ;;  %v248_v48 = vld [vmem:[%s5346_s28 + $0x60] sm:$0xff]  ;;  %v249_v50 = vld [vmem:[%s5346_s28 + $0x68] sm:$0xff] }
  0x1f   : > { %307 = vst.msk [vmem:[#allocation2 + $0x130] sm:$0xff] %vm268_vm1, %v5121_v1  ;;  %308 = vst.msk [vmem:[#allocation2 + $0x138] sm:$0xff] %vm268_vm1, %v5121_v1  ;;  %v264_v49 = vld [vmem:[%s5346_s28 + $0xe0] sm:$0xff]  ;;  %v265_v51 = vld [vmem:[%s5346_s28 + $0xe8] sm:$0xff] }
  0x20   : > { %309 = vst.msk [vmem:[#allocation2 + $0x140] sm:$0xff] %vm268_vm1, %v5121_v1  ;;  %310 = vst.msk [vmem:[#allocation2 + $0x148] sm:$0xff] %vm268_vm1, %v5121_v1  ;;  %v438_v3 = vld [vmem:[#allocation2 + $0x9] sm:$0xff] }
  0x21   : > { %311 = vst.msk [vmem:[#allocation2 + $0x150] sm:$0xff] %vm268_vm1, %v5121_v1  ;;  %312 = vst.msk [vmem:[#allocation2 + $0x158] sm:$0xff] %vm268_vm1, %v5121_v1 }
  0x22   : > { %313 = vst.msk [vmem:[#allocation2 + $0x160] sm:$0xff] %vm268_vm1, %v5121_v1  ;;  %314 = vst.msk [vmem:[#allocation2 + $0x168] sm:$0xff] %vm268_vm1, %v5121_v1 }
  0x23   : > { %315 = vst.msk [vmem:[#allocation2 + $0x170] sm:$0xff] %vm268_vm1, %v5121_v1  ;;  %316 = vst.msk [vmem:[#allocation2 + $0x178] sm:$0xff] %vm268_vm1, %v5121_v1 }
  0x24   : > { %317 = vst.msk [vmem:[#allocation2 + $0x180] sm:$0xff] %vm268_vm1, %v5121_v1  ;;  %318 = vst.msk [vmem:[#allocation2 + $0x188] sm:$0xff] %vm268_vm1, %v5121_v1 }
  0x25   : > { %319 = vst.msk [vmem:[#allocation2 + $0x190] sm:$0xff] %vm268_vm1, %v5121_v1  ;;  %320 = vst.msk [vmem:[#allocation2 + $0x198] sm:$0xff] %vm268_vm1, %v5121_v1 }
  0x26   : > { %321 = vst.msk [vmem:[#allocation2 + $0x1a0] sm:$0xff] %vm268_vm1, %v5121_v1  ;;  %322 = vst.msk [vmem:[#allocation2 + $0x1a8] sm:$0xff] %vm268_vm1, %v5121_v1 }
  0x27   : > { %323 = vst.msk [vmem:[#allocation2 + $0x1b0] sm:$0xff] %vm268_vm1, %v5121_v1  ;;  %324 = vst.msk [vmem:[#allocation2 + $0x1b8] sm:$0xff] %vm268_vm1, %v5121_v1 }
  0x28   : > { %325 = vst.msk [vmem:[#allocation2 + $0x1c0] sm:$0xff] %vm268_vm1, %v5121_v1  ;;  %326 = vst.msk [vmem:[#allocation2 + $0x1c8] sm:$0xff] %vm268_vm1, %v5121_v1 }
  0x29   : > { %327 = vst.msk [vmem:[#allocation2 + $0x1d0] sm:$0xff] %vm268_vm1, %v5121_v1  ;;  %328 = vst.msk [vmem:[#allocation2 + $0x1d8] sm:$0xff] %vm268_vm1, %v5121_v1 }
  0x2a   : > { %329 = vst.msk [vmem:[#allocation2 + $0x1e0] sm:$0xff] %vm268_vm1, %v5121_v1  ;;  %330 = vst.msk [vmem:[#allocation2 + $0x1e8] sm:$0xff] %vm268_vm1, %v5121_v1 }
  0x2b   : > { %331 = vst.msk [vmem:[#allocation2 + $0x1f0] sm:$0xff] %vm268_vm1, %v5121_v1  ;;  %332 = vst.msk [vmem:[#allocation2 + $0x1f8] sm:$0xff] %vm268_vm1, %v5121_v1 }
  0x2c   : > { %333 = vst.msk [vmem:[#allocation2 + $0x200] sm:$0xff] %vm268_vm1, %v5121_v1  ;;  %334 = vst.msk [vmem:[#allocation2 + $0x208] sm:$0xff] %vm268_vm1, %v5121_v1 }
  0x2d   : > { %335 = vst.msk [vmem:[#allocation2 + $0x210] sm:$0xff] %vm268_vm1, %v5121_v1  ;;  %336 = vst.msk [vmem:[#allocation2 + $0x218] sm:$0xff] %vm268_vm1, %v5121_v1 }
  0x2e   : > { %337 = vst.msk [vmem:[#allocation2 + $0x220] sm:$0xff] %vm268_vm1, %v5121_v1  ;;  %338 = vst.msk [vmem:[#allocation2 + $0x228] sm:$0xff] %vm268_vm1, %v5121_v1 }
  0x2f   : > { %339 = vst.msk [vmem:[#allocation2 + $0x230] sm:$0xff] %vm268_vm1, %v5121_v1  ;;  %340 = vst.msk [vmem:[#allocation2 + $0x238] sm:$0xff] %vm268_vm1, %v5121_v1 }
  0x30   : > { %356 = vst.msk [vmem:[#allocation2 + $0x108] sm:$0xff] %vm268_vm1, %v250_v4  ;;  %357 = vst.msk [vmem:[#allocation2 + $0x110] sm:$0xff] %vm268_vm1, %v251_v5  ;;  %v439_v5 = vld [vmem:[#allocation2 + $0x11] sm:$0xff] }
  0x31   : > { %342 = vst.msk [vmem:[#allocation2 + $0x28] sm:$0xff] %vm268_vm1, %v236_v6  ;;  %358 = vst.msk [vmem:[#allocation2 + $0x128] sm:$0xff] %vm268_vm1, %v252_v7  ;;  %v374_v6 = vld [vmem:[#allocation2 + $0x7] sm:$0xff] }
  0x32   : > { %343 = vst.msk [vmem:[#allocation2 + $0x30] sm:$0xff] %vm268_vm1, %v237_v8  ;;  %359 = vst.msk [vmem:[#allocation2 + $0x130] sm:$0xff] %vm268_vm1, %v253_v9  ;;  %v5551_v8 = vld [vmem:[%s6715_s1 + $0x18] sm:$0xf]  ;;  %v375_v9 = vld [vmem:[#allocation2 + $0xf] sm:$0xff] }
  0x33   : > { %344 = vst.msk [vmem:[#allocation2 + $0x48] sm:$0xff] %vm268_vm1, %v238_v13  ;;  %360 = vst.msk [vmem:[#allocation2 + $0x148] sm:$0xff] %vm268_vm1, %v254_v14  ;;  %v5572_v14 = vld [vmem:[%s6715_s1 + $0x14] sm:$0xf] }
  0x34   : > { %345 = vst.msk [vmem:[#allocation2 + $0x50] sm:$0xff] %vm268_vm1, %v239_v15  ;;  %361 = vst.msk [vmem:[#allocation2 + $0x150] sm:$0xff] %vm268_vm1, %v255_v16  ;;  %v267_v15 = vld [vmem:[%s5346_s28 + $0xf8] sm:$0xff] }
  0x35   : > { %346 = vst.msk [vmem:[#allocation2 + $0x68] sm:$0xff] %vm268_vm1, %v240_v17  ;;  %362 = vst.msk [vmem:[#allocation2 + $0x168] sm:$0xff] %vm268_vm1, %v256_v18 }
  0x36   : > { %347 = vst.msk [vmem:[#allocation2 + $0x70] sm:$0xff] %vm268_vm1, %v241_v19  ;;  %363 = vst.msk [vmem:[#allocation2 + $0x170] sm:$0xff] %vm268_vm1, %v257_v20 }
  0x37   : > { %348 = vst.msk [vmem:[#allocation2 + $0x88] sm:$0xff] %vm268_vm1, %v242_v21  ;;  %364 = vst.msk [vmem:[#allocation2 + $0x188] sm:$0xff] %vm268_vm1, %v258_v22  ;;  %v5399_v29 = vld [vmem:[#allocation2 + $0x108] sm:$0xff]  ;;  %v5401_v30 = vld [vmem:[#allocation2 + $0x110] sm:$0xff] }
  0x38   : > { %349 = vst.msk [vmem:[#allocation2 + $0x90] sm:$0xff] %vm268_vm1, %v243_v23  ;;  %365 = vst.msk [vmem:[#allocation2 + $0x190] sm:$0xff] %vm268_vm1, %v259_v24  ;;  %v5403_v31 = vld [vmem:[#allocation2 + $0x28] sm:$0xff]  ;;  %4678 = vmatprep.mubr.msk.f32.mxu1 %vm268_vm1, %v5399_v29 }
  0x39   : > { %350 = vst.msk [vmem:[#allocation2 + $0xa8] sm:$0xff] %vm268_vm1, %v244_v25  ;;  %366 = vst.msk [vmem:[#allocation2 + $0x1a8] sm:$0xff] %vm268_vm1, %v260_v26  ;;  %4657 = vmatprep.mubr.msk.f32.mxu0 %vm268_vm1, %v5403_v31  ;;  %v5412_v32 = vld [vmem:[#allocation2 + $0x128] sm:$0xff]  ;;  %v5414_v33 = vld [vmem:[#allocation2 + $0x30] sm:$0xff]  ;;  %4679 = vmatmul.mubr.msk.f32.vlgmr.msra.gmra.mxu1 %vm268_vm1, %v5401_v30 }
  0x3a   : > { %351 = vst.msk [vmem:[#allocation2 + $0xb0] sm:$0xff] %vm268_vm1, %v245_v27  ;;  %367 = vst.msk [vmem:[#allocation2 + $0x1b0] sm:$0xff] %vm268_vm1, %v261_v28  ;;  %4658 = vmatmul.mubr.msk.f32.gmra.mxu0 %vm268_vm1, %v5414_v33  ;;  %v5425_v35 = vld [vmem:[#allocation2 + $0x48] sm:$0xff]  ;;  %4703 = vmatpush3.msk.msra.mxu1 %vm761_vm0, %v5322_v2  ;;  %v5433_v38 = vld [vmem:[#allocation2 + $0x130] sm:$0xff] }
  0x3b   : > { %4681 = vmatprep.mubr.msk.f32.mxu1 %vm268_vm1, %v5412_v32  ;;  %v5435_v39 = vld [vmem:[#allocation2 + $0x50] sm:$0xff]  ;;  %352 = vst.msk [vmem:[#allocation2 + $0xc8] sm:$0xff] %vm268_vm1, %v246_v36  ;;  %368 = vst.msk [vmem:[#allocation2 + $0x1c8] sm:$0xff] %vm268_vm1, %v262_v37  ;;  %4660 = vmatprep.mubr.msk.f32.mxu0 %vm268_vm1, %v5425_v35  ;;  %v5441_v40 = vld [vmem:[#allocation2 + $0x148] sm:$0xff] }
  0x3c   : > { %v5443_v41 = vld [vmem:[#allocation2 + $0x68] sm:$0xff]  ;;  %4802 = vmatprep.subr.msk.mxu1 %vm761_vm0, %v5419_v34  ;;  %v5451_v42 = vld [vmem:[#allocation2 + $0x150] sm:$0xff]  ;;  %353 = vst.msk [vmem:[#allocation2 + $0xd0] sm:$0xff] %vm268_vm1, %v247_v46  ;;  %369 = vst.msk [vmem:[#allocation2 + $0x1d0] sm:$0xff] %vm268_vm1, %v263_v47 }
  0x3d   : > { %4682 = vmatmul.mubr.msk.f32.gmra.mxu1 %vm268_vm1, %v5433_v38  ;;  %v5457_v43 = vld [vmem:[#allocation2 + $0x168] sm:$0xff]  ;;  %v5459_v44 = vld [vmem:[#allocation2 + $0x70] sm:$0xff]  ;;  %354 = vst.msk [vmem:[#allocation2 + $0xe8] sm:$0xff] %vm268_vm1, %v248_v48  ;;  %370 = vst.msk [vmem:[#allocation2 + $0x1e8] sm:$0xff] %vm268_vm1, %v264_v49 }
  0x3e   : > { %4661 = vmatmul.mubr.msk.f32.gmra.mxu0 %vm268_vm1, %v5435_v39  ;;  %4684 = vmatprep.mubr.msk.f32.mxu1 %vm268_vm1, %v5441_v40  ;;  %v5461_v45 = vld [vmem:[#allocation2 + $0x88] sm:$0xff]  ;;  %355 = vst.msk [vmem:[#allocation2 + $0xf0] sm:$0xff] %vm268_vm1, %v249_v50  ;;  %371 = vst.msk [vmem:[#allocation2 + $0x1f0] sm:$0xff] %vm268_vm1, %v265_v51  ;;  %v5481_v52 = vld [vmem:[#allocation2 + $0x170] sm:$0xff] }
  0x3f   : > { %4663 = vmatprep.mubr.msk.f32.mxu0 %vm268_vm1, %v5443_v41  ;;  %v5485_v53 = vld [vmem:[#allocation2 + $0x90] sm:$0xff]  ;;  %v5487_v54 = vld [vmem:[#allocation2 + $0x188] sm:$0xff]  ;;  %373 = vst.msk [vmem:[#allocation2 + $0x210] sm:$0xff] %vm268_vm1, %v267_v15 }
  0x40   : > { %v5489_v55 = vld [vmem:[#allocation2 + $0xa8] sm:$0xff]  ;;  %v5497_v56 = vld [vmem:[#allocation2 + $0x190] sm:$0xff] }
  0x41   : > { %4685 = vmatmul.mubr.msk.f32.gmra.mxu1 %vm268_vm1, %v5451_v42  ;;  %v5501_v57 = vld [vmem:[#allocation2 + $0xb0] sm:$0xff]  ;;  %v5503_v58 = vld [vmem:[#allocation2 + $0x1a8] sm:$0xff] }
  0x42   : > { %4664 = vmatmul.mubr.msk.f32.gmra.mxu0 %vm268_vm1, %v5459_v44  ;;  %4687 = vmatprep.mubr.msk.f32.mxu1 %vm268_vm1, %v5457_v43  ;;  %v5505_v59 = vld [vmem:[#allocation2 + $0xc8] sm:$0xff]  ;;  %v5513_v60 = vld [vmem:[#allocation2 + $0x1b0] sm:$0xff] }
  0x43   : > { %4666 = vmatprep.mubr.msk.f32.mxu0 %vm268_vm1, %v5461_v45  ;;  %v5517_v61 = vld [vmem:[#allocation2 + $0xd0] sm:$0xff]  ;;  %v5519_v62 = vld [vmem:[#allocation2 + $0x1c8] sm:$0xff] }
  0x44   : > { %v5521_v63 = vld [vmem:[#allocation2 + $0xe8] sm:$0xff]  ;;  %v5529_v0 = vld [vmem:[#allocation2 + $0x1d0] sm:$0xff] }
  0x45   : > { %4688 = vmatmul.mubr.msk.f32.gmra.mxu1 %vm268_vm1, %v5481_v52  ;;  %v5533_v1 = vld [vmem:[#allocation2 + $0xf0] sm:$0xff]  ;;  %v5535_v2 = vld [vmem:[#allocation2 + $0x1e8] sm:$0xff] }
  0x46   : > { %4667 = vmatmul.mubr.msk.f32.gmra.mxu0 %vm268_vm1, %v5485_v53  ;;  %4690 = vmatprep.mubr.msk.f32.mxu1 %vm268_vm1, %v5487_v54  ;;  %v5543_v4 = vld [vmem:[#allocation2 + $0x1f0] sm:$0xff]  ;;  %v5561_v12 = vld [vmem:[#allocation2 + $0x27] sm:$0xff] }
  0x47   : > { %4669 = vmatprep.mubr.msk.f32.mxu0 %vm268_vm1, %v5489_v55  ;;  %v5546_v7 = vld [vmem:[#allocation2 + $0x29] sm:$0xff]  ;;  %v5559_v11 = vld [vmem:[#allocation2 + $0x31] sm:$0xff] }
  0x48   : > { %6777 = vst [vmem:[#allocation3_spill] sm:$0xff] %v5546_v7  ;;  %6778 = vst [vmem:[#allocation4_spill] sm:$0xff] %v5559_v11  ;;  %v5567_v13 = vld [vmem:[#allocation2 + $0x49] sm:$0xff]  ;;  %v5585_v17 = vld [vmem:[#allocation2 + $0x51] sm:$0xff] }
  0x49   : > { %4691 = vmatmul.mubr.msk.f32.gmra.mxu1 %vm268_vm1, %v5497_v56  ;;  %6779 = vst [vmem:[#allocation5_spill] sm:$0xff] %v5567_v13  ;;  %v5583_v16 = vld [vmem:[#allocation2 + $0x2f] sm:$0xff]  ;;  %6780 = vst [vmem:[#allocation6_spill] sm:$0xff] %v5585_v17  ;;  %v5589_v18 = vld [vmem:[#allocation2 + $0x47] sm:$0xff] }
  0x4a   : > { %4670 = vmatmul.mubr.msk.f32.gmra.mxu0 %vm268_vm1, %v5501_v57  ;;  %4693 = vmatprep.mubr.msk.f32.mxu1 %vm268_vm1, %v5503_v58  ;;  %v5593_v19 = vld [vmem:[#allocation2 + $0x69] sm:$0xff]  ;;  %v5607_v21 = vld [vmem:[#allocation2 + $0x71] sm:$0xff] }
  0x4b   : > { %4672 = vmatprep.mubr.msk.f32.mxu0 %vm268_vm1, %v5505_v59  ;;  %6781 = vst [vmem:[#allocation7_spill] sm:$0xff] %v5593_v19  ;;  %v5603_v20 = vld [vmem:[#allocation2 + $0x4f] sm:$0xff]  ;;  %6782 = vst [vmem:[#allocation8_spill] sm:$0xff] %v5607_v21  ;;  %v5609_v22 = vld [vmem:[#allocation2 + $0x67] sm:$0xff] }
  0x4c   : > { %v5611_v23 = vld [vmem:[#allocation2 + $0x89] sm:$0xff]  ;;  %v5623_v25 = vld [vmem:[#allocation2 + $0x91] sm:$0xff] }
  0x4d   : > { %4694 = vmatmul.mubr.msk.f32.gmra.mxu1 %vm268_vm1, %v5513_v60  ;;  %6783 = vst [vmem:[#allocation9_spill] sm:$0xff] %v5611_v23  ;;  %v5619_v24 = vld [vmem:[#allocation2 + $0x6f] sm:$0xff]  ;;  %6784 = vst [vmem:[#allocation10_spill] sm:$0xff] %v5623_v25  ;;  %v5625_v26 = vld [vmem:[#allocation2 + $0x87] sm:$0xff] }
  0x4e   : > { %4673 = vmatmul.mubr.msk.f32.gmra.mxu0 %vm268_vm1, %v5517_v61  ;;  %4696 = vmatprep.mubr.msk.f32.mxu1 %vm268_vm1, %v5519_v62  ;;  %v5627_v27 = vld [vmem:[#allocation2 + $0xa9] sm:$0xff]  ;;  %v5655_v47 = vld [vmem:[#allocation2 + $0xd1] sm:$0xff] }
  0x4f   : > { %4675 = vmatprep.mubr.msk.f32.mxu0 %vm268_vm1, %v5521_v63  ;;  %6785 = vst [vmem:[#allocation11_spill] sm:$0xff] %v5627_v27  ;;  %v5635_v28 = vld [vmem:[#allocation2 + $0x8f] sm:$0xff]  ;;  %v5641_v36 = vld [vmem:[#allocation2 + $0xa7] sm:$0xff]  ;;  %6788 = vst [vmem:[#allocation14_spill] sm:$0xff] %v5655_v47 }
  0x50   : > { %v5643_v37 = vld [vmem:[#allocation2 + $0xc9] sm:$0xff]  ;;  %v5671_v51 = vld [vmem:[#allocation2 + $0xf1] sm:$0xff] }
  0x51   : > { %4697 = vmatmul.mubr.msk.f32.gmra.mxu1 %vm268_vm1, %v5529_v0  ;;  %6787 = vst [vmem:[#allocation13_spill] sm:$0xff] %v5643_v37  ;;  %v5651_v46 = vld [vmem:[#allocation2 + $0xaf] sm:$0xff]  ;;  %v5657_v48 = vld [vmem:[#allocation2 + $0xc7] sm:$0xff]  ;;  %6790 = vst [vmem:[#allocation16_spill] sm:$0xff] %v5671_v51 }
  0x52   : > { %4676 = vmatmul.mubr.msk.f32.gmra.mxu0 %vm268_vm1, %v5533_v1  ;;  %4699 = vmatprep.mubr.msk.f32.mxu1 %vm268_vm1, %v5535_v2  ;;  %v5659_v49 = vld [vmem:[#allocation2 + $0xe9] sm:$0xff] }
  0x53   : > { %4754 = vmatprep.mubr.msk.f32.mxu0 %vm268_vm1, %v438_v3  ;;  %6789 = vst [vmem:[#allocation15_spill] sm:$0xff] %v5659_v49  ;;  %v5667_v50 = vld [vmem:[#allocation2 + $0xcf] sm:$0xff]  ;;  %v5673_v3 = vld [vmem:[#allocation2 + $0xe7] sm:$0xff] }
  0x54   : > { %v5691_v15 = vld [vmem:[#allocation2 + $0x129] sm:$0xff] }
  0x55   : > { %4700 = vmatmul.mubr.msk.f32.gmra.mxu1 %vm268_vm1, %v5543_v4  ;;  %6793 = vst [vmem:[#allocation19_spill] sm:$0xff] %v5691_v15 }
  0x56   : > { %4755 = vmatmul.mubr.msk.f32.vlgmr.msra.gmra.mxu0 %vm268_vm1, %v439_v5  ;;  %4704 = vmatprep.mubr.msk.f32.mxu1 %vm268_vm1, %v374_v6  ;;  %v5675_v5 = vld [vmem:[#allocation2 + $0x109] sm:$0xff] }
  0x57   : > { %4853 = vmatpush3.msk.msra.mxu0 %vm761_vm0, %v5360_v10  ;;  %4757 = vmatprep.mubr.msk.f32.mxu0 %vm268_vm1, %v5546_v7  ;;  %v266_v10 = vld [vmem:[%s5346_s28 + $0xf0] sm:$0xff]  ;;  %6791 = vst [vmem:[#allocation17_spill] sm:$0xff] %v5675_v5  ;;  %v5801_v7 = vld [vmem:[#allocation2 + $0x1e7] sm:$0xff] }
  0x58   : > { %4952 = vmatprep.subr.msk.mxu0 %vm761_vm0, %v5551_v8  ;;  %372 = vst.msk [vmem:[#allocation2 + $0x208] sm:$0xff] %vm268_vm1, %v266_v10  ;;  %v5683_v6 = vld [vmem:[#allocation2 + $0xef] sm:$0xff]  ;;  %v5689_v10 = vld [vmem:[#allocation2 + $0x107] sm:$0xff] }
  0x59   : > { %4705 = vmatmul.mubr.msk.f32.vlgmr.msra.gmra.mxu1 %vm268_vm1, %v375_v9  ;;  %v5687_v9 = vld [vmem:[#allocation2 + $0x111] sm:$0xff] }
  0x5a   : > { %4758 = vmatmul.mubr.msk.f32.gmra.mxu0 %vm268_vm1, %v5559_v11  ;;  %4803 = vmatpush3.msk.msra.mxu1 %vm761_vm0, %v5419_v34  ;;  %v5639_v34 = vld [vmem:[#allocation2 + $0xb1] sm:$0xff]  ;;  %6792 = vst [vmem:[#allocation18_spill] sm:$0xff] %v5687_v9  ;;  %v5787_v11 = vld [vmem:[#allocation2 + $0x1e9] sm:$0xff] }
  0x5b   : > { %4707 = vmatprep.mubr.msk.f32.mxu1 %vm268_vm1, %v5561_v12  ;;  %4760 = vmatprep.mubr.msk.f32.mxu0 %vm268_vm1, %v5567_v13  ;;  %6786 = vst [vmem:[#allocation12_spill] sm:$0xff] %v5639_v34  ;;  %v5785_v13 = vld [vmem:[#allocation2 + $0x1c7] sm:$0xff]  ;;  %6805 = vst [vmem:[#allocation31_spill] sm:$0xff] %v5787_v11 }
  0x5c   : > { %4902 = vmatprep.subr.msk.mxu1 %vm761_vm0, %v5572_v14 }
  0x5d   : > { %4708 = vmatmul.mubr.msk.f32.gmra.mxu1 %vm268_vm1, %v5583_v16 }
  0x5e   : > { %4761 = vmatmul.mubr.msk.f32.gmra.mxu0 %vm268_vm1, %v5585_v17  ;;  %4710 = vmatprep.mubr.msk.f32.mxu1 %vm268_vm1, %v5589_v18  ;;  %v5771_v17 = vld [vmem:[#allocation2 + $0x1c9] sm:$0xff] }
  0x5f   : > { %4763 = vmatprep.mubr.msk.f32.mxu0 %vm268_vm1, %v5593_v19  ;;  %v5769_v19 = vld [vmem:[#allocation2 + $0x1a7] sm:$0xff]  ;;  %6803 = vst [vmem:[#allocation29_spill] sm:$0xff] %v5771_v17 }
  0x61   : > { %4711 = vmatmul.mubr.msk.f32.gmra.mxu1 %vm268_vm1, %v5603_v20 }
  0x62   : > { %4764 = vmatmul.mubr.msk.f32.gmra.mxu0 %vm268_vm1, %v5607_v21  ;;  %4713 = vmatprep.mubr.msk.f32.mxu1 %vm268_vm1, %v5609_v22  ;;  %v5755_v21 = vld [vmem:[#allocation2 + $0x1a9] sm:$0xff] }
  0x63   : > { %4766 = vmatprep.mubr.msk.f32.mxu0 %vm268_vm1, %v5611_v23  ;;  %v5753_v23 = vld [vmem:[#allocation2 + $0x187] sm:$0xff]  ;;  %6801 = vst [vmem:[#allocation27_spill] sm:$0xff] %v5755_v21 }
  0x65   : > { %4714 = vmatmul.mubr.msk.f32.gmra.mxu1 %vm268_vm1, %v5619_v24 }
  0x66   : > { %4767 = vmatmul.mubr.msk.f32.gmra.mxu0 %vm268_vm1, %v5623_v25  ;;  %4716 = vmatprep.mubr.msk.f32.mxu1 %vm268_vm1, %v5625_v26  ;;  %v5739_v25 = vld [vmem:[#allocation2 + $0x189] sm:$0xff] }
  0x67   : > { %4769 = vmatprep.mubr.msk.f32.mxu0 %vm268_vm1, %v5627_v27  ;;  %v5737_v27 = vld [vmem:[#allocation2 + $0x167] sm:$0xff]  ;;  %6799 = vst [vmem:[#allocation25_spill] sm:$0xff] %v5739_v25 }
  0x69   : > { %4717 = vmatmul.mubr.msk.f32.gmra.mxu1 %vm268_vm1, %v5635_v28 }
  0x6a   : > { %4770 = vmatmul.mubr.msk.f32.gmra.mxu0 %vm268_vm1, %v5639_v34  ;;  %4719 = vmatprep.mubr.msk.f32.mxu1 %vm268_vm1, %v5641_v36  ;;  %v5723_v34 = vld [vmem:[#allocation2 + $0x169] sm:$0xff] }
  0x6b   : > { %4772 = vmatprep.mubr.msk.f32.mxu0 %vm268_vm1, %v5643_v37  ;;  %v5721_v37 = vld [vmem:[#allocation2 + $0x147] sm:$0xff]  ;;  %6797 = vst [vmem:[#allocation23_spill] sm:$0xff] %v5723_v34 }
  0x6d   : > { %4720 = vmatmul.mubr.msk.f32.gmra.mxu1 %vm268_vm1, %v5651_v46 }
  0x6e   : > { %4773 = vmatmul.mubr.msk.f32.gmra.mxu0 %vm268_vm1, %v5655_v47  ;;  %4722 = vmatprep.mubr.msk.f32.mxu1 %vm268_vm1, %v5657_v48  ;;  %v5707_v47 = vld [vmem:[#allocation2 + $0x149] sm:$0xff] }
  0x6f   : > { %4775 = vmatprep.mubr.msk.f32.mxu0 %vm268_vm1, %v5659_v49  ;;  %v5705_v49 = vld [vmem:[#allocation2 + $0x127] sm:$0xff]  ;;  %6795 = vst [vmem:[#allocation21_spill] sm:$0xff] %v5707_v47 }
  0x71   : > { %4723 = vmatmul.mubr.msk.f32.gmra.mxu1 %vm268_vm1, %v5667_v50 }
  0x72   : > { %4776 = vmatmul.mubr.msk.f32.gmra.mxu0 %vm268_vm1, %v5671_v51  ;;  %4725 = vmatprep.mubr.msk.f32.mxu1 %vm268_vm1, %v5673_v3  ;;  %v5699_v51 = vld [vmem:[#allocation2 + $0x10f] sm:$0xff] }
  0x73   : > { %4778 = vmatprep.mubr.msk.f32.mxu0 %vm268_vm1, %v5675_v5  ;;  %v5703_v5 = vld [vmem:[#allocation2 + $0x131] sm:$0xff] }
  0x74   : > { %6794 = vst [vmem:[#allocation20_spill] sm:$0xff] %v5703_v5 }
  0x75   : > { %4726 = vmatmul.mubr.msk.f32.gmra.mxu1 %vm268_vm1, %v5683_v6 }
  0x76   : > { %4779 = vmatmul.mubr.msk.f32.gmra.mxu0 %vm268_vm1, %v5687_v9  ;;  %4728 = vmatprep.mubr.msk.f32.mxu1 %vm268_vm1, %v5689_v10  ;;  %v5715_v9 = vld [vmem:[#allocation2 + $0x12f] sm:$0xff] }
  0x77   : > { %4781 = vmatprep.mubr.msk.f32.mxu0 %vm268_vm1, %v5691_v15  ;;  %v5719_v15 = vld [vmem:[#allocation2 + $0x151] sm:$0xff] }
  0x78   : > { %6796 = vst [vmem:[#allocation22_spill] sm:$0xff] %v5719_v15 }
  0x79   : > { %4729 = vmatmul.mubr.msk.f32.gmra.mxu1 %vm268_vm1, %v5699_v51 }
  0x7a   : > { %4782 = vmatmul.mubr.msk.f32.gmra.mxu0 %vm268_vm1, %v5703_v5  ;;  %4731 = vmatprep.mubr.msk.f32.mxu1 %vm268_vm1, %v5705_v49  ;;  %v5731_v5 = vld [vmem:[#allocation2 + $0x14f] sm:$0xff] }
  0x7b   : > { %4784 = vmatprep.mubr.msk.f32.mxu0 %vm268_vm1, %v5707_v47  ;;  %v5735_v47 = vld [vmem:[#allocation2 + $0x171] sm:$0xff] }
  0x7c   : > { %6798 = vst [vmem:[#allocation24_spill] sm:$0xff] %v5735_v47 }
  0x7d   : > { %4732 = vmatmul.mubr.msk.f32.gmra.mxu1 %vm268_vm1, %v5715_v9 }
  0x7e   : > { %4785 = vmatmul.mubr.msk.f32.gmra.mxu0 %vm268_vm1, %v5719_v15  ;;  %4734 = vmatprep.mubr.msk.f32.mxu1 %vm268_vm1, %v5721_v37  ;;  %v5747_v15 = vld [vmem:[#allocation2 + $0x16f] sm:$0xff] }
  0x7f   : > { %4787 = vmatprep.mubr.msk.f32.mxu0 %vm268_vm1, %v5723_v34  ;;  %v5751_v34 = vld [vmem:[#allocation2 + $0x191] sm:$0xff] }
  0x80   : > { %6800 = vst [vmem:[#allocation26_spill] sm:$0xff] %v5751_v34 }
  0x81   : > { %4735 = vmatmul.mubr.msk.f32.gmra.mxu1 %vm268_vm1, %v5731_v5 }
  0x82   : > { %4788 = vmatmul.mubr.msk.f32.gmra.mxu0 %vm268_vm1, %v5735_v47  ;;  %4737 = vmatprep.mubr.msk.f32.mxu1 %vm268_vm1, %v5737_v27  ;;  %v5763_v47 = vld [vmem:[#allocation2 + $0x18f] sm:$0xff] }
  0x83   : > { %4790 = vmatprep.mubr.msk.f32.mxu0 %vm268_vm1, %v5739_v25  ;;  %v5767_v25 = vld [vmem:[#allocation2 + $0x1b1] sm:$0xff] }
  0x84   : > { %6802 = vst [vmem:[#allocation28_spill] sm:$0xff] %v5767_v25 }
  0x85   : > { %4738 = vmatmul.mubr.msk.f32.gmra.mxu1 %vm268_vm1, %v5747_v15 }
  0x86   : > { %4791 = vmatmul.mubr.msk.f32.gmra.mxu0 %vm268_vm1, %v5751_v34  ;;  %4740 = vmatprep.mubr.msk.f32.mxu1 %vm268_vm1, %v5753_v23  ;;  %v5779_v34 = vld [vmem:[#allocation2 + $0x1af] sm:$0xff] }
  0x87   : > { %4793 = vmatprep.mubr.msk.f32.mxu0 %vm268_vm1, %v5755_v21  ;;  %v5783_v21 = vld [vmem:[#allocation2 + $0x1d1] sm:$0xff] }
  0x88   : > { %6804 = vst [vmem:[#allocation30_spill] sm:$0xff] %v5783_v21 }
  0x89   : > { %4741 = vmatmul.mubr.msk.f32.gmra.mxu1 %vm268_vm1, %v5763_v47 }
  0x8a   : > { %4794 = vmatmul.mubr.msk.f32.gmra.mxu0 %vm268_vm1, %v5767_v25  ;;  %4743 = vmatprep.mubr.msk.f32.mxu1 %vm268_vm1, %v5769_v19  ;;  %v5795_v25 = vld [vmem:[#allocation2 + $0x1cf] sm:$0xff] }
  0x8b   : > { %4796 = vmatprep.mubr.msk.f32.mxu0 %vm268_vm1, %v5771_v17  ;;  %v5799_v17 = vld [vmem:[#allocation2 + $0x1f1] sm:$0xff] }
  0x8d   : > { %4744 = vmatmul.mubr.msk.f32.gmra.mxu1 %vm268_vm1, %v5779_v34 }
  0x8e   : > { %4797 = vmatmul.mubr.msk.f32.gmra.mxu0 %vm268_vm1, %v5783_v21  ;;  %4746 = vmatprep.mubr.msk.f32.mxu1 %vm268_vm1, %v5785_v13  ;;  %v5809_v21 = vld [vmem:[#allocation2 + $0x1ef] sm:$0xff] }
  0x8f   : > { %4799 = vmatprep.mubr.msk.f32.mxu0 %vm268_vm1, %v5787_v11  ;;  %v5816_v11 = vld [vmem:[%s6715_s1 + $0x20] sm:$0xf] }
  0x91   : > { %4747 = vmatmul.mubr.msk.f32.gmra.mxu1 %vm268_vm1, %v5795_v25 }
  0x92   : > { %4800 = vmatmul.mubr.msk.f32.gmra.mxu0 %vm268_vm1, %v5799_v17  ;;  %4749 = vmatprep.mubr.msk.f32.mxu1 %vm268_vm1, %v5801_v7 }
  0x93   : > { %4854 = vmatprep.mubr.msk.f32.mxu0 %vm268_vm1, %v5403_v31  ;;  %v5833_v31 = vld [vmem:[%s6715_s1 + $0x1c] sm:$0xf] }
  0x95   : > { %4750 = vmatmul.mubr.msk.f32.gmra.mxu1 %vm268_vm1, %v5809_v21 }
  0x96   : > { %4855 = vmatmul.mubr.msk.f32.vlgmr.msra.gmra.mxu0 %vm268_vm1, %v5414_v33  ;;  %4804 = vmatprep.mubr.msk.f32.mxu1 %vm268_vm1, %v5561_v12  ;;  %v5963_v33 = vld [vmem:[#allocation2 + $0x20f] sm:$0xff] }
  0x97   : > { %4953 = vmatpush3.msk.msra.mxu0 %vm761_vm0, %v5551_v8  ;;  %4857 = vmatprep.mubr.msk.f32.mxu0 %vm268_vm1, %v5425_v35  ;;  %v6808_v35 = vld [vmem:[#allocation3_spill] sm:$0xff] }
  0x98   : > { %5052 = vmatprep.subr.msk.mxu0 %vm761_vm0, %v5816_v11 }
  0x99   : > { %4805 = vmatmul.mubr.msk.f32.vlgmr.msra.gmra.mxu1 %vm268_vm1, %v5583_v16 }
  0x9a   : > { %4858 = vmatmul.mubr.msk.f32.gmra.mxu0 %vm268_vm1, %v5435_v39  ;;  %4903 = vmatpush3.msk.msra.mxu1 %vm761_vm0, %v5572_v14  ;;  %v6810_v39 = vld [vmem:[#allocation5_spill] sm:$0xff]  ;;  %v6828_v14 = vld [vmem:[#allocation23_spill] sm:$0xff] }
  0x9b   : > { %4807 = vmatprep.mubr.msk.f32.mxu1 %vm268_vm1, %v5589_v18  ;;  %4860 = vmatprep.mubr.msk.f32.mxu0 %vm268_vm1, %v5443_v41  ;;  %v6812_v41 = vld [vmem:[#allocation7_spill] sm:$0xff] }
  0x9c   : > { %5002 = vmatprep.subr.msk.mxu1 %vm761_vm0, %v5833_v31 }
  0x9d   : > { %4808 = vmatmul.mubr.msk.f32.gmra.mxu1 %vm268_vm1, %v5603_v20 }
  0x9e   : > { %4861 = vmatmul.mubr.msk.f32.gmra.mxu0 %vm268_vm1, %v5459_v44  ;;  %4810 = vmatprep.mubr.msk.f32.mxu1 %vm268_vm1, %v5609_v22  ;;  %v6815_v44 = vld [vmem:[#allocation10_spill] sm:$0xff] }
  0x9f   : > { %4863 = vmatprep.mubr.msk.f32.mxu0 %vm268_vm1, %v5461_v45  ;;  %v6816_v45 = vld [vmem:[#allocation11_spill] sm:$0xff] }
  0xa1   : > { %4811 = vmatmul.mubr.msk.f32.gmra.mxu1 %vm268_vm1, %v5619_v24 }
  0xa2   : > { %4864 = vmatmul.mubr.msk.f32.gmra.mxu0 %vm268_vm1, %v5485_v53  ;;  %4813 = vmatprep.mubr.msk.f32.mxu1 %vm268_vm1, %v5625_v26  ;;  %v6818_v53 = vld [vmem:[#allocation13_spill] sm:$0xff] }
  0xa3   : > { %4866 = vmatprep.mubr.msk.f32.mxu0 %vm268_vm1, %v5489_v55  ;;  %v6820_v55 = vld [vmem:[#allocation15_spill] sm:$0xff] }
  0xa5   : > { %4814 = vmatmul.mubr.msk.f32.gmra.mxu1 %vm268_vm1, %v5635_v28 }
  0xa6   : > { %4867 = vmatmul.mubr.msk.f32.gmra.mxu0 %vm268_vm1, %v5501_v57  ;;  %4816 = vmatprep.mubr.msk.f32.mxu1 %vm268_vm1, %v5641_v36  ;;  %v6822_v57 = vld [vmem:[#allocation17_spill] sm:$0xff] }
  0xa7   : > { %4869 = vmatprep.mubr.msk.f32.mxu0 %vm268_vm1, %v5505_v59  ;;  %v6823_v59 = vld [vmem:[#allocation18_spill] sm:$0xff] }
  0xa9   : > { %4817 = vmatmul.mubr.msk.f32.gmra.mxu1 %vm268_vm1, %v5651_v46 }
  0xaa   : > { %4870 = vmatmul.mubr.msk.f32.gmra.mxu0 %vm268_vm1, %v5517_v61  ;;  %4819 = vmatprep.mubr.msk.f32.mxu1 %vm268_vm1, %v5657_v48  ;;  %v6824_v61 = vld [vmem:[#allocation19_spill] sm:$0xff] }
  0xab   : > { %4872 = vmatprep.mubr.msk.f32.mxu0 %vm268_vm1, %v5521_v63  ;;  %v6825_v63 = vld [vmem:[#allocation20_spill] sm:$0xff] }
  0xad   : > { %4820 = vmatmul.mubr.msk.f32.gmra.mxu1 %vm268_vm1, %v5667_v50 }
  0xae   : > { %4873 = vmatmul.mubr.msk.f32.gmra.mxu0 %vm268_vm1, %v5533_v1  ;;  %4822 = vmatprep.mubr.msk.f32.mxu1 %vm268_vm1, %v5673_v3  ;;  %v6826_v1 = vld [vmem:[#allocation21_spill] sm:$0xff] }
  0xaf   : > { %4875 = vmatprep.mubr.msk.f32.mxu0 %vm268_vm1, %v5399_v29  ;;  %v5943_v29 = vld [vmem:[#allocation2 + $0x208] sm:$0xff] }
  0xb0   : > { %6806 = vst [vmem:[#allocation32_spill] sm:$0xff] %v5943_v29 }
  0xb1   : > { %4823 = vmatmul.mubr.msk.f32.gmra.mxu1 %vm268_vm1, %v5683_v6 }
  0xb2   : > { %4876 = vmatmul.mubr.msk.f32.gmra.mxu0 %vm268_vm1, %v5401_v30  ;;  %4825 = vmatprep.mubr.msk.f32.mxu1 %vm268_vm1, %v5689_v10  ;;  %v5953_v30 = vld [vmem:[#allocation2 + $0x210] sm:$0xff] }
  0xb3   : > { %4878 = vmatprep.mubr.msk.f32.mxu0 %vm268_vm1, %v5412_v32  ;;  %6807 = vst [vmem:[#allocation33_spill] sm:$0xff] %v5953_v30  ;;  %v5955_v32 = vld [vmem:[#allocation2 + $0x207] sm:$0xff] }
  0xb5   : > { %4826 = vmatmul.mubr.msk.f32.gmra.mxu1 %vm268_vm1, %v5699_v51 }
  0xb6   : > { %4879 = vmatmul.mubr.msk.f32.gmra.mxu0 %vm268_vm1, %v5433_v38  ;;  %4828 = vmatprep.mubr.msk.f32.mxu1 %vm268_vm1, %v5705_v49  ;;  %v6809_v38 = vld [vmem:[#allocation4_spill] sm:$0xff] }
  0xb7   : > { %4881 = vmatprep.mubr.msk.f32.mxu0 %vm268_vm1, %v5441_v40  ;;  %v6811_v40 = vld [vmem:[#allocation6_spill] sm:$0xff] }
  0xb9   : > { %4829 = vmatmul.mubr.msk.f32.gmra.mxu1 %vm268_vm1, %v5715_v9 }
  0xba   : > { %4882 = vmatmul.mubr.msk.f32.gmra.mxu0 %vm268_vm1, %v5451_v42  ;;  %4831 = vmatprep.mubr.msk.f32.mxu1 %vm268_vm1, %v5721_v37  ;;  %v6813_v42 = vld [vmem:[#allocation8_spill] sm:$0xff] }
  0xbb   : > { %4884 = vmatprep.mubr.msk.f32.mxu0 %vm268_vm1, %v5457_v43  ;;  %v6814_v43 = vld [vmem:[#allocation9_spill] sm:$0xff] }
  0xbd   : > { %4832 = vmatmul.mubr.msk.f32.gmra.mxu1 %vm268_vm1, %v5731_v5 }
  0xbe   : > { %4885 = vmatmul.mubr.msk.f32.gmra.mxu0 %vm268_vm1, %v5481_v52  ;;  %4834 = vmatprep.mubr.msk.f32.mxu1 %vm268_vm1, %v5737_v27  ;;  %v6817_v52 = vld [vmem:[#allocation12_spill] sm:$0xff] }
  0xbf   : > { %4887 = vmatprep.mubr.msk.f32.mxu0 %vm268_vm1, %v5487_v54  ;;  %v6819_v54 = vld [vmem:[#allocation14_spill] sm:$0xff] }
  0xc1   : > { %4835 = vmatmul.mubr.msk.f32.gmra.mxu1 %vm268_vm1, %v5747_v15 }
  0xc2   : > { %4888 = vmatmul.mubr.msk.f32.gmra.mxu0 %vm268_vm1, %v5497_v56  ;;  %4837 = vmatprep.mubr.msk.f32.mxu1 %vm268_vm1, %v5753_v23  ;;  %v6821_v56 = vld [vmem:[#allocation16_spill] sm:$0xff] }
  0xc3   : > { %4890 = vmatprep.mubr.msk.f32.mxu0 %vm268_vm1, %v5503_v58 }
  0xc5   : > { %4838 = vmatmul.mubr.msk.f32.gmra.mxu1 %vm268_vm1, %v5763_v47 }
  0xc6   : > { %4891 = vmatmul.mubr.msk.f32.gmra.mxu0 %vm268_vm1, %v5513_v60  ;;  %4840 = vmatprep.mubr.msk.f32.mxu1 %vm268_vm1, %v5769_v19 }
  0xc7   : > { %4893 = vmatprep.mubr.msk.f32.mxu0 %vm268_vm1, %v5519_v62 }
  0xc9   : > { %4841 = vmatmul.mubr.msk.f32.gmra.mxu1 %vm268_vm1, %v5779_v34 }
  0xca   : > { %4894 = vmatmul.mubr.msk.f32.gmra.mxu0 %vm268_vm1, %v5529_v0  ;;  %4843 = vmatprep.mubr.msk.f32.mxu1 %vm268_vm1, %v5785_v13 }
  0xcb   : > { %4896 = vmatprep.mubr.msk.f32.mxu0 %vm268_vm1, %v5535_v2 }
  0xcd   : > { %4844 = vmatmul.mubr.msk.f32.gmra.mxu1 %vm268_vm1, %v5795_v25 }
  0xce   : > { %4897 = vmatmul.mubr.msk.f32.gmra.mxu0 %vm268_vm1, %v5543_v4  ;;  %4846 = vmatprep.mubr.msk.f32.mxu1 %vm268_vm1, %v5801_v7 }
  0xcf   : > { %4899 = vmatprep.mubr.msk.f32.mxu0 %vm268_vm1, %v5943_v29 }
  0xd1   : > { %4847 = vmatmul.mubr.msk.f32.gmra.mxu1 %vm268_vm1, %v5809_v21 }
  0xd2   : > { %4900 = vmatmul.mubr.msk.f32.gmra.mxu0 %vm268_vm1, %v5953_v30  ;;  %4849 = vmatprep.mubr.msk.f32.mxu1 %vm268_vm1, %v5955_v32 }
  0xd3   : > { %4954 = vmatprep.mubr.msk.f32.mxu0 %vm268_vm1, %v5589_v18 }
  0xd5   : > { %4850 = vmatmul.mubr.msk.f32.gmra.mxu1 %vm268_vm1, %v5963_v33  ;;  %v6035_v58 = vpop.f32.mrf.mxu0 }
  0xd6   : > { %4955 = vmatmul.mubr.msk.f32.vlgmr.msra.gmra.mxu0 %vm268_vm1, %v5603_v20  ;;  %4904 = vmatprep.mubr.msk.f32.mxu1 %vm268_vm1, %v6808_v35 }
  0xd7   : > { %5053 = vmatpush3.msk.msra.mxu0 %vm761_vm0, %v5816_v11  ;;  %4957 = vmatprep.mubr.msk.f32.mxu0 %vm268_vm1, %v5609_v22  ;;  %v6041_v60 = vpop.f32.mrf.mxu0  ;;  %v6827_v11 = vld [vmem:[#allocation22_spill] sm:$0xff]  ;;  %v6829_v22 = vld [vmem:[#allocation24_spill] sm:$0xff] }
  0xd9   : > { %4905 = vmatmul.mubr.msk.f32.vlgmr.msra.gmra.mxu1 %vm268_vm1, %v6809_v38 }
  0xda   : > { %4958 = vmatmul.mubr.msk.f32.gmra.mxu0 %vm268_vm1, %v5619_v24  ;;  %5003 = vmatpush3.msk.msra.mxu1 %vm761_vm0, %v5833_v31  ;;  %v6830_v24 = vld [vmem:[#allocation25_spill] sm:$0xff] }
  0xdb   : > { %4907 = vmatprep.mubr.msk.f32.mxu1 %vm268_vm1, %v6810_v39  ;;  %4960 = vmatprep.mubr.msk.f32.mxu0 %vm268_vm1, %v5625_v26 }
  0xdd   : > { %4908 = vmatmul.mubr.msk.f32.gmra.mxu1 %vm268_vm1, %v6811_v40 }
  0xde   : > { %4961 = vmatmul.mubr.msk.f32.gmra.mxu0 %vm268_vm1, %v5635_v28  ;;  %4910 = vmatprep.mubr.msk.f32.mxu1 %vm268_vm1, %v6812_v41  ;;  %v6831_v28 = vld [vmem:[#allocation26_spill] sm:$0xff] }
  0xdf   : > { %4963 = vmatprep.mubr.msk.f32.mxu0 %vm268_vm1, %v5641_v36 }
  0xe1   : > { %4911 = vmatmul.mubr.msk.f32.gmra.mxu1 %vm268_vm1, %v6813_v42 }
  0xe2   : > { %4964 = vmatmul.mubr.msk.f32.gmra.mxu0 %vm268_vm1, %v5651_v46  ;;  %4913 = vmatprep.mubr.msk.f32.mxu1 %vm268_vm1, %v6814_v43 }
  0xe3   : > { %4966 = vmatprep.mubr.msk.f32.mxu0 %vm268_vm1, %v5657_v48 }
  0xe5   : > { %4914 = vmatmul.mubr.msk.f32.gmra.mxu1 %vm268_vm1, %v6815_v44 }
  0xe6   : > { %4967 = vmatmul.mubr.msk.f32.gmra.mxu0 %vm268_vm1, %v5667_v50  ;;  %4916 = vmatprep.mubr.msk.f32.mxu1 %vm268_vm1, %v6816_v45  ;;  %v597_v50 = vld [vmem:[#allocation2 + $0x227] sm:$0xff] }
  0xe7   : > { %4969 = vmatprep.mubr.msk.f32.mxu0 %vm268_vm1, %v5673_v3  ;;  %v6836_v3 = vld [vmem:[#allocation30_spill] sm:$0xff] }
  0xe9   : > { %4917 = vmatmul.mubr.msk.f32.gmra.mxu1 %vm268_vm1, %v6817_v52 }
  0xea   : > { %4970 = vmatmul.mubr.msk.f32.gmra.mxu0 %vm268_vm1, %v5683_v6  ;;  %4919 = vmatprep.mubr.msk.f32.mxu1 %vm268_vm1, %v6818_v53  ;;  %v598_v6 = vld [vmem:[#allocation2 + $0x22f] sm:$0xff] }
  0xeb   : > { %4972 = vmatprep.mubr.msk.f32.mxu0 %vm268_vm1, %v5689_v10 }
  0xed   : > { %4920 = vmatmul.mubr.msk.f32.gmra.mxu1 %vm268_vm1, %v6819_v54 }
  0xee   : > { %4973 = vmatmul.mubr.msk.f32.gmra.mxu0 %vm268_vm1, %v5699_v51  ;;  %4922 = vmatprep.mubr.msk.f32.mxu1 %vm268_vm1, %v6820_v55 }
  0xef   : > { %4975 = vmatprep.mubr.msk.f32.mxu0 %vm268_vm1, %v5705_v49 }
  0xf1   : > { %4923 = vmatmul.mubr.msk.f32.gmra.mxu1 %vm268_vm1, %v6821_v56 }
  0xf2   : > { %4976 = vmatmul.mubr.msk.f32.gmra.mxu0 %vm268_vm1, %v5715_v9  ;;  %4925 = vmatprep.mubr.msk.f32.mxu1 %vm268_vm1, %v6822_v57 }
  0xf3   : > { %4978 = vmatprep.mubr.msk.f32.mxu0 %vm268_vm1, %v5721_v37 }
  0xf5   : > { %4926 = vmatmul.mubr.msk.f32.gmra.mxu1 %vm268_vm1, %v6823_v59 }
  0xf6   : > { %4979 = vmatmul.mubr.msk.f32.gmra.mxu0 %vm268_vm1, %v5731_v5  ;;  %4928 = vmatprep.mubr.msk.f32.mxu1 %vm268_vm1, %v6824_v61 }
  0xf7   : > { %4981 = vmatprep.mubr.msk.f32.mxu0 %vm268_vm1, %v5737_v27 }
  0xf9   : > { %v6047_v62 = vpop.f32.mrf.mxu1  ;;  %4929 = vmatmul.mubr.msk.f32.gmra.mxu1 %vm268_vm1, %v6825_v63 }
  0xfa   : > { %v6051_v0 = vpop.f32.mrf.mxu0  ;;  %4982 = vmatmul.mubr.msk.f32.gmra.mxu0 %vm268_vm1, %v5747_v15  ;;  %4931 = vmatprep.mubr.msk.f32.mxu1 %vm268_vm1, %v6826_v1  ;;  %v6142_v15 = vld [vmem:[#allocation2 + $0x209] sm:$0xff] }
  0xfb   : > { %4984 = vmatprep.mubr.msk.f32.mxu0 %vm268_vm1, %v5753_v23  ;;  %v6059_v2 = vpop.f32.mrf.mxu1 }
  0xfc   : > { %v6061_v4 = vpop.f32.mrf.mxu0 }
  0xfd   : > { %v6063_v8 = vpop.f32.mrf.mxu1  ;;  %4932 = vmatmul.mubr.msk.f32.gmra.mxu1 %vm268_vm1, %v6827_v11 }
  0xfe   : > { %v6067_v12 = vpop.f32.mrf.mxu0  ;;  %4985 = vmatmul.mubr.msk.f32.gmra.mxu0 %vm268_vm1, %v5763_v47  ;;  %4934 = vmatprep.mubr.msk.f32.mxu1 %vm268_vm1, %v6828_v14  ;;  %v6833_v47 = vld [vmem:[#allocation28_spill] sm:$0xff] }
  0xff   : > { %4987 = vmatprep.mubr.msk.f32.mxu0 %vm268_vm1, %v5769_v19  ;;  %v6075_v16 = vpop.f32.mrf.mxu1 }
 0x100   : > { %v6077_v18 = vpop.f32.mrf.mxu0 }
 0x101   : > { %v6079_v20 = vpop.f32.mrf.mxu1  ;;  %4935 = vmatmul.mubr.msk.f32.gmra.mxu1 %vm268_vm1, %v6829_v22 }
 0x102   : > { %v6083_v23 = vpop.f32.mrf.mxu0  ;;  %4988 = vmatmul.mubr.msk.f32.gmra.mxu0 %vm268_vm1, %v5779_v34  ;;  %4937 = vmatprep.mubr.msk.f32.mxu1 %vm268_vm1, %v6830_v24  ;;  %v6832_v34 = vld [vmem:[#allocation27_spill] sm:$0xff] }
 0x103   : > { %4990 = vmatprep.mubr.msk.f32.mxu0 %vm268_vm1, %v5785_v13  ;;  %v6091_v19 = vpop.f32.mrf.mxu1 }
 0x104   : > { %v6093_v26 = vpop.f32.mrf.mxu0 }
 0x105   : > { %v6095_v27 = vpop.f32.mrf.mxu1  ;;  %4938 = vmatmul.mubr.msk.f32.gmra.mxu1 %vm268_vm1, %v6831_v28 }
 0x106   : > { %v6099_v36 = vpop.f32.mrf.mxu0  ;;  %4991 = vmatmul.mubr.msk.f32.gmra.mxu0 %vm268_vm1, %v5795_v25  ;;  %4940 = vmatprep.mubr.msk.f32.mxu1 %vm268_vm1, %v6832_v34  ;;  %v6834_v25 = vld [vmem:[#allocation29_spill] sm:$0xff] }
 0x107   : > { %4993 = vmatprep.mubr.msk.f32.mxu0 %vm268_vm1, %v5801_v7  ;;  %v6107_v13 = vpop.f32.mrf.mxu1 }
 0x108   : > { %v6109_v37 = vpop.f32.mrf.mxu0 }
 0x109   : > { %v6111_v46 = vpop.f32.mrf.mxu1  ;;  %4941 = vmatmul.mubr.msk.f32.gmra.mxu1 %vm268_vm1, %v6833_v47 }
 0x10a   : > { %v6115_v48 = vpop.f32.mrf.mxu0  ;;  %4994 = vmatmul.mubr.msk.f32.gmra.mxu0 %vm268_vm1, %v5809_v21  ;;  %4943 = vmatprep.mubr.msk.f32.mxu1 %vm268_vm1, %v6834_v25  ;;  %v6837_v21 = vld [vmem:[#allocation31_spill] sm:$0xff] }
 0x10b   : > { %4996 = vmatprep.mubr.msk.f32.mxu0 %vm268_vm1, %v5955_v32  ;;  %v6123_v7 = vpop.f32.mrf.mxu1 }
 0x10c   : > { %v6125_v49 = vpop.f32.mrf.mxu0 }
 0x10d   : > { %v6127_v51 = vpop.f32.mrf.mxu1  ;;  %4944 = vmatmul.mubr.msk.f32.gmra.mxu1 %vm268_vm1, %v6836_v3 }
 0x10e   : > { %6835 = vst [vmem:[#allocation3_spill] sm:$0xff] %v6127_v51  ;;  %v6131_v5 = vpop.f32.mrf.mxu0  ;;  %4997 = vmatmul.mubr.msk.f32.gmra.mxu0 %vm268_vm1, %v5963_v33  ;;  %4946 = vmatprep.mubr.msk.f32.mxu1 %vm268_vm1, %v6837_v21  ;;  %v6153_v33 = vld [vmem:[#allocation2 + $0x211] sm:$0xff] }
 0x10f   : > { %4999 = vmatprep.mubr.msk.f32.mxu0 %vm268_vm1, %v597_v50  ;;  %v6138_v9 = vpop.f32.mrf.mxu1  ;;  %v599_v50 = vld [vmem:[#allocation2 + $0x48] sm:$0xff]  ;;  %v600_v21 = vld [vmem:[#allocation2 + $0x50] sm:$0xff] }
 0x110   : > { %6838 = vst [vmem:[#allocation4_spill] sm:$0xff] %v6138_v9  ;;  %v6140_v10 = vpop.f32.mrf.mxu0 }
 0x111   : > { %v6144_v31 = vpop.f32.mrf.mxu1  ;;  %4947 = vmatmul.mubr.msk.f32.gmra.mxu1 %vm268_vm1, %v5799_v17 }
 0x112   : > { %6839 = vst [vmem:[#allocation5_spill] sm:$0xff] %v6144_v31  ;;  %v6148_v32 = vpop.f32.mrf.mxu0  ;;  %5000 = vmatmul.mubr.msk.f32.gmra.mxu0 %vm268_vm1, %v598_v6  ;;  %4949 = vmatprep.mubr.msk.f32.mxu1 %vm268_vm1, %v6142_v15 }
 0x113   : > { %5054 = vmatprep.mubr.msk.f32.mxu0 %vm268_vm1, %v6810_v39  ;;  %v6157_v35 = vpop.f32.mrf.mxu1 }
 0x114   : > { %6840 = vst [vmem:[#allocation6_spill] sm:$0xff] %v6157_v35  ;;  %v6159_v38 = vpop.f32.mrf.mxu0  ;;  %v601_v35 = vld [vmem:[#allocation2 + $0x68] sm:$0xff] }
 0x115   : > { %v6161_v3 = vpop.f32.mrf.mxu1  ;;  %4950 = vmatmul.mubr.msk.f32.gmra.mxu1 %vm268_vm1, %v6153_v33 }
 0x116   : > { %6841 = vst [vmem:[#allocation7_spill] sm:$0xff] %v6161_v3  ;;  %v4756_v17 = vpop.f32.mrf.mxu0  ;;  %5055 = vmatmul.mubr.msk.f32.vlgmr.msra.gmra.mxu0 %vm268_vm1, %v6811_v40  ;;  %5004 = vmatprep.mubr.msk.f32.mxu1 %vm268_vm1, %v599_v50  ;;  %v602_v40 = vld [vmem:[#allocation2 + $0x70] sm:$0xff] }
 0x117   : > { %5057 = vmatprep.mubr.msk.f32.mxu0 %vm268_vm1, %v6812_v41  ;;  %v6170_v39 = vpop.f32.mrf.mxu1 }
 0x118   : > { %6842 = vst [vmem:[#allocation8_spill] sm:$0xff] %v6170_v39  ;;  %v1480_v6 = vpop.f32.mrf.mxu0  ;;  %v603_v39 = vld [vmem:[#allocation2 + $0x88] sm:$0xff] }
 0x119   : > { %v4706_v31 = vpop.f32.mrf.mxu1  ;;  %5005 = vmatmul.mubr.msk.f32.vlgmr.msra.gmra.mxu1 %vm268_vm1, %v600_v21 }
 0x11a   : > { %v4759_v3 = vpop.f32.mrf.mxu0  ;;  %5058 = vmatmul.mubr.msk.f32.gmra.mxu0 %vm268_vm1, %v6813_v42  ;;  %v1161_v30 = vadd.f32 %v4706_v31, %v6035_v58  ;;  %5007 = vmatprep.mubr.msk.f32.mxu1 %vm268_vm1, %v601_v35 }
 0x11b   : > { %5060 = vmatprep.mubr.msk.f32.mxu0 %vm268_vm1, %v6814_v43  ;;  %v1155_v41 = vpop.f32.mrf.mxu1  ;;  %v604_v43 = vld [vmem:[#allocation2 + $0x90] sm:$0xff] }
 0x11c   : > { %v1490_v50 = vpop.f32.mrf.mxu0  ;;  %v6179_v9 = vadd.f32 %v4756_v17, %v1161_v30  ;;  %v1156_v29 = vadd.f32 %v1155_v41, %v6041_v60  ;;  %v605_v60 = vld [vmem:[#allocation2 + $0xa8] sm:$0xff] }
 0x11d   : > { %v4709_v21 = vpop.f32.mrf.mxu1  ;;  %5008 = vmatmul.mubr.msk.f32.gmra.mxu1 %vm268_vm1, %v602_v40 }
 0x11e   : > { %v4762_v51 = vpop.f32.mrf.mxu0  ;;  %5061 = vmatmul.mubr.msk.f32.gmra.mxu0 %vm268_vm1, %v6815_v44  ;;  %v6185_v42 = vadd.f32 %v1480_v6, %v1156_v29  ;;  %v1171_v58 = vadd.f32 %v4709_v21, %v6051_v0  ;;  %5010 = vmatprep.mubr.msk.f32.mxu1 %vm268_vm1, %v603_v39 }
 0x11f   : > { %5063 = vmatprep.mubr.msk.f32.mxu0 %vm268_vm1, %v6816_v45  ;;  %v1165_v30 = vpop.f32.mrf.mxu1  ;;  %v606_v45 = vld [vmem:[#allocation2 + $0xb0] sm:$0xff] }
 0x120   : > { %v1500_v31 = vpop.f32.mrf.mxu0  ;;  %v6191_v35 = vadd.f32 %v4759_v3, %v1171_v58  ;;  %v1166_v17 = vadd.f32 %v1165_v30, %v6061_v4  ;;  %v607_v4 = vld [vmem:[#allocation2 + $0xc8] sm:$0xff] }
 0x121   : > { %v4712_v40 = vpop.f32.mrf.mxu1  ;;  %5011 = vmatmul.mubr.msk.f32.gmra.mxu1 %vm268_vm1, %v604_v43 }
 0x122   : > { %v4765_v29 = vpop.f32.mrf.mxu0  ;;  %5064 = vmatmul.mubr.msk.f32.gmra.mxu0 %vm268_vm1, %v6817_v52  ;;  %v6197_v44 = vadd.f32 %v1490_v50, %v1166_v17  ;;  %v1181_v0 = vadd.f32 %v4712_v40, %v6067_v12  ;;  %5013 = vmatprep.mubr.msk.f32.mxu1 %vm268_vm1, %v605_v60 }
 0x123   : > { %5066 = vmatprep.mubr.msk.f32.mxu0 %vm268_vm1, %v6818_v53  ;;  %v1175_v3 = vpop.f32.mrf.mxu1  ;;  %v608_v53 = vld [vmem:[#allocation2 + $0xd0] sm:$0xff] }
 0x124   : > { %v1510_v39 = vpop.f32.mrf.mxu0  ;;  %v6203_v6 = vadd.f32 %v4762_v51, %v1181_v0  ;;  %v1176_v41 = vadd.f32 %v1175_v3, %v6077_v18  ;;  %v609_v18 = vld [vmem:[#allocation2 + $0xe8] sm:$0xff] }
 0x125   : > { %v4715_v21 = vpop.f32.mrf.mxu1  ;;  %5014 = vmatmul.mubr.msk.f32.gmra.mxu1 %vm268_vm1, %v606_v45 }
 0x126   : > { %v4768_v52 = vpop.f32.mrf.mxu0  ;;  %5067 = vmatmul.mubr.msk.f32.gmra.mxu0 %vm268_vm1, %v6819_v54  ;;  %v6209_v12 = vadd.f32 %v1500_v31, %v1176_v41  ;;  %v1191_v50 = vadd.f32 %v4715_v21, %v6083_v23  ;;  %5016 = vmatprep.mubr.msk.f32.mxu1 %vm268_vm1, %v607_v4 }
 0x127   : > { %5069 = vmatprep.mubr.msk.f32.mxu0 %vm268_vm1, %v6820_v55  ;;  %v1185_v51 = vpop.f32.mrf.mxu1  ;;  %v610_v55 = vld [vmem:[#allocation2 + $0xf0] sm:$0xff] }
 0x128   : > { %v1520_v58 = vpop.f32.mrf.mxu0  ;;  %v6215_v43 = vadd.f32 %v4765_v29, %v1191_v50  ;;  %v1186_v30 = vadd.f32 %v1185_v51, %v6093_v26  ;;  %v611_v26 = vld [vmem:[#allocation2 + $0x108] sm:$0xff] }
 0x129   : > { %v4718_v60 = vpop.f32.mrf.mxu1  ;;  %5017 = vmatmul.mubr.msk.f32.gmra.mxu1 %vm268_vm1, %v608_v53 }
 0x12a   : > { %v4771_v54 = vpop.f32.mrf.mxu0  ;;  %5070 = vmatmul.mubr.msk.f32.gmra.mxu0 %vm268_vm1, %v6821_v56  ;;  %v6221_v23 = vadd.f32 %v1510_v39, %v1186_v30  ;;  %v1201_v31 = vadd.f32 %v4718_v60, %v6099_v36  ;;  %5019 = vmatprep.mubr.msk.f32.mxu1 %vm268_vm1, %v609_v18 }
 0x12b   : > { %5072 = vmatprep.mubr.msk.f32.mxu0 %vm268_vm1, %v6822_v57  ;;  %v1195_v17 = vpop.f32.mrf.mxu1  ;;  %v612_v57 = vld [vmem:[#allocation2 + $0x110] sm:$0xff] }
 0x12c   : > { %v1530_v40 = vpop.f32.mrf.mxu0  ;;  %v6227_v29 = vadd.f32 %v4768_v52, %v1201_v31  ;;  %v1196_v0 = vadd.f32 %v1195_v17, %v6109_v37  ;;  %v613_v37 = vld [vmem:[#allocation2 + $0x128] sm:$0xff] }
 0x12d   : > { %v4721_v45 = vpop.f32.mrf.mxu1  ;;  %5020 = vmatmul.mubr.msk.f32.gmra.mxu1 %vm268_vm1, %v610_v55 }
 0x12e   : > { %v4774_v56 = vpop.f32.mrf.mxu0  ;;  %5073 = vmatmul.mubr.msk.f32.gmra.mxu0 %vm268_vm1, %v6823_v59  ;;  %v6233_v36 = vadd.f32 %v1520_v58, %v1196_v0  ;;  %v1211_v3 = vadd.f32 %v4721_v45, %v6115_v48  ;;  %5022 = vmatprep.mubr.msk.f32.mxu1 %vm268_vm1, %v611_v26 }
 0x12f   : > { %5075 = vmatprep.mubr.msk.f32.mxu0 %vm268_vm1, %v6824_v61  ;;  %v1205_v39 = vpop.f32.mrf.mxu1  ;;  %v614_v61 = vld [vmem:[#allocation2 + $0x130] sm:$0xff] }
 0x130   : > { %v1540_v4 = vpop.f32.mrf.mxu0  ;;  %v6239_v41 = vadd.f32 %v4771_v54, %v1211_v3  ;;  %v1206_v21 = vadd.f32 %v1205_v39, %v6125_v49  ;;  %v615_v49 = vld [vmem:[#allocation2 + $0x148] sm:$0xff] }
 0x131   : > { %v4724_v52 = vpop.f32.mrf.mxu1  ;;  %5023 = vmatmul.mubr.msk.f32.gmra.mxu1 %vm268_vm1, %v612_v57 }
 0x132   : > { %v4777_v59 = vpop.f32.mrf.mxu0  ;;  %5076 = vmatmul.mubr.msk.f32.gmra.mxu0 %vm268_vm1, %v6825_v63  ;;  %v6245_v48 = vadd.f32 %v1530_v40, %v1206_v21  ;;  %v1221_v50 = vadd.f32 %v4724_v52, %v6131_v5  ;;  %5025 = vmatprep.mubr.msk.f32.mxu1 %vm268_vm1, %v613_v37 }
 0x133   : > { %5078 = vmatprep.mubr.msk.f32.mxu0 %vm268_vm1, %v6826_v1  ;;  %v1215_v53 = vpop.f32.mrf.mxu1  ;;  %v616_v1 = vld [vmem:[#allocation2 + $0x150] sm:$0xff] }
 0x134   : > { %v1550_v51 = vpop.f32.mrf.mxu0  ;;  %v6251_v58 = vadd.f32 %v4774_v56, %v1221_v50  ;;  %v1216_v18 = vadd.f32 %v1215_v53, %v6140_v10  ;;  %v617_v10 = vld [vmem:[#allocation2 + $0x168] sm:$0xff] }
 0x135   : > { %v4727_v30 = vpop.f32.mrf.mxu1  ;;  %5026 = vmatmul.mubr.msk.f32.gmra.mxu1 %vm268_vm1, %v614_v61  ;;  %v656_v61 = vld [vmem:[#allocation2 + $0x1d1] sm:$0xff] }
 0x136   : > { %v4780_v63 = vpop.f32.mrf.mxu0  ;;  %5079 = vmatmul.mubr.msk.f32.gmra.mxu0 %vm268_vm1, %v6827_v11  ;;  %v6257_v5 = vadd.f32 %v1540_v4, %v1216_v18  ;;  %v1231_v60 = vadd.f32 %v4727_v30, %v6148_v32  ;;  %5028 = vmatprep.mubr.msk.f32.mxu1 %vm268_vm1, %v615_v49  ;;  %v657_v49 = vld [vmem:[#allocation2 + $0x1e9] sm:$0xff] }
 0x137   : > { %5081 = vmatprep.mubr.msk.f32.mxu0 %vm268_vm1, %v6828_v14  ;;  %v1225_v54 = vpop.f32.mrf.mxu1  ;;  %v618_v14 = vld [vmem:[#allocation2 + $0x170] sm:$0xff] }
 0x138   : > { %v1560_v31 = vpop.f32.mrf.mxu0  ;;  %v6263_v55 = vadd.f32 %v4777_v59, %v1231_v60  ;;  %v1226_v17 = vadd.f32 %v1225_v54, %v6159_v38  ;;  %v619_v38 = vld [vmem:[#allocation2 + $0x188] sm:$0xff] }
 0x139   : > { %v4730_v40 = vpop.f32.mrf.mxu1  ;;  %5029 = vmatmul.mubr.msk.f32.gmra.mxu1 %vm268_vm1, %v616_v1  ;;  %v658_v1 = vld [vmem:[#allocation2 + $0x1f1] sm:$0xff] }
 0x13a   : > { %v4783_v11 = vpop.f32.mrf.mxu0  ;;  %5082 = vmatmul.mubr.msk.f32.gmra.mxu0 %vm268_vm1, %v6829_v22  ;;  %v6269_v32 = vadd.f32 %v1550_v51, %v1226_v17  ;;  %v1241_v26 = vadd.f32 %v4730_v40, %v6047_v62  ;;  %5031 = vmatprep.mubr.msk.f32.mxu1 %vm268_vm1, %v617_v10  ;;  %v623_v51 = vld [vmem:[#allocation2 + $0x1c8] sm:$0xff] }
 0x13b   : > { %5084 = vmatprep.mubr.msk.f32.mxu0 %vm268_vm1, %v6830_v24  ;;  %v1235_v0 = vpop.f32.mrf.mxu1  ;;  %v620_v24 = vld [vmem:[#allocation2 + $0x190] sm:$0xff]  ;;  %v625_v10 = vld [vmem:[#allocation2 + $0x1e8] sm:$0xff] }
 0x13c   : > { %v1570_v45 = vpop.f32.mrf.mxu0  ;;  %v6275_v56 = vadd.f32 %v4780_v63, %v1241_v26  ;;  %v1236_v3 = vadd.f32 %v1235_v0, %v6059_v2  ;;  %v621_v2 = vld [vmem:[#allocation2 + $0x1a8] sm:$0xff] }
 0x13d   : > { %v4733_v57 = vpop.f32.mrf.mxu1  ;;  %5032 = vmatmul.mubr.msk.f32.gmra.mxu1 %vm268_vm1, %v618_v14  ;;  %v626_v14 = vld [vmem:[#allocation2 + $0x1f0] sm:$0xff] }
 0x13e   : > { %v4786_v22 = vpop.f32.mrf.mxu0  ;;  %5085 = vmatmul.mubr.msk.f32.gmra.mxu0 %vm268_vm1, %v6831_v28  ;;  %v6281_v62 = vadd.f32 %v1560_v31, %v1236_v3  ;;  %v1251_v39 = vadd.f32 %v4733_v57, %v6063_v8  ;;  %5034 = vmatprep.mubr.msk.f32.mxu1 %vm268_vm1, %v619_v38  ;;  %v661_v38 = vld [vmem:[#allocation2 + $0x229] sm:$0xff] }
 0x13f   : > { %5087 = vmatprep.mubr.msk.f32.mxu0 %vm268_vm1, %v6832_v34  ;;  %v1245_v4 = vpop.f32.mrf.mxu1  ;;  %v622_v34 = vld [vmem:[#allocation2 + $0x1b0] sm:$0xff] }
 0x140   : > { %v1580_v37 = vpop.f32.mrf.mxu0  ;;  %v6287_v21 = vadd.f32 %v4783_v11, %v1251_v39  ;;  %v1246_v52 = vadd.f32 %v1245_v4, %v6075_v16  ;;  %v6843_v39 = vld [vmem:[#allocation3_spill] sm:$0xff]  ;;  %v6844_v4 = vld [vmem:[#allocation32_spill] sm:$0xff] }
 0x141   : > { %v4736_v59 = vpop.f32.mrf.mxu1  ;;  %5035 = vmatmul.mubr.msk.f32.gmra.mxu1 %vm268_vm1, %v620_v24 }
 0x142   : > { %v4789_v28 = vpop.f32.mrf.mxu0  ;;  %5088 = vmatmul.mubr.msk.f32.gmra.mxu0 %vm268_vm1, %v6833_v47  ;;  %v6293_v8 = vadd.f32 %v1570_v45, %v1246_v52  ;;  %v1261_v50 = vadd.f32 %v4736_v59, %v6079_v20  ;;  %5037 = vmatprep.mubr.msk.f32.mxu1 %vm268_vm1, %v621_v2  ;;  %v6845_v59 = vld [vmem:[#allocation4_spill] sm:$0xff] }
 0x143   : > { %5090 = vmatprep.mubr.msk.f32.mxu0 %vm268_vm1, %v6834_v25  ;;  %v1255_v53 = vpop.f32.mrf.mxu1  ;;  %v624_v25 = vld [vmem:[#allocation2 + $0x1d0] sm:$0xff] }
 0x144   : > { %v1590_v16 = vpop.f32.mrf.mxu0  ;;  %v6299_v18 = vadd.f32 %v4786_v22, %v1261_v50  ;;  %v1256_v30 = vadd.f32 %v1255_v53, %v6091_v19  ;;  %v6847_v53 = vld [vmem:[#allocation5_spill] sm:$0xff] }
 0x145   : > { %v4739_v47 = vpop.f32.mrf.mxu1  ;;  %5038 = vmatmul.mubr.msk.f32.gmra.mxu1 %vm268_vm1, %v622_v34  ;;  %v6846_v34 = vld [vmem:[#allocation33_spill] sm:$0xff] }
 0x146   : > { %v4792_v63 = vpop.f32.mrf.mxu0  ;;  %5091 = vmatmul.mubr.msk.f32.gmra.mxu0 %vm268_vm1, %v656_v61  ;;  %v6304_v20 = vadd.f32 %v1580_v37, %v1256_v30  ;;  %v1271_v60 = vadd.f32 %v4739_v47, %v6095_v27  ;;  %5040 = vmatprep.mubr.msk.f32.mxu1 %vm268_vm1, %v623_v51  ;;  %v630_v51 = vld [vmem:[#allocation2 + $0x230] sm:$0xff] }
 0x147   : > { %5093 = vmatprep.mubr.msk.f32.mxu0 %vm268_vm1, %v657_v49  ;;  %v1265_v54 = vpop.f32.mrf.mxu1 }
 0x148   : > { %v1600_v31 = vpop.f32.mrf.mxu0  ;;  %v6309_v19 = vadd.f32 %v4789_v28, %v1271_v60  ;;  %v1266_v17 = vadd.f32 %v1265_v54, %v6107_v13 }
 0x149   : > { %v4742_v40 = vpop.f32.mrf.mxu1  ;;  %5041 = vmatmul.mubr.msk.f32.gmra.mxu1 %vm268_vm1, %v624_v25 }
 0x14a   : > { %v4795_v11 = vpop.f32.mrf.mxu0  ;;  %5094 = vmatmul.mubr.msk.f32.gmra.mxu0 %vm268_vm1, %v658_v1  ;;  %v6314_v27 = vadd.f32 %v1590_v16, %v1266_v17  ;;  %v1281_v26 = vadd.f32 %v4742_v40, %v6111_v46  ;;  %5043 = vmatprep.mubr.msk.f32.mxu1 %vm268_vm1, %v625_v10 }
 0x14b   : > { %5096 = vmatprep.mubr.msk.f32.mxu0 %vm268_vm1, %v6142_v15  ;;  %v1275_v0 = vpop.f32.mrf.mxu1  ;;  %v662_v15 = vld [vmem:[#allocation2 + $0x231] sm:$0xff] }
 0x14c   : > { %v1610_v45 = vpop.f32.mrf.mxu0  ;;  %v6320_v13 = vadd.f32 %v4792_v63, %v1281_v26  ;;  %v1276_v3 = vadd.f32 %v1275_v0, %v6123_v7  ;;  %v629_v7 = vld [vmem:[#allocation2 + $0x228] sm:$0xff]  ;;  %v6848_v63 = vld [vmem:[#allocation6_spill] sm:$0xff] }
 0x14d   : > { %v4745_v57 = vpop.f32.mrf.mxu1  ;;  %5044 = vmatmul.mubr.msk.f32.gmra.mxu1 %vm268_vm1, %v626_v14  ;;  %v6850_v26 = vld [vmem:[#allocation8_spill] sm:$0xff] }
 0x14e   : > { %v4798_v22 = vpop.f32.mrf.mxu0  ;;  %5097 = vmatmul.mubr.msk.f32.gmra.mxu0 %vm268_vm1, %v6153_v33  ;;  %v6326_v46 = vadd.f32 %v1600_v31, %v1276_v3  ;;  %v1291_v24 = vadd.f32 %v4745_v57, %v6843_v39  ;;  %5046 = vmatprep.mubr.msk.f32.mxu1 %vm268_vm1, %v6844_v4  ;;  %v6849_v31 = vld [vmem:[#allocation7_spill] sm:$0xff] }
 0x14f   : > { %5099 = vmatprep.mubr.msk.f32.mxu0 %vm268_vm1, %v661_v38  ;;  %v1285_v37 = vpop.f32.mrf.mxu1 }
 0x150   : > { %v1620_v2 = vpop.f32.mrf.mxu0  ;;  %v6332_v52 = vadd.f32 %v4795_v11, %v1291_v24  ;;  %v1286_v28 = vadd.f32 %v1285_v37, %v6845_v59 }
 0x151   : > { %v4748_v50 = vpop.f32.mrf.mxu1  ;;  %5047 = vmatmul.mubr.msk.f32.gmra.mxu1 %vm268_vm1, %v6846_v34 }
 0x152   : > { %v4801_v33 = vpop.f32.mrf.mxu0  ;;  %5100 = vmatmul.mubr.msk.f32.gmra.mxu0 %vm268_vm1, %v662_v15  ;;  %v6338_v61 = vadd.f32 %v1610_v45, %v1286_v28  ;;  %v1301_v16 = vadd.f32 %v4748_v50, %v6847_v53  ;;  %5049 = vmatprep.mubr.msk.f32.mxu1 %vm268_vm1, %v629_v7 }
 0x153   : > { %v1295_v49 = vpop.f32.mrf.mxu1 }
 0x154   : > { %v1630_v30 = vpop.f32.mrf.mxu0  ;;  %v6342_v47 = vadd.f32 %v4798_v22, %v1301_v16  ;;  %v1296_v60 = vadd.f32 %v1295_v49, %v6848_v63 }
 0x155   : > { %v4751_v25 = vpop.f32.mrf.mxu1  ;;  %5050 = vmatmul.mubr.msk.f32.gmra.mxu1 %vm268_vm1, %v630_v51 }
 0x156   : > { %v4856_v1 = vpop.f32.mrf.mxu0  ;;  %v6346_v54 = vadd.f32 %v1620_v2, %v1296_v60  ;;  %v1311_v10 = vadd.f32 %v4751_v25, %v6849_v31 }
 0x157   : > { %v1305_v17 = vpop.f32.mrf.mxu1 }
 0x158   : > { %v2194_v40 = vpop.f32.mrf.mxu0  ;;  %v6349_v11 = vadd.f32 %v4801_v33, %v1311_v10  ;;  %v1306_v14 = vadd.f32 %v1305_v17, %v6850_v26 }
 0x159   : > { %v4806_v0 = vpop.f32.mrf.mxu1 }
 0x15a   : > { %v4859_v45 = vpop.f32.mrf.mxu0  ;;  %v6352_v38 = vadd.f32 %v1630_v30, %v1306_v14  ;;  %v1997_v3 = vadd.f32 %v4806_v0, %v6179_v9 }
 0x15b   : > { %v1837_v57 = vpop.f32.mrf.mxu1 }
 0x15c   : > { %v2204_v22 = vpop.f32.mrf.mxu0  ;;  %v6355_v39 = vadd.f32 %v4856_v1, %v1997_v3  ;;  %v1996_v24 = vadd.f32 %v1837_v57, %v6185_v42 }
 0x15d   : > { %v4809_v4 = vpop.f32.mrf.mxu1 }
 0x15e   : > { %v4862_v15 = vpop.f32.mrf.mxu0  ;;  %v6358_v37 = vadd.f32 %v2194_v40, %v1996_v24  ;;  %v1999_v2 = vadd.f32 %v4809_v4, %v6191_v35 }
 0x15f   : > { %v1847_v7 = vpop.f32.mrf.mxu1 }
 0x160   : > { %v2214_v59 = vpop.f32.mrf.mxu0  ;;  %v6361_v28 = vadd.f32 %v4859_v45, %v1999_v2  ;;  %v1998_v50 = vadd.f32 %v1847_v7, %v6197_v44 }
 0x161   : > { %v4812_v34 = vpop.f32.mrf.mxu1 }
 0x162   : > { %v4865_v9 = vpop.f32.mrf.mxu0  ;;  %v6364_v33 = vadd.f32 %v2204_v22, %v1998_v50  ;;  %v2001_v53 = vadd.f32 %v4812_v34, %v6203_v6 }
 0x163   : > { %v1857_v16 = vpop.f32.mrf.mxu1 }
 0x164   : > { %v2224_v42 = vpop.f32.mrf.mxu0  ;;  %v6367_v51 = vadd.f32 %v4862_v15, %v2001_v53  ;;  %v2000_v49 = vadd.f32 %v1857_v16, %v6209_v12 }
 0x165   : > { %v4815_v30 = vpop.f32.mrf.mxu1 }
 0x166   : > { %v4868_v35 = vpop.f32.mrf.mxu0  ;;  %v6370_v63 = vadd.f32 %v2214_v59, %v2000_v49  ;;  %v2003_v60 = vadd.f32 %v4815_v30, %v6215_v43 }
 0x167   : > { %v1867_v25 = vpop.f32.mrf.mxu1 }
 0x168   : > { %v2234_v44 = vpop.f32.mrf.mxu0  ;;  %v6373_v1 = vadd.f32 %v4865_v9, %v2003_v60  ;;  %v2002_v31 = vadd.f32 %v1867_v25, %v6221_v23 }
 0x169   : > { %v4818_v10 = vpop.f32.mrf.mxu1 }
 0x16a   : > { %v4871_v6 = vpop.f32.mrf.mxu0  ;;  %v6376_v17 = vadd.f32 %v2224_v42, %v2002_v31  ;;  %v2005_v40 = vadd.f32 %v4818_v10, %v6227_v29 }
 0x16b   : > { %v1877_v26 = vpop.f32.mrf.mxu1 }
 0x16c   : > { %v2244_v12 = vpop.f32.mrf.mxu0  ;;  %v6379_v14 = vadd.f32 %v4868_v35, %v2005_v40  ;;  %v2004_v0 = vadd.f32 %v1877_v26, %v6233_v36 }
 0x16d   : > { %v4821_v45 = vpop.f32.mrf.mxu1 }
 0x16e   : > { %v4874_v43 = vpop.f32.mrf.mxu0  ;;  %v6382_v3 = vadd.f32 %v2234_v44, %v2004_v0  ;;  %v2007_v57 = vadd.f32 %v4821_v45, %v6239_v41 }
 0x16f   : > { %v1887_v22 = vpop.f32.mrf.mxu1 }
 0x170   : > { %v2254_v23 = vpop.f32.mrf.mxu0  ;;  %v6385_v24 = vadd.f32 %v4871_v6, %v2007_v57  ;;  %v2006_v4 = vadd.f32 %v1887_v22, %v6245_v48 }
 0x171   : > { %v4824_v15 = vpop.f32.mrf.mxu1 }
 0x172   : > { %v4877_v29 = vpop.f32.mrf.mxu0  ;;  %v6388_v2 = vadd.f32 %v2244_v12, %v2006_v4  ;;  %v2009_v7 = vadd.f32 %v4824_v15, %v6251_v58 }
 0x173   : > { %v1897_v59 = vpop.f32.mrf.mxu1 }
 0x174   : > { %v2264_v36 = vpop.f32.mrf.mxu0  ;;  %v6391_v50 = vadd.f32 %v4874_v43, %v2009_v7  ;;  %v2008_v34 = vadd.f32 %v1897_v59, %v6257_v5 }
 0x175   : > { %v4827_v9 = vpop.f32.mrf.mxu1 }
 0x176   : > { %v4880_v41 = vpop.f32.mrf.mxu0  ;;  %v6394_v53 = vadd.f32 %v2254_v23, %v2008_v34  ;;  %v2011_v16 = vadd.f32 %v4827_v9, %v6263_v55 }
 0x177   : > { %v1907_v42 = vpop.f32.mrf.mxu1 }
 0x178   : > { %v2274_v48 = vpop.f32.mrf.mxu0  ;;  %v6397_v49 = vadd.f32 %v4877_v29, %v2011_v16  ;;  %v2010_v30 = vadd.f32 %v1907_v42, %v6269_v32 }
 0x179   : > { %v4830_v35 = vpop.f32.mrf.mxu1 }
 0x17a   : > { %v4883_v58 = vpop.f32.mrf.mxu0  ;;  %v6400_v60 = vadd.f32 %v2264_v36, %v2010_v30  ;;  %v2013_v25 = vadd.f32 %v4830_v35, %v6275_v56 }
 0x17b   : > { %v1917_v44 = vpop.f32.mrf.mxu1 }
 0x17c   : > { %v2284_v5 = vpop.f32.mrf.mxu0  ;;  %v6403_v31 = vadd.f32 %v4880_v41, %v2013_v25  ;;  %v2012_v10 = vadd.f32 %v1917_v44, %v6281_v62 }
 0x17d   : > { %v4833_v6 = vpop.f32.mrf.mxu1 }
 0x17e   : > { %v4886_v55 = vpop.f32.mrf.mxu0  ;;  %v6406_v40 = vadd.f32 %v2274_v48, %v2012_v10  ;;  %v2015_v26 = vadd.f32 %v4833_v6, %v6287_v21 }
 0x17f   : > { %v1927_v12 = vpop.f32.mrf.mxu1 }
 0x180   : > { %v2294_v32 = vpop.f32.mrf.mxu0  ;;  %v6409_v0 = vadd.f32 %v4883_v58, %v2015_v26  ;;  %v2014_v45 = vadd.f32 %v1927_v12, %v6293_v8 }
 0x181   : > { %v4836_v43 = vpop.f32.mrf.mxu1 }
 0x182   : > { %6851 = vst [vmem:[#allocation9_spill] sm:$0xff] %v6409_v0  ;;  %v4889_v56 = vpop.f32.mrf.mxu0  ;;  %v6412_v57 = vadd.f32 %v2284_v5, %v2014_v45  ;;  %v2017_v22 = vadd.f32 %v4836_v43, %v6299_v18 }
 0x183   : > { %v1937_v23 = vpop.f32.mrf.mxu1 }
 0x184   : > { %6852 = vst [vmem:[#allocation10_spill] sm:$0xff] %v6412_v57  ;;  %v2304_v62 = vpop.f32.mrf.mxu0  ;;  %v6415_v4 = vadd.f32 %v4886_v55, %v2017_v22  ;;  %v2016_v15 = vadd.f32 %v1937_v23, %v6304_v20 }
 0x185   : > { %v4839_v29 = vpop.f32.mrf.mxu1 }
 0x186   : > { %6853 = vst [vmem:[#allocation11_spill] sm:$0xff] %v6415_v4  ;;  %v4892_v21 = vpop.f32.mrf.mxu0  ;;  %v6418_v7 = vadd.f32 %v2294_v32, %v2016_v15  ;;  %v2019_v59 = vadd.f32 %v4839_v29, %v6309_v19 }
 0x187   : > { %v1947_v36 = vpop.f32.mrf.mxu1 }
 0x188   : > { %6854 = vst [vmem:[#allocation12_spill] sm:$0xff] %v6418_v7  ;;  %v2314_v8 = vpop.f32.mrf.mxu0  ;;  %v6421_v34 = vadd.f32 %v4889_v56, %v2019_v59  ;;  %v2018_v9 = vadd.f32 %v1947_v36, %v6314_v27 }
 0x189   : > { %v4842_v41 = vpop.f32.mrf.mxu1 }
 0x18a   : > { %6855 = vst [vmem:[#allocation13_spill] sm:$0xff] %v6421_v34  ;;  %v4895_v18 = vpop.f32.mrf.mxu0  ;;  %v6424_v16 = vadd.f32 %v2304_v62, %v2018_v9  ;;  %v2021_v42 = vadd.f32 %v4842_v41, %v6320_v13 }
 0x18b   : > { %v1957_v48 = vpop.f32.mrf.mxu1 }
 0x18c   : > { %6856 = vst [vmem:[#allocation14_spill] sm:$0xff] %v6424_v16  ;;  %v2324_v20 = vpop.f32.mrf.mxu0  ;;  %v6427_v30 = vadd.f32 %v4892_v21, %v2021_v42  ;;  %v2020_v35 = vadd.f32 %v1957_v48, %v6326_v46 }
 0x18d   : > { %v4845_v58 = vpop.f32.mrf.mxu1 }
 0x18e   : > { %6857 = vst [vmem:[#allocation15_spill] sm:$0xff] %v6427_v30  ;;  %v4898_v19 = vpop.f32.mrf.mxu0  ;;  %v6430_v25 = vadd.f32 %v2314_v8, %v2020_v35  ;;  %v2023_v44 = vadd.f32 %v4845_v58, %v6332_v52 }
 0x18f   : > { %v1967_v5 = vpop.f32.mrf.mxu1 }
 0x190   : > { %6858 = vst [vmem:[#allocation16_spill] sm:$0xff] %v6430_v25  ;;  %v2334_v27 = vpop.f32.mrf.mxu0  ;;  %v6433_v10 = vadd.f32 %v4895_v18, %v2023_v44  ;;  %v2022_v6 = vadd.f32 %v1967_v5, %v6338_v61 }
 0x191   : > { %v4848_v55 = vpop.f32.mrf.mxu1 }
 0x192   : > { %6859 = vst [vmem:[#allocation17_spill] sm:$0xff] %v6433_v10  ;;  %v4901_v13 = vpop.f32.mrf.mxu0  ;;  %v6436_v26 = vadd.f32 %v2324_v20, %v2022_v6  ;;  %v2025_v12 = vadd.f32 %v4848_v55, %v6342_v47 }
 0x193   : > { %v1977_v32 = vpop.f32.mrf.mxu1 }
 0x194   : > { %6860 = vst [vmem:[#allocation18_spill] sm:$0xff] %v6436_v26  ;;  %v2344_v46 = vpop.f32.mrf.mxu0  ;;  %v6439_v45 = vadd.f32 %v4898_v19, %v2025_v12  ;;  %v2024_v43 = vadd.f32 %v1977_v32, %v6346_v54 }
 0x195   : > { %v4851_v56 = vpop.f32.mrf.mxu1 }
 0x196   : > { %6861 = vst [vmem:[#allocation19_spill] sm:$0xff] %v6439_v45  ;;  %v6442_v52 = vpop.f32.mrf.mxu0  ;;  %v6444_v22 = vadd.f32 %v2334_v27, %v2024_v43  ;;  %v2027_v23 = vadd.f32 %v4851_v56, %v6349_v11 }
 0x197   : > { %v1987_v61 = vpop.f32.mrf.mxu1 }
 0x198   : > { %6862 = vst [vmem:[#allocation20_spill] sm:$0xff] %v6444_v22  ;;  %v6447_v62 = vpop.f32.mrf.mxu0  ;;  %v6449_v15 = vadd.f32 %v4901_v13, %v2027_v23  ;;  %v2026_v47 = vadd.f32 %v1987_v61, %v6352_v38 }
 0x199   : > { %v4906_v29 = vpop.f32.mrf.mxu1 }
 0x19a   : > { %6863 = vst [vmem:[#allocation21_spill] sm:$0xff] %v6449_v15  ;;  %v6452_v21 = vpop.f32.mrf.mxu0  ;;  %v6454_v59 = vadd.f32 %v2344_v46, %v2026_v47 }
 0x19b   : > { %v2551_v54 = vpop.f32.mrf.mxu1 }
 0x19c   : > { %6864 = vst [vmem:[#allocation22_spill] sm:$0xff] %v6454_v59  ;;  %v6456_v36 = vpop.f32.mrf.mxu0 }
 0x19d   : > { %v6458_v8 = vpop.f32.mrf.mxu1 }
 0x19e   : > { %v6460_v9 = vpop.f32.mrf.mxu0 }
 0x19f   : > { %v6462_v11 = vpop.f32.mrf.mxu1 }
 0x1a0   : > { %v6464_v41 = vpop.f32.mrf.mxu0 }
 0x1a1   : > { %v6466_v18 = vpop.f32.mrf.mxu1 }
 0x1a2   : > { %v6468_v42 = vpop.f32.mrf.mxu0 }
 0x1a3   : > { %v6470_v38 = vpop.f32.mrf.mxu1 }
 0x1a4   : > { %v6472_v48 = vpop.f32.mrf.mxu0 }
 0x1a5   : > { %v6474_v20 = vpop.f32.mrf.mxu1 }
 0x1a6   : > { %v6476_v35 = vpop.f32.mrf.mxu0 }
 0x1a7   : > { %v6478_v58 = vpop.f32.mrf.mxu1 }
 0x1a8   : > { %v6480_v19 = vpop.f32.mrf.mxu0 }
 0x1a9   : > { %v6482_v44 = vpop.f32.mrf.mxu1 }
 0x1aa   : > { %v6484_v5 = vpop.f32.mrf.mxu0 }
 0x1ab   : > { %v6486_v27 = vpop.f32.mrf.mxu1 }
 0x1ac   : > { %v6488_v6 = vpop.f32.mrf.mxu0 }
 0x1ad   : > { %v6490_v55 = vpop.f32.mrf.mxu1 }
 0x1ae   : > { %v6492_v13 = vpop.f32.mrf.mxu0 }
 0x1af   : > { %v6494_v12 = vpop.f32.mrf.mxu1 }
 0x1b0   : > { %v6496_v32 = vpop.f32.mrf.mxu0 }
 0x1b1   : > { %v6498_v46 = vpop.f32.mrf.mxu1 }
 0x1b2   : > { %v6500_v43 = vpop.f32.mrf.mxu0 }
 0x1b3   : > { %v6502_v56 = vpop.f32.mrf.mxu1 }
 0x1b4   : > { %v6504_v23 = vpop.f32.mrf.mxu0 }
 0x1b5   : > { %v6506_v61 = vpop.f32.mrf.mxu1 }
 0x1b6   : > { %v6508_v47 = vpop.f32.mrf.mxu0 }
 0x1b7   : > { %6865 = vst [vmem:[#allocation23_spill] sm:$0xff] %v6508_v47  ;;  %v6510_v59 = vpop.f32.mrf.mxu1 }
 0x1b8   : > { %v6512_v15 = vpop.f32.mrf.mxu0 }
 0x1b9   : > { %6866 = vst [vmem:[#allocation24_spill] sm:$0xff] %v6512_v15  ;;  %v6514_v22 = vpop.f32.mrf.mxu1 }
 0x1ba   : > { %v6516_v45 = vpop.f32.mrf.mxu0 }
 0x1bb   : > { %6867 = vst [vmem:[#allocation25_spill] sm:$0xff] %v6516_v45  ;;  %v6518_v26 = vpop.f32.mrf.mxu1 }
 0x1bc   : > { %v6520_v10 = vpop.f32.mrf.mxu0 }
 0x1bd   : > { %6868 = vst [vmem:[#allocation26_spill] sm:$0xff] %v6520_v10  ;;  %v6522_v25 = vpop.f32.mrf.mxu1 }
 0x1be   : > { %6869 = vst [vmem:[#allocation27_spill] sm:$0xff] %v6522_v25  ;;  %v6524_v30 = vpop.f32.mrf.mxu0 }
 0x1bf   : > { %6870 = vst [vmem:[#allocation28_spill] sm:$0xff] %v6524_v30  ;;  %v6526_v16 = vpop.f32.mrf.mxu1 }
 0x1c0   : > { %6871 = vst [vmem:[#allocation29_spill] sm:$0xff] %v6526_v16  ;;  %v6528_v34 = vpop.f32.mrf.mxu0 }
 0x1c1   : > { %6872 = vst [vmem:[#allocation30_spill] sm:$0xff] %v6528_v34  ;;  %v6530_v7 = vpop.f32.mrf.mxu1 }
 0x1c2   : > { %6873 = vst [vmem:[#allocation31_spill] sm:$0xff] %v6530_v7  ;;  %v6532_v4 = vpop.f32.mrf.mxu0 }
 0x1c3   : > { %6874 = vst [vmem:[#allocation3_spill] sm:$0xff] %v6532_v4  ;;  %v6534_v57 = vpop.f32.mrf.mxu1 }
 0x1c4   : > { %6875 = vst [vmem:[#allocation32_spill] sm:$0xff] %v6534_v57  ;;  %v6536_v15 = vpop.f32.mrf.mxu0 }
 0x1c5   : > { %6876 = vst [vmem:[#allocation4_spill] sm:$0xff] %v6536_v15  ;;  %v6538_v45 = vpop.f32.mrf.mxu1 }
 0x1c6   : > { %6877 = vst [vmem:[#allocation33_spill] sm:$0xff] %v6538_v45  ;;  %v6540_v0 = vpop.f32.mrf.mxu0 }
 0x1c7   : > { %6878 = vst [vmem:[#allocation5_spill] sm:$0xff] %v6540_v0  ;;  %v6542_v10 = vpop.f32.mrf.mxu1 }
 0x1c8   : > { %6879 = vst [vmem:[#allocation6_spill] sm:$0xff] %v6542_v10  ;;  %v6544_v25 = vpop.f32.mrf.mxu0 }
 0x1c9   : > { %6880 = vst [vmem:[#allocation7_spill] sm:$0xff] %v6544_v25  ;;  %v6546_v30 = vpop.f32.mrf.mxu1 }
 0x1ca   : > { %6881 = vst [vmem:[#allocation8_spill] sm:$0xff] %v6546_v30  ;;  %v6548_v16 = vpop.f32.mrf.mxu0 }
 0x1cb   : > { %6882 = vst [vmem:[#allocation34_spill] sm:$0xff] %v6548_v16  ;;  %v6550_v34 = vpop.f32.mrf.mxu1 }
 0x1cc   : > { %6883 = vst [vmem:[#allocation35_spill] sm:$0xff] %v6550_v34  ;;  %v6552_v7 = vpop.f32.mrf.mxu0  ;;  %v2711_v34 = vadd.f32 %v4906_v29, %v6355_v39  ;;  %v2712_v39 = vadd.f32 %v6462_v11, %v6364_v33 }
 0x1cd   : > { %6884 = vst [vmem:[#allocation36_spill] sm:$0xff] %v6552_v7  ;;  %v6554_v4 = vpop.f32.mrf.mxu1 }
 0x1ce   : > { %6885 = vst [vmem:[#allocation37_spill] sm:$0xff] %v6554_v4  ;;  %v6556_v57 = vpop.f32.mrf.mxu0 }
 0x1cf   : > { %6886 = vst [vmem:[#allocation38_spill] sm:$0xff] %v6556_v57  ;;  %v6558_v15 = vpop.f32.mrf.mxu1  ;;  %v2710_v57 = vadd.f32 %v2551_v54, %v6358_v37 }
 0x1d0   : > { %6887 = vst [vmem:[#allocation39_spill] sm:$0xff] %v6558_v15  ;;  %v6560_v45 = vpop.f32.mrf.mxu0 }
 0x1d1   : > { %6888 = vst [vmem:[#allocation40_spill] sm:$0xff] %v6560_v45  ;;  %v6562_v0 = vpop.f32.mrf.mxu1  ;;  %v3068_v45 = vadd.f32 %v6442_v52, %v2711_v34  ;;  %v3067_v47 = vadd.f32 %v6447_v62, %v2710_v57 }
 0x1d2   : > { %6889 = vst [vmem:[#allocation41_spill] sm:$0xff] %v6562_v0  ;;  %v6564_v10 = vpop.f32.mrf.mxu0 }
 0x1d3   : > { %6890 = vst [vmem:[#allocation42_spill] sm:$0xff] %v6564_v10  ;;  %v6566_v25 = vpop.f32.mrf.mxu1  ;;  %v2713_v10 = vadd.f32 %v6458_v8, %v6361_v28 }
 0x1d4   : > { %6891 = vst [vmem:[#allocation43_spill] sm:$0xff] %v6566_v25  ;;  %v6568_v16 = vpop.f32.mrf.mxu0 }
 0x1d5   : > { %6892 = vst [vmem:[#allocation44_spill] sm:$0xff] %v6568_v16  ;;  %v6571_v7 = vpop.f32.mrf.mxu1  ;;  %v2715_v16 = vadd.f32 %v6466_v18, %v6367_v51  ;;  %v3070_v34 = vadd.f32 %v6452_v21, %v2713_v10  ;;  %v2714_v51 = vadd.f32 %v6470_v38, %v6370_v63  ;;  %v2716_v63 = vadd.f32 %v6478_v58, %v6376_v17 }
 0x1d6   : > { %v5056_v4 = vpop.f32.mrf.mxu0 }
 0x1d7   : > { %v6574_v30 = vpop.f32.mrf.mxu1  ;;  %v3072_v8 = vadd.f32 %v6460_v9, %v2715_v16 }
 0x1d8   : > { %6893 = vst [vmem:[#allocation45_spill] sm:$0xff] %v6574_v30  ;;  %v3622_v15 = vpop.f32.mrf.mxu0 }
 0x1d9   : > { %v5006_v0 = vpop.f32.mrf.mxu1 }
 0x1da   : > { %v5059_v25 = vpop.f32.mrf.mxu0  ;;  %v3425_v29 = vadd.f32 %v5006_v0, %v3068_v45  ;;  %v3069_v0 = vadd.f32 %v6456_v36, %v2712_v39  ;;  %v2717_v36 = vadd.f32 %v6474_v20, %v6373_v1  ;;  %v3071_v39 = vadd.f32 %v6464_v41, %v2714_v51 }
 0x1db   : > { %v3265_v37 = vpop.f32.mrf.mxu1  ;;  %v3073_v41 = vadd.f32 %v6472_v48, %v2716_v63 }
 0x1dc   : > { %v3632_v28 = vpop.f32.mrf.mxu0  ;;  %v3782_v57 = vadd.f32 %v5056_v4, %v3425_v29  ;;  %v3424_v52 = vadd.f32 %v3265_v37, %v3067_v47  ;;  %v2719_v37 = vadd.f32 %v6482_v44, %v6379_v14  ;;  %v3074_v17 = vadd.f32 %v6468_v42, %v2717_v36 }
 0x1dd   : > { %v5009_v62 = vpop.f32.mrf.mxu1  ;;  %v2718_v44 = vadd.f32 %v6486_v27, %v6382_v3 }
 0x1de   : > { %v5062_v33 = vpop.f32.mrf.mxu0  ;;  %3814 = vst [vmem:[%s6589_s3 + $0x8] sm:$0xff] %v3782_v57  ;;  %v3781_v45 = vadd.f32 %v3622_v15, %v3424_v52  ;;  %v3427_v54 = vadd.f32 %v5009_v62, %v3070_v34  ;;  %v3883_v11 = vmul.f32 %v3782_v57, %v3782_v57  ;;  %v3076_v14 = vadd.f32 %v6476_v35, %v2719_v37 }
 0x1df   : > { %v3275_v18 = vpop.f32.mrf.mxu1  ;;  %v3075_v36 = vadd.f32 %v6480_v19, %v2718_v44  ;;  %v2722_v37 = vadd.f32 %v6502_v56, %v6394_v53 }
 0x1e0   : > { %v3642_v30 = vpop.f32.mrf.mxu0  ;;  %3813 = vst [vmem:[%s6589_s3] sm:$0xff] %v3781_v45  ;;  %v3845_v10 = vadd.f32 %v3782_v57, %v3781_v45  ;;  %v3882_v4 = vmul.f32 %v3781_v45, %v3781_v45  ;;  %v3784_v21 = vadd.f32 %v5059_v25, %v3427_v54  ;;  %v3426_v47 = vadd.f32 %v3275_v18, %v3069_v0 }
 0x1e1   : > { %v5012_v15 = vpop.f32.mrf.mxu1 }
 0x1e2   : > { %v5065_v38 = vpop.f32.mrf.mxu0  ;;  %v3914_v16 = vadd.f32 %v3883_v11, %v3882_v4  ;;  %3816 = vst [vmem:[%s6589_s3 + $0x18] sm:$0xff] %v3784_v21  ;;  %v3783_v9 = vadd.f32 %v3632_v28, %v3426_v47  ;;  %v3429_v29 = vadd.f32 %v5012_v15, %v3072_v8  ;;  %v3885_v28 = vmul.f32 %v3784_v21, %v3784_v21 }
 0x1e3   : > { %v3285_v25 = vpop.f32.mrf.mxu1  ;;  %v2723_v15 = vadd.f32 %v6498_v46, %v6391_v50 }
 0x1e4   : > { %v3652_v34 = vpop.f32.mrf.mxu0  ;;  %3815 = vst [vmem:[%s6589_s3 + $0x10] sm:$0xff] %v3783_v9  ;;  %v3846_v57 = vadd.f32 %v3845_v10, %v3783_v9  ;;  %v3884_v1 = vmul.f32 %v3783_v9, %v3783_v9  ;;  %v3786_v20 = vadd.f32 %v5062_v33, %v3429_v29  ;;  %v3428_v52 = vadd.f32 %v3285_v25, %v3071_v39 }
 0x1e5   : > { %v5015_v58 = vpop.f32.mrf.mxu1  ;;  %v2721_v33 = vadd.f32 %v6490_v55, %v6385_v24 }
 0x1e6   : > { %v5068_v62 = vpop.f32.mrf.mxu0  ;;  %v3915_v0 = vadd.f32 %v3914_v16, %v3884_v1  ;;  %3818 = vst [vmem:[%s6589_s3 + $0x28] sm:$0xff] %v3786_v20  ;;  %v3785_v51 = vadd.f32 %v3642_v30, %v3428_v52  ;;  %v3847_v45 = vadd.f32 %v3846_v57, %v3784_v21  ;;  %v3431_v54 = vadd.f32 %v5015_v58, %v3074_v17 }
 0x1e7   : > { %v3295_v8 = vpop.f32.mrf.mxu1  ;;  %v2720_v30 = vadd.f32 %v6494_v12, %v6388_v2  ;;  %v3887_v35 = vmul.f32 %v3786_v20, %v3786_v20  ;;  %v3078_v63 = vadd.f32 %v6484_v5, %v2721_v33  ;;  %v3080_v1 = vadd.f32 %v6492_v13, %v2723_v15 }
 0x1e8   : > { %v3662_v42 = vpop.f32.mrf.mxu0  ;;  %3817 = vst [vmem:[%s6589_s3 + $0x20] sm:$0xff] %v3785_v51  ;;  %v3848_v48 = vadd.f32 %v3847_v45, %v3785_v51  ;;  %v3886_v11 = vmul.f32 %v3785_v51, %v3785_v51  ;;  %v3916_v18 = vadd.f32 %v3915_v0, %v3885_v28  ;;  %v3430_v10 = vadd.f32 %v3295_v8, %v3073_v41 }
 0x1e9   : > { %v3788_v4 = vadd.f32 %v5065_v38, %v3431_v54  ;;  %v5018_v21 = vpop.f32.mrf.mxu1  ;;  %v3077_v29 = vadd.f32 %v6488_v6, %v2720_v30  ;;  %v2725_v6 = vadd.f32 %v6506_v61, %v6397_v49  ;;  %v3079_v51 = vadd.f32 %v6496_v32, %v2722_v37 }
 0x1ea   : > { %v5071_v3 = vpop.f32.mrf.mxu0  ;;  %v3917_v27 = vadd.f32 %v3916_v18, %v3886_v11  ;;  %v3787_v47 = vadd.f32 %v3652_v34, %v3430_v10  ;;  %v3849_v24 = vadd.f32 %v3848_v48, %v3786_v20  ;;  %v3433_v55 = vadd.f32 %v5018_v21, %v3076_v14 }
 0x1eb   : > { %3820 = vst [vmem:[%s6589_s3 + $0x38] sm:$0xff] %v3788_v4  ;;  %v3305_v39 = vpop.f32.mrf.mxu1  ;;  %v3889_v34 = vmul.f32 %v3788_v4, %v3788_v4  ;;  %v2724_v13 = vadd.f32 %v6510_v59, %v6400_v60  ;;  %v2727_v49 = vadd.f32 %v6514_v22, %v6403_v31  ;;  %v2726_v31 = vadd.f32 %v6518_v26, %v6406_v40 }
 0x1ec   : > { %v3672_v16 = vpop.f32.mrf.mxu0  ;;  %3819 = vst [vmem:[%s6589_s3 + $0x30] sm:$0xff] %v3787_v47  ;;  %v3850_v2 = vadd.f32 %v3849_v24, %v3787_v47  ;;  %v3888_v12 = vmul.f32 %v3787_v47, %v3787_v47  ;;  %v3918_v38 = vadd.f32 %v3917_v27, %v3887_v35  ;;  %v3790_v9 = vadd.f32 %v5068_v62, %v3433_v55  ;;  %v6895_v55 = vld [vmem:[#allocation9_spill] sm:$0xff] }
 0x1ed   : > { %v3432_v19 = vadd.f32 %v3305_v39, %v3075_v36  ;;  %v5021_v5 = vpop.f32.mrf.mxu1  ;;  %v3081_v30 = vadd.f32 %v6504_v23, %v2724_v13  ;;  %v6896_v36 = vld [vmem:[#allocation27_spill] sm:$0xff] }
 0x1ee   : > { %v5074_v25 = vpop.f32.mrf.mxu0  ;;  %v3919_v50 = vadd.f32 %v3918_v38, %v3888_v12  ;;  %3822 = vst [vmem:[%s6589_s3 + $0x48] sm:$0xff] %v3790_v9  ;;  %v3851_v46 = vadd.f32 %v3850_v2, %v3788_v4  ;;  %v3435_v57 = vadd.f32 %v5021_v5, %v3078_v63  ;;  %v3891_v61 = vmul.f32 %v3790_v9, %v3790_v9  ;;  %v6894_v4 = vld [vmem:[#allocation23_spill] sm:$0xff]  ;;  %v6897_v12 = vld [vmem:[#allocation24_spill] sm:$0xff] }
 0x1ef   : > { %v3789_v20 = vadd.f32 %v3662_v42, %v3432_v19  ;;  %v3315_v52 = vpop.f32.mrf.mxu1  ;;  %v3082_v42 = vadd.f32 %v6500_v43, %v2725_v6  ;;  %v3084_v21 = vadd.f32 %v6894_v4, %v2727_v49  ;;  %v2729_v63 = vadd.f32 %v6896_v36, %v6895_v55 }
 0x1f0   : > { %v3682_v17 = vpop.f32.mrf.mxu0  ;;  %v3920_v41 = vadd.f32 %v3919_v50, %v3889_v34  ;;  %v3792_v53 = vadd.f32 %v5071_v3, %v3435_v57  ;;  %v3434_v56 = vadd.f32 %v3315_v52, %v3077_v29  ;;  %v3083_v38 = vadd.f32 %v6897_v12, %v2726_v31  ;;  %v6899_v29 = vld [vmem:[#allocation29_spill] sm:$0xff]  ;;  %v6901_v34 = vld [vmem:[#allocation31_spill] sm:$0xff] }
 0x1f1   : > { %3821 = vst [vmem:[%s6589_s3 + $0x40] sm:$0xff] %v3789_v20  ;;  %v3852_v58 = vadd.f32 %v3851_v46, %v3789_v20  ;;  %v3890_v62 = vmul.f32 %v3789_v20, %v3789_v20  ;;  %v5024_v28 = vpop.f32.mrf.mxu1  ;;  %v6914_v12 = vld [vmem:[#allocation3_spill] sm:$0xff] }
 0x1f2   : > { %v5077_v0 = vpop.f32.mrf.mxu0  ;;  %3824 = vst [vmem:[%s6589_s3 + $0x58] sm:$0xff] %v3792_v53  ;;  %v3791_v45 = vadd.f32 %v3672_v16, %v3434_v56  ;;  %v3437_v14 = vadd.f32 %v5024_v28, %v3080_v1  ;;  %v3893_v43 = vmul.f32 %v3792_v53, %v3792_v53 }
 0x1f3   : > { %v3921_v44 = vadd.f32 %v3920_v41, %v3890_v62  ;;  %v3853_v33 = vadd.f32 %v3852_v58, %v3790_v9  ;;  %v3325_v54 = vpop.f32.mrf.mxu1  ;;  %v6898_v9 = vld [vmem:[#allocation10_spill] sm:$0xff] }
 0x1f4   : > { %v3692_v8 = vpop.f32.mrf.mxu0  ;;  %3823 = vst [vmem:[%s6589_s3 + $0x50] sm:$0xff] %v3791_v45  ;;  %v3892_v48 = vmul.f32 %v3791_v45, %v3791_v45  ;;  %v3794_v32 = vadd.f32 %v5074_v25, %v3437_v14  ;;  %v3436_v11 = vadd.f32 %v3325_v54, %v3079_v51  ;;  %v2728_v37 = vadd.f32 %v6899_v29, %v6898_v9  ;;  %v6900_v25 = vld [vmem:[#allocation11_spill] sm:$0xff]  ;;  %v6903_v51 = vld [vmem:[#allocation26_spill] sm:$0xff]  ;;  %v6905_v14 = vld [vmem:[#allocation32_spill] sm:$0xff] }
 0x1f5   : > { %v3854_v18 = vadd.f32 %v3853_v33, %v3791_v45  ;;  %v3922_v60 = vadd.f32 %v3921_v44, %v3891_v61  ;;  %v5027_v59 = vpop.f32.mrf.mxu1  ;;  %v2731_v50 = vadd.f32 %v6901_v34, %v6900_v25  ;;  %v6904_v45 = vld [vmem:[#allocation12_spill] sm:$0xff] }
 0x1f6   : > { %v5080_v10 = vpop.f32.mrf.mxu0  ;;  %3826 = vst [vmem:[%s6589_s3 + $0x68] sm:$0xff] %v3794_v32  ;;  %v3793_v22 = vadd.f32 %v3682_v17, %v3436_v11  ;;  %v3439_v35 = vadd.f32 %v5027_v59, %v3082_v42  ;;  %v3895_v46 = vmul.f32 %v3794_v32, %v3794_v32  ;;  %v6902_v17 = vld [vmem:[#allocation25_spill] sm:$0xff]  ;;  %v3085_v13 = vadd.f32 %v6903_v51, %v2728_v37  ;;  %v6906_v33 = vld [vmem:[#allocation28_spill] sm:$0xff] }
 0x1f7   : > { %v3923_v3 = vadd.f32 %v3922_v60, %v3892_v48  ;;  %v3855_v27 = vadd.f32 %v3854_v18, %v3792_v53  ;;  %v3335_v47 = vpop.f32.mrf.mxu1  ;;  %v3086_v6 = vadd.f32 %v6902_v17, %v2729_v63  ;;  %v2730_v49 = vadd.f32 %v6905_v14, %v6904_v45  ;;  %v6907_v18 = vld [vmem:[#allocation13_spill] sm:$0xff]  ;;  %v6912_v63 = vld [vmem:[#allocation15_spill] sm:$0xff] }
 0x1f8   : > { %v3702_v24 = vpop.f32.mrf.mxu0  ;;  %3825 = vst [vmem:[%s6589_s3 + $0x60] sm:$0xff] %v3793_v22  ;;  %v3894_v15 = vmul.f32 %v3793_v22, %v3793_v22  ;;  %v3796_v23 = vadd.f32 %v5077_v0, %v3439_v35  ;;  %v3438_v39 = vadd.f32 %v3335_v47, %v3081_v30  ;;  %v3088_v54 = vadd.f32 %v6906_v33, %v2731_v50  ;;  %v6908_v60 = vld [vmem:[#allocation33_spill] sm:$0xff]  ;;  %v6911_v47 = vld [vmem:[#allocation6_spill] sm:$0xff]  ;;  %v6915_v50 = vld [vmem:[#allocation4_spill] sm:$0xff] }
 0x1f9   : > { %v3856_v16 = vadd.f32 %v3855_v27, %v3793_v22  ;;  %v3924_v40 = vadd.f32 %v3923_v3, %v3893_v43  ;;  %v5030_v26 = vpop.f32.mrf.mxu1  ;;  %v2733_v59 = vadd.f32 %v6908_v60, %v6907_v18  ;;  %v6909_v43 = vld [vmem:[#allocation30_spill] sm:$0xff]  ;;  %v6920_v51 = vld [vmem:[#allocation37_spill] sm:$0xff] }
 0x1fa   : > { %v5083_v2 = vpop.f32.mrf.mxu0  ;;  %3828 = vst [vmem:[%s6589_s3 + $0x78] sm:$0xff] %v3796_v23  ;;  %v3795_v19 = vadd.f32 %v3692_v8, %v3438_v39  ;;  %v3441_v5 = vadd.f32 %v5030_v26, %v3084_v21  ;;  %v3897_v8 = vmul.f32 %v3796_v23, %v3796_v23  ;;  %v3087_v3 = vadd.f32 %v6909_v43, %v2730_v49  ;;  %v6910_v27 = vld [vmem:[#allocation14_spill] sm:$0xff] }
 0x1fb   : > { %v3925_v57 = vadd.f32 %v3924_v40, %v3894_v15  ;;  %v3857_v1 = vadd.f32 %v3856_v16, %v3794_v32  ;;  %v3345_v20 = vpop.f32.mrf.mxu1  ;;  %v6913_v15 = vld [vmem:[#allocation8_spill] sm:$0xff]  ;;  %v6926_v43 = vld [vmem:[#allocation34_spill] sm:$0xff] }
 0x1fc   : > { %v3712_v52 = vpop.f32.mrf.mxu0  ;;  %3827 = vst [vmem:[%s6589_s3 + $0x70] sm:$0xff] %v3795_v19  ;;  %v3896_v41 = vmul.f32 %v3795_v19, %v3795_v19  ;;  %v3798_v53 = vadd.f32 %v5080_v10, %v3441_v5  ;;  %v3440_v56 = vadd.f32 %v3345_v20, %v3083_v38  ;;  %v3090_v38 = vadd.f32 %v6914_v12, %v2733_v59  ;;  %v6924_v59 = vld [vmem:[#allocation19_spill] sm:$0xff] }
 0x1fd   : > { %v3858_v58 = vadd.f32 %v3857_v1, %v3795_v19  ;;  %v3926_v62 = vadd.f32 %v3925_v57, %v3895_v46  ;;  %v5033_v28 = vpop.f32.mrf.mxu1  ;;  %v6916_v57 = vld [vmem:[#allocation16_spill] sm:$0xff]  ;;  %v6917_v1 = vld [vmem:[#allocation35_spill] sm:$0xff] }
 0x1fe   : > { %v5086_v0 = vpop.f32.mrf.mxu0  ;;  %3830 = vst [vmem:[%s6589_s3 + $0x88] sm:$0xff] %v3798_v53  ;;  %v3797_v61 = vadd.f32 %v3702_v24, %v3440_v56  ;;  %v3443_v44 = vadd.f32 %v5033_v28, %v3086_v6  ;;  %v2732_v24 = vadd.f32 %v6911_v47, %v6910_v27  ;;  %v3899_v39 = vmul.f32 %v3798_v53, %v3798_v53  ;;  %v6918_v6 = vld [vmem:[#allocation5_spill] sm:$0xff] }
 0x1ff   : > { %v3927_v42 = vadd.f32 %v3926_v62, %v3896_v41  ;;  %v3859_v48 = vadd.f32 %v3858_v58, %v3796_v23  ;;  %v3355_v32 = vpop.f32.mrf.mxu1  ;;  %v2735_v23 = vadd.f32 %v6913_v15, %v6912_v63  ;;  %v2734_v20 = vadd.f32 %v6917_v1, %v6916_v57 }
 0x200   : > { %v3722_v11 = vpop.f32.mrf.mxu0  ;;  %3829 = vst [vmem:[%s6589_s3 + $0x80] sm:$0xff] %v3797_v61  ;;  %v3898_v10 = vmul.f32 %v3797_v61, %v3797_v61  ;;  %v3800_v30 = vadd.f32 %v5083_v2, %v3443_v44  ;;  %v3442_v31 = vadd.f32 %v3355_v32, %v3085_v13  ;;  %v3089_v46 = vadd.f32 %v6915_v50, %v2732_v24  ;;  %v6923_v32 = vld [vmem:[#allocation39_spill] sm:$0xff] }
 0x201   : > { %v3860_v22 = vadd.f32 %v3859_v48, %v3797_v61  ;;  %v3928_v35 = vadd.f32 %v3927_v42, %v3897_v8  ;;  %v5036_v4 = vpop.f32.mrf.mxu1  ;;  %v3092_v41 = vadd.f32 %v6918_v6, %v2735_v23  ;;  %v6921_v8 = vld [vmem:[#allocation7_spill] sm:$0xff]  ;;  %v6922_v48 = vld [vmem:[#allocation18_spill] sm:$0xff]  ;;  %v6927_v23 = vld [vmem:[#allocation36_spill] sm:$0xff] }
 0x202   : > { %v5089_v21 = vpop.f32.mrf.mxu0  ;;  %3832 = vst [vmem:[%s6589_s3 + $0x98] sm:$0xff] %v3800_v30  ;;  %v3799_v55 = vadd.f32 %v3712_v52, %v3442_v31  ;;  %v3445_v36 = vadd.f32 %v5036_v4, %v3088_v54  ;;  %v3091_v42 = vadd.f32 %v6921_v8, %v2734_v20  ;;  %v6932_v6 = vld [vmem:[#allocation40_spill] sm:$0xff] }
 0x203   : > { %v3929_v16 = vadd.f32 %v3928_v35, %v3898_v10  ;;  %v3861_v40 = vadd.f32 %v3860_v22, %v3798_v53  ;;  %v3365_v26 = vpop.f32.mrf.mxu1  ;;  %v3901_v53 = vmul.f32 %v3800_v30, %v3800_v30  ;;  %v6925_v10 = vld [vmem:[#allocation41_spill] sm:$0xff] }
 0x204   : > { %v3732_v2 = vpop.f32.mrf.mxu0  ;;  %3831 = vst [vmem:[%s6589_s3 + $0x90] sm:$0xff] %v3799_v55  ;;  %v3900_v9 = vmul.f32 %v3799_v55, %v3799_v55  ;;  %v3802_v29 = vadd.f32 %v5086_v0, %v3445_v36  ;;  %v3444_v37 = vadd.f32 %v3365_v26, %v3087_v3  ;;  %v6919_v0 = vld [vmem:[#allocation17_spill] sm:$0xff] }
 0x205   : > { %v3862_v19 = vadd.f32 %v3861_v40, %v3799_v55  ;;  %v3930_v5 = vadd.f32 %v3929_v16, %v3899_v39  ;;  %v5039_v25 = vpop.f32.mrf.mxu1  ;;  %v2737_v13 = vadd.f32 %v6920_v51, %v6919_v0  ;;  %v6928_v16 = vld [vmem:[#allocation20_spill] sm:$0xff]  ;;  %v6929_v40 = vld [vmem:[#allocation43_spill] sm:$0xff] }
 0x206   : > { %v5092_v34 = vpop.f32.mrf.mxu0  ;;  %3834 = vst [vmem:[%s6589_s3 + $0xa8] sm:$0xff] %v3802_v29  ;;  %v3801_v52 = vadd.f32 %v3722_v11, %v3444_v37  ;;  %v3447_v17 = vadd.f32 %v5039_v25, %v3090_v38  ;;  %v2736_v11 = vadd.f32 %v6923_v32, %v6922_v48  ;;  %v3903_v31 = vmul.f32 %v3802_v29, %v3802_v29  ;;  %v6930_v38 = vld [vmem:[#allocation38_spill] sm:$0xff]  ;;  %v6931_v25 = vld [vmem:[#allocation21_spill] sm:$0xff]  ;;  %v6936_v48 = vld [vmem:[#allocation44_spill] sm:$0xff] }
 0x207   : > { %v3931_v56 = vadd.f32 %v3930_v5, %v3900_v9  ;;  %v3863_v58 = vadd.f32 %v3862_v19, %v3800_v30  ;;  %v3375_v62 = vpop.f32.mrf.mxu1  ;;  %v2739_v30 = vadd.f32 %v6925_v10, %v6924_v59  ;;  %v3094_v3 = vadd.f32 %v6926_v43, %v2737_v13 }
 0x208   : > { %v3742_v28 = vpop.f32.mrf.mxu0  ;;  %3833 = vst [vmem:[%s6589_s3 + $0xa0] sm:$0xff] %v3801_v52  ;;  %v3902_v45 = vmul.f32 %v3801_v52, %v3801_v52  ;;  %v3804_v14 = vadd.f32 %v5089_v21, %v3447_v17  ;;  %v3446_v49 = vadd.f32 %v3375_v62, %v3089_v46  ;;  %v3093_v39 = vadd.f32 %v6927_v23, %v2736_v11 }
 0x209   : > { %v3864_v61 = vadd.f32 %v3863_v58, %v3801_v52  ;;  %v3932_v44 = vadd.f32 %v3931_v56, %v3901_v53  ;;  %v5042_v33 = vpop.f32.mrf.mxu1  ;;  %v2738_v26 = vadd.f32 %v6929_v40, %v6928_v16  ;;  %v3096_v9 = vadd.f32 %v6930_v38, %v2739_v30  ;;  %v6933_v53 = vld [vmem:[#allocation22_spill] sm:$0xff]  ;;  %v6934_v56 = vld [vmem:[#allocation45_spill] sm:$0xff] }
 0x20a   : > { %v5095_v54 = vpop.f32.mrf.mxu0  ;;  %3836 = vst [vmem:[%s6589_s3 + $0xb8] sm:$0xff] %v3804_v14  ;;  %v3803_v18 = vadd.f32 %v3732_v2, %v3446_v49  ;;  %v3449_v60 = vadd.f32 %v5042_v33, %v3092_v41  ;;  %v2740_v58 = vadd.f32 %v6934_v56, %v6933_v53 }
 0x20b   : > { %v3933_v22 = vadd.f32 %v3932_v44, %v3902_v45  ;;  %v3865_v35 = vadd.f32 %v3864_v61, %v3802_v29  ;;  %v3385_v4 = vpop.f32.mrf.mxu1  ;;  %v3905_v29 = vmul.f32 %v3804_v14, %v3804_v14  ;;  %v3095_v41 = vadd.f32 %v6932_v6, %v2738_v26  ;;  %v6935_v45 = vld [vmem:[#allocation42_spill] sm:$0xff] }
 0x20c   : > { %v3752_v21 = vpop.f32.mrf.mxu0  ;;  %3835 = vst [vmem:[%s6589_s3 + $0xb0] sm:$0xff] %v3803_v18  ;;  %v3904_v27 = vmul.f32 %v3803_v18, %v3803_v18  ;;  %v3806_v47 = vadd.f32 %v5092_v34, %v3449_v60  ;;  %v3448_v24 = vadd.f32 %v3385_v4, %v3091_v42  ;;  %v2741_v34 = vadd.f32 %v6571_v7, %v6931_v25 }
 0x20d   : > { %v3866_v55 = vadd.f32 %v3865_v35, %v3803_v18  ;;  %v3934_v36 = vadd.f32 %v3933_v22, %v3903_v31  ;;  %v5045_v63 = vpop.f32.mrf.mxu1  ;;  %v3097_v32 = vadd.f32 %v6936_v48, %v2740_v58 }
 0x20e   : > { %v5098_v15 = vpop.f32.mrf.mxu0  ;;  %3838 = vst [vmem:[%s6589_s3 + $0xc8] sm:$0xff] %v3806_v47  ;;  %v3805_v2 = vadd.f32 %v3742_v28, %v3448_v24  ;;  %v3451_v12 = vadd.f32 %v5045_v63, %v3094_v3  ;;  %v3907_v0 = vmul.f32 %v3806_v47, %v3806_v47 }
 0x20f   : > { %v3935_v37 = vadd.f32 %v3934_v36, %v3904_v27  ;;  %v3867_v19 = vadd.f32 %v3866_v55, %v3804_v14  ;;  %v3395_v5 = vpop.f32.mrf.mxu1  ;;  %v3098_v14 = vadd.f32 %v6935_v45, %v2741_v34 }
 0x210   : > { %3837 = vst [vmem:[%s6589_s3 + $0xc0] sm:$0xff] %v3805_v2  ;;  %v3906_v50 = vmul.f32 %v3805_v2, %v3805_v2  ;;  %v3808_v46 = vadd.f32 %v5095_v54, %v3451_v12  ;;  %v3450_v57 = vadd.f32 %v3395_v5, %v3093_v39  ;;  %v3762_v17 = vpop.f32.mrf.mxu0  ;;  %v3951_v12 = vlaneseq }
 0x211   : > { %v3868_v1 = vadd.f32 %v3867_v19, %v3805_v2  ;;  %v3936_v20 = vadd.f32 %v3935_v37, %v3905_v29  ;;  %v5048_v52 = vpop.f32.mrf.mxu1 }
 0x212   : > { %3840 = vst [vmem:[%s6589_s3 + $0xd8] sm:$0xff] %v3808_v46  ;;  %v3807_v62 = vadd.f32 %v3752_v21, %v3450_v57  ;;  %v3453_v28 = vadd.f32 %v5048_v52, %v3096_v9  ;;  %v5101_v42 = vpop.f32.mrf.mxu0  ;;  %v3909_v60 = vmul.f32 %v3808_v46, %v3808_v46  ;;  %v3952_v19 = vshrl.u32 %v3951_v12, 7 }
 0x213   : > { %v3937_v7 = vadd.f32 %v3936_v20, %v3906_v50  ;;  %v3869_v51 = vadd.f32 %v3868_v1, %v3806_v47  ;;  %v3405_v13 = vpop.f32.mrf.mxu1 }
 0x214   : > { %3839 = vst [vmem:[%s6589_s3 + $0xd0] sm:$0xff] %v3807_v62  ;;  %v3908_v49 = vmul.f32 %v3807_v62, %v3807_v62  ;;  %v3810_v61 = vadd.f32 %v5098_v15, %v3453_v28  ;;  %v3452_v44 = vadd.f32 %v3405_v13, %v3095_v41  ;;  %v3772_v43 = vpop.f32.mrf.mxu0  ;;  %vm3954_vm2 = vcmp.eq.s32.totalorder %v3952_v19, 1 }
 0x215   : > { %v3870_v33 = vadd.f32 %v3869_v51, %v3807_v62  ;;  %v3938_v54 = vadd.f32 %v3937_v7, %v3907_v0  ;;  %v5051_v8 = vpop.f32.mrf.mxu1  ;;  %vm3953_vm3 = vcmp.eq.s32.totalorder %v3952_v19, 0 }
 0x216   : > { %3842 = vst [vmem:[%s6589_s3 + $0xe8] sm:$0xff] %v3810_v61  ;;  %v3809_v11 = vadd.f32 %v3762_v17, %v3452_v44  ;;  %v3455_v18 = vadd.f32 %v5051_v8, %v3098_v14  ;;  %v3911_v27 = vmul.f32 %v3810_v61, %v3810_v61 }
 0x217   : > { %v3939_v59 = vadd.f32 %v3938_v54, %v3908_v49  ;;  %v3871_v10 = vadd.f32 %v3870_v33, %v3808_v46  ;;  %v3415_v30 = vpop.f32.mrf.mxu1 }
 0x218   : > { %3841 = vst [vmem:[%s6589_s3 + $0xe0] sm:$0xff] %v3809_v11  ;;  %v3910_v31 = vmul.f32 %v3809_v11, %v3809_v11  ;;  %v3812_v22 = vadd.f32 %v5101_v42, %v3455_v18  ;;  %v3454_v35 = vadd.f32 %v3415_v30, %v3097_v32 }
 0x219   : > { %v3872_v4 = vadd.f32 %v3871_v10, %v3809_v11  ;;  %v3940_v21 = vadd.f32 %v3939_v59, %v3909_v60 }
 0x21a   : > { %3844 = vst [vmem:[%s6589_s3 + $0xf8] sm:$0xff] %v3812_v22  ;;  %v3811_v3 = vadd.f32 %v3772_v43, %v3454_v35  ;;  %v3913_v15 = vmul.f32 %v3812_v22, %v3812_v22 }
 0x21b   : > { %v3941_v47 = vadd.f32 %v3940_v21, %v3910_v31  ;;  %v3873_v24 = vadd.f32 %v3872_v4, %v3810_v61 }
 0x21c   : > { %3843 = vst [vmem:[%s6589_s3 + $0xf0] sm:$0xff] %v3811_v3  ;;  %v3912_v55 = vmul.f32 %v3811_v3, %v3811_v3 }
 0x21d   : > { %v3874_v36 = vadd.f32 %v3873_v24, %v3811_v3  ;;  %v3942_v63 = vadd.f32 %v3941_v47, %v3911_v27 }
 0x21f   : > { %v3875_v23 = vadd.f32 %v3874_v36, %v3812_v22  ;;  %v3943_v39 = vadd.f32 %v3942_v63, %v3912_v55 }
 0x221   : > { %v3876_v16 = vrot.slane %v3875_v23, 4  ;;  %v3944_v40 = vadd.f32 %v3943_v39, %v3913_v15 }
 0x223   : > { %v3877_v26 = vadd.f32 %v3876_v16, %v3875_v23  ;;  %v3945_v2 = vrot.slane %v3944_v40, 4 }
 0x225   : > { %v3878_v38 = vrot.slane %v3877_v26, 2  ;;  %v3946_v9 = vadd.f32 %v3945_v2, %v3944_v40 }
 0x227   : > { %v3879_v29 = vadd.f32 %v3878_v38, %v3877_v26  ;;  %v3947_v37 = vrot.slane %v3946_v9, 2 }
 0x229   : > { %v3948_v5 = vadd.f32 %v3947_v37, %v3946_v9  ;;  %v3880_v25 = vrot.slane %v3879_v29, 1 }
 0x22b   : > { %v3949_v34 = vrot.slane %v3948_v5, 1  ;;  %v3881_v46 = vadd.f32 %v3880_v25, %v3879_v29 }
 0x22d   : > { %v3950_v50 = vadd.f32 %v3949_v34, %v3948_v5 }
 0x22f   : > { %v3955_v57 = vsel %vm3954_vm2, %v3950_v50, 0.0 }
 0x230   : > { %v3956_v1 = vsel %vm3953_vm3, %v3881_v46, %v3955_v57 }
 0x231   : > { %3957 = vst [vmem:[%s235_s22] sm:$0xff] %v3956_v1 }
 0x232 PF: > { %s16_s18 = sadd.s32 1, %s5119_s18  }
 0x233   : > { %p13_p4 = scmp.ge.s32.totalorder %s16_s18, 4  }
 0x235   :  { %15 = sbr.rel (!%p13_p4) target bundleno = 1 (0x1), region = 80 }

</bundles_post_ra>
